<compile_context>
chip_gen: v5e
topology: v5e:2x2
jax: 0.10.0
libtpu: 0.0.40
codegen_flags: <defaults>
</compile_context>

<pallas_src>
import math

import jax
import jax.numpy as jnp
from jax.experimental import pallas as pl
from jax.experimental.pallas import tpu as pltpu


LANE = 128
NODE_PAD = 256                      # node-axis padding granularity
RESIDENT_H_MAX_N = 4096             # resident-H path ceiling (fits 32 MiB scoped VMEM
                                    # on v5e/v6e/v7x with double buffering)
VMEM_LIMIT = 32 * 1024 * 1024


def _round_up(x, m):
    return (x + m - 1) // m * m


def _pad2d(x, rows, cols):
    r, c = x.shape
    if r == rows and c == cols:
        return x
    return jnp.pad(x, ((0, rows - r), (0, cols - c)))


def _pick_tile(n_pad, candidates):
    for c in candidates:
        if c <= n_pad and n_pad % c == 0:
            return c
    return n_pad


# ----------------------------------------------------------------------------
# Kernel 1: feature transform  H = X @ W   (small, row-tiled, bf16 in/out)
# ----------------------------------------------------------------------------
def _xw_kernel(x_ref, w_ref, h_ref):
    h_ref[...] = jnp.dot(
        x_ref[...], w_ref[...], preferred_element_type=jnp.float32
    ).astype(h_ref.dtype)


def _feature_transform(X_p, W_p, *, tm=512):
    n_pad, d_in_pad = X_p.shape
    d_out_pad = W_p.shape[1]
    tm = min(tm, n_pad)
    while n_pad % tm:
        tm //= 2
    return pl.pallas_call(
        _xw_kernel,
        out_shape=jax.ShapeDtypeStruct((n_pad, d_out_pad), jnp.bfloat16),
        grid=(n_pad // tm,),
        in_specs=[
            pl.BlockSpec((tm, d_in_pad), lambda i: (i, 0)),
            pl.BlockSpec((d_in_pad, d_out_pad), lambda i: (0, 0)),
        ],
        out_specs=pl.BlockSpec((tm, d_out_pad), lambda i: (i, 0)),
        compiler_params=pltpu.CompilerParams(
            dimension_semantics=("parallel",),
            vmem_limit_bytes=VMEM_LIMIT,
        ),
    )(X_p, W_p)


# ----------------------------------------------------------------------------
# Kernel 2a: aggregation with fully VMEM-resident H (n_pad <= RESIDENT_H_MAX_N)
#   out[i] = A[i, :] @ H     -- single dot per row tile, no K axis, no H re-read
# ----------------------------------------------------------------------------
def _agg_resident_kernel(a_ref, h_ref, o_ref):
    o_ref[...] = jnp.dot(
        a_ref[...], h_ref[...], preferred_element_type=jnp.float32
    ).astype(o_ref.dtype)


def _agg_resident(A_p, H_p, *, out_dtype, tm=512):
    n_pad = A_p.shape[0]
    d_out_pad = H_p.shape[1]
    tm = min(tm, n_pad)
    while n_pad % tm:
        tm //= 2
    out_bytes = jnp.dtype(out_dtype).itemsize
    cost = pl.CostEstimate(
        flops=2 * n_pad * n_pad * d_out_pad,
        transcendentals=0,
        bytes_accessed=(
            n_pad * n_pad * 2                 # A (bf16), streamed once
            + n_pad * d_out_pad * 2           # H (bf16), resident -> read once
            + n_pad * d_out_pad * out_bytes   # output
        ),
    )
    return pl.pallas_call(
        _agg_resident_kernel,
        out_shape=jax.ShapeDtypeStruct((n_pad, d_out_pad), out_dtype),
        grid=(n_pad // tm,),
        in_specs=[
            pl.BlockSpec((tm, n_pad), lambda i: (i, 0)),
            # Constant block index -> H DMA'd once and kept resident in VMEM.
            pl.BlockSpec((n_pad, d_out_pad), lambda i: (0, 0)),
        ],
        out_specs=pl.BlockSpec((tm, d_out_pad), lambda i: (i, 0)),
        compiler_params=pltpu.CompilerParams(
            # Row tiles are independent -> megacore-shardable on v7x.
            dimension_semantics=("parallel",),
            vmem_limit_bytes=VMEM_LIMIT,
        ),
        cost_estimate=cost,
    )(A_p, H_p)


# ----------------------------------------------------------------------------
# Kernel 2b: tiled-K aggregation with f32 VMEM accumulator (large graphs)
# ----------------------------------------------------------------------------
def _agg_tiled_kernel(a_ref, h_ref, o_ref, acc_ref):
    @pl.when(pl.program_id(1) == 0)
    def _():
        acc_ref[...] = jnp.zeros_like(acc_ref)

    acc_ref[...] += jnp.dot(
        a_ref[...], h_ref[...], preferred_element_type=jnp.float32
    )

    @pl.when(pl.program_id(1) == pl.num_programs(1) - 1)
    def _():
        o_ref[...] = acc_ref[...].astype(o_ref.dtype)


def _agg_tiled(A_p, H_p, *, out_dtype, tm=None, tk=None):
    n_pad = A_p.shape[0]
    d_out_pad = H_p.shape[1]
    if tm is None:
        tm = _pick_tile(n_pad, (512, 256, 128))
    if tk is None:
        tk = _pick_tile(n_pad, (2048, 1024, 512, 256, 128))
    out_bytes = jnp.dtype(out_dtype).itemsize
    cost = pl.CostEstimate(
        flops=2 * n_pad * n_pad * d_out_pad,
        transcendentals=0,
        bytes_accessed=(
            n_pad * n_pad * 2                                   # A (bf16)
            + (n_pad // tm) * n_pad * d_out_pad * 2             # H re-read per row tile
            + n_pad * d_out_pad * out_bytes                     # output
        ),
    )
    return pl.pallas_call(
        _agg_tiled_kernel,
        out_shape=jax.ShapeDtypeStruct((n_pad, d_out_pad), out_dtype),
        grid_spec=pltpu.PrefetchScalarGridSpec(
            num_scalar_prefetch=0,
            grid=(n_pad // tm, n_pad // tk),
            in_specs=[
                pl.BlockSpec((tm, tk), lambda i, k: (i, k)),
                pl.BlockSpec((tk, d_out_pad), lambda i, k: (k, 0)),
            ],
            out_specs=pl.BlockSpec((tm, d_out_pad), lambda i, k: (i, 0)),
            scratch_shapes=[pltpu.VMEM((tm, d_out_pad), jnp.float32)],
        ),
        compiler_params=pltpu.CompilerParams(
            # Rows independent -> "parallel" (megacore); K is a reduction into
            # the resident accumulator -> "arbitrary".
            dimension_semantics=("parallel", "arbitrary"),
            vmem_limit_bytes=VMEM_LIMIT,
        ),
        cost_estimate=cost,
    )(A_p, H_p)


def _aggregation_padded(A_p, H_p, *, out_dtype):
    """out_p = A_p @ H_p on padded bf16 operands (f32 accumulation)."""
    if A_p.shape[0] <= RESIDENT_H_MAX_N:
        return _agg_resident(A_p, H_p, out_dtype=out_dtype)
    return _agg_tiled(A_p, H_p, out_dtype=out_dtype)


# ----------------------------------------------------------------------------
# Full forward: out = A @ ((A @ (X @ W_in)) @ W_out)
# ----------------------------------------------------------------------------
@jax.jit
def gcn_forward(A, X, W_in, W_out):
    n = A.shape[0]
    d_in, d_hid = W_in.shape
    d_out = W_out.shape[1]

    n_pad = _round_up(n, NODE_PAD)
    d_in_pad = _round_up(d_in, LANE)
    d_hid_pad = _round_up(d_hid, LANE)
    d_out_pad = _round_up(d_out, LANE)

    # Pad + cast exactly once; zero padding is exact (padded rows/cols
    # contribute nothing, extra output rows/cols are sliced off at the end).
    A_p = _pad2d(A.astype(jnp.bfloat16), n_pad, n_pad)
    X_p = _pad2d(X.astype(jnp.bfloat16), n_pad, d_in_pad)
    Win_p = _pad2d(W_in.astype(jnp.bfloat16), d_in_pad, d_hid_pad)
    Wout_p = _pad2d(W_out.astype(jnp.bfloat16), d_hid_pad, d_out_pad)

    # Layer 1: keep the activation padded + bf16 for layer 2.
    H1 = _feature_transform(X_p, Win_p)                          # (n_pad, d_hid_pad) bf16
    Xh1_p = _aggregation_padded(A_p, H1, out_dtype=jnp.bfloat16)  # (n_pad, d_hid_pad) bf16

    # Layer 2: f32 output, slice padding off only at the very end.
    H2 = _feature_transform(Xh1_p, Wout_p)                       # (n_pad, d_out_pad) bf16
    out_p = _aggregation_padded(A_p, H2, out_dtype=jnp.float32)  # (n_pad, d_out_pad) f32

    return out_p[:n, :d_out]


class GCNConvPallas:
    """JAX/Pallas port of the PyTorch GCNConv module (forward only)."""

    def __init__(self, input_dim, hidden_dim, output_dim, key, num_layers=2):
        k1, k2 = jax.random.split(key)
        # torch.randn-style init (standard normal), deterministic via PRNGKey.
        self.W_in = jax.random.normal(k1, (input_dim, hidden_dim), jnp.float32)
        self.W_out = jax.random.normal(k2, (hidden_dim, output_dim), jnp.float32)

    def __call__(self, A, X):
        return gcn_forward(A, X, self.W_in, self.W_out)


if __name__ == "__main__":
    key = jax.random.PRNGKey(0)
    k_a, k_x, k_w = jax.random.split(key, 3)

    # Small but non-trivial shapes: exercises row tiling, the resident-H
    # aggregation path and the 128-lane padding path (feature dims not
    # multiples of 128).
    n_nodes, input_dim, hidden_dim, output_dim = 512, 96, 64, 48

    A = jax.random.normal(k_a, (n_nodes, n_nodes), jnp.float32)
    X = jax.random.normal(k_x, (n_nodes, input_dim), jnp.float32)

    model = GCNConvPallas(input_dim, hidden_dim, output_dim, k_w)

    out = model(A, X)
    jax.block_until_ready(out)
    assert out.shape == (n_nodes, output_dim)

    # Reference mirroring the kernel's precision choices (bf16 matmul inputs,
    # f32 accumulation, bf16 inter-layer activation).
    def ref_layer(A_, Xb, Wb, out_bf16):
        f32 = lambda t: t.astype(jnp.float32)
        H = jnp.dot(f32(Xb), f32(Wb)).astype(jnp.bfloat16)        # feature transform -> bf16
        o = jnp.dot(f32(A_.astype(jnp.bfloat16)), f32(H))         # aggregation, f32 acc
        return o.astype(jnp.bfloat16) if out_bf16 else o

    Xb = X.astype(jnp.bfloat16)
    Wi = model.W_in.astype(jnp.bfloat16)
    Wo = model.W_out.astype(jnp.bfloat16)
    h1_ref = ref_layer(A, Xb, Wi, out_bf16=True)
    ref = ref_layer(A, h1_ref, Wo, out_bf16=False)

    rel_err = jnp.max(jnp.abs(out - ref)) / (jnp.max(jnp.abs(ref)) + 1e-6)
    assert float(rel_err) < 1e-2, f"relative error too large: {float(rel_err)}"

    # Also exercise the tiled-K accumulation path (used for graphs with
    # n_pad > RESIDENT_H_MAX_N) on the same small padded operands, with
    # deliberately small tiles so the K reduction spans several grid steps.
    n_pad = _round_up(n_nodes, NODE_PAD)
    A_p = _pad2d(A.astype(jnp.bfloat16), n_pad, n_pad)
    X_p = _pad2d(Xb, n_pad, _round_up(input_dim, LANE))
    Win_p = _pad2d(Wi, _round_up(input_dim, LANE), _round_up(hidden_dim, LANE))
    H_p = _feature_transform(X_p, Win_p)
    res_resident = _agg_resident(A_p, H_p, out_dtype=jnp.float32)
    res_tiled = _agg_tiled(A_p, H_p, out_dtype=jnp.float32, tm=256, tk=128)
    jax.block_until_ready((res_resident, res_tiled))
    assert jnp.allclose(res_resident, res_tiled, rtol=1e-4, atol=1e-2), (
        "tiled aggregation path disagrees with resident path"
    )

    print("KERNEL_OK")
</pallas_src>

<mosaic_0001>
module attributes {stable_mosaic.version = 11 : i64} {
  func.func @_agg_resident_kernel(%arg0: i32, %arg1: memref<512x512xbf16, #tpu.memory_space<vmem>>, %arg2: memref<512x128xbf16, #tpu.memory_space<vmem>>, %arg3: memref<512x128xbf16, #tpu.memory_space<vmem>>) attributes {dimension_semantics = [#tpu.dimension_semantics<parallel>], iteration_bounds = array<i64: 1>, scalar_prefetch = 0 : i64, scratch_operands = 0 : i64, tpu.core_type = #tpu.core_type<tc>, window_params = [{transform_indices = @transform_0, window_bounds = array<i64: 512, 512>}, {pipeline_mode = #tpu.pipeline_mode<synchronous>, transform_indices = @transform_1, window_bounds = array<i64: 512, 128>}, {transform_indices = @transform_2, window_bounds = array<i64: 512, 128>}]} {
    %c0 = arith.constant 0 : index
    %c0_0 = arith.constant 0 : index
    %0 = vector.load %arg1[%c0, %c0_0] : memref<512x512xbf16, #tpu.memory_space<vmem>>, vector<512x512xbf16>
    %c0_1 = arith.constant 0 : index
    %c0_2 = arith.constant 0 : index
    %1 = vector.load %arg2[%c0_1, %c0_2] : memref<512x128xbf16, #tpu.memory_space<vmem>>, vector<512x128xbf16>
    %cst = arith.constant dense<0.000000e+00> : vector<512x128xf32>
    %2 = tpu.matmul %0, %1, %cst {dimension_numbers = #tpu.dot_dimension_numbers<[1], [0], [0], [1], [0, 0, 1, 1], [], []>} : vector<512x512xbf16>, vector<512x128xbf16>, vector<512x128xf32> -> vector<512x128xf32>
    %3 = arith.truncf %2 : vector<512x128xf32> to vector<512x128xbf16>
    %c0_3 = arith.constant 0 : index
    %c0_4 = arith.constant 0 : index
    %4 = vector.load %arg3[%c0_3, %c0_4] : memref<512x128xbf16, #tpu.memory_space<vmem>>, vector<512x128xbf16>
    tpu.vector_store %arg3[%c0_3, %c0_4], %3 {strides = array<i32>} : memref<512x128xbf16, #tpu.memory_space<vmem>>, vector<512x128xbf16>,
    return
  }
  func.func @transform_0(%arg0: i32) -> (i32, i32) {
    %c0_i32 = arith.constant 0 : i32
    %c0_i32_0 = arith.constant 0 : i32
    return %arg0, %c0_i32 : i32, i32
  }
  func.func @transform_1(%arg0: i32) -> (i32, i32) {
    %c0_i32 = arith.constant 0 : i32
    %c0_i32_0 = arith.constant 0 : i32
    %c0_i32_1 = arith.constant 0 : i32
    return %c0_i32, %c0_i32_0 : i32, i32
  }
  func.func @transform_2(%arg0: i32) -> (i32, i32) {
    %c0_i32 = arith.constant 0 : i32
    %c0_i32_0 = arith.constant 0 : i32
    return %arg0, %c0_i32 : i32, i32
  }
}

module attributes {stable_mosaic.version = 11 : i64} {
  func.func @_xw_kernel(%arg0: i32, %arg1: memref<512x128xbf16, #tpu.memory_space<vmem>>, %arg2: memref<128x128xbf16, #tpu.memory_space<vmem>>, %arg3: memref<512x128xbf16, #tpu.memory_space<vmem>>) attributes {dimension_semantics = [#tpu.dimension_semantics<parallel>], iteration_bounds = array<i64: 1>, scalar_prefetch = 0 : i64, scratch_operands = 0 : i64, tpu.core_type = #tpu.core_type<tc>, window_params = [{transform_indices = @transform_0, window_bounds = array<i64: 512, 128>}, {pipeline_mode = #tpu.pipeline_mode<synchronous>, transform_indices = @transform_1, window_bounds = array<i64: 128, 128>}, {transform_indices = @transform_2, window_bounds = array<i64: 512, 128>}]} {
    %c0 = arith.constant 0 : index
    %c0_0 = arith.constant 0 : index
    %0 = vector.load %arg1[%c0, %c0_0] : memref<512x128xbf16, #tpu.memory_space<vmem>>, vector<512x128xbf16>
    %c0_1 = arith.constant 0 : index
    %c0_2 = arith.constant 0 : index
    %1 = vector.load %arg2[%c0_1, %c0_2] : memref<128x128xbf16, #tpu.memory_space<vmem>>, vector<128x128xbf16>
    %cst = arith.constant dense<0.000000e+00> : vector<512x128xf32>
    %2 = tpu.matmul %0, %1, %cst {dimension_numbers = #tpu.dot_dimension_numbers<[1], [0], [0], [1], [0, 0, 1, 1], [], []>} : vector<512x128xbf16>, vector<128x128xbf16>, vector<512x128xf32> -> vector<512x128xf32>
    %3 = arith.truncf %2 : vector<512x128xf32> to vector<512x128xbf16>
    %c0_3 = arith.constant 0 : index
    %c0_4 = arith.constant 0 : index
    %4 = vector.load %arg3[%c0_3, %c0_4] : memref<512x128xbf16, #tpu.memory_space<vmem>>, vector<512x128xbf16>
    tpu.vector_store %arg3[%c0_3, %c0_4], %3 {strides = array<i32>} : memref<512x128xbf16, #tpu.memory_space<vmem>>, vector<512x128xbf16>,
    return
  }
  func.func @transform_0(%arg0: i32) -> (i32, i32) {
    %c0_i32 = arith.constant 0 : i32
    %c0_i32_0 = arith.constant 0 : i32
    return %arg0, %c0_i32 : i32, i32
  }
  func.func @transform_1(%arg0: i32) -> (i32, i32) {
    %c0_i32 = arith.constant 0 : i32
    %c0_i32_0 = arith.constant 0 : i32
    %c0_i32_1 = arith.constant 0 : i32
    return %c0_i32, %c0_i32_0 : i32, i32
  }
  func.func @transform_2(%arg0: i32) -> (i32, i32) {
    %c0_i32 = arith.constant 0 : i32
    %c0_i32_0 = arith.constant 0 : i32
    return %arg0, %c0_i32 : i32, i32
  }
}

module attributes {stable_mosaic.version = 11 : i64} {
  func.func @_agg_resident_kernel(%arg0: i32, %arg1: memref<512x512xbf16, #tpu.memory_space<vmem>>, %arg2: memref<512x128xbf16, #tpu.memory_space<vmem>>, %arg3: memref<512x128xf32, #tpu.memory_space<vmem>>) attributes {dimension_semantics = [#tpu.dimension_semantics<parallel>], iteration_bounds = array<i64: 1>, scalar_prefetch = 0 : i64, scratch_operands = 0 : i64, tpu.core_type = #tpu.core_type<tc>, window_params = [{transform_indices = @transform_0, window_bounds = array<i64: 512, 512>}, {pipeline_mode = #tpu.pipeline_mode<synchronous>, transform_indices = @transform_1, window_bounds = array<i64: 512, 128>}, {transform_indices = @transform_2, window_bounds = array<i64: 512, 128>}]} {
    %c0 = arith.constant 0 : index
    %c0_0 = arith.constant 0 : index
    %0 = vector.load %arg1[%c0, %c0_0] : memref<512x512xbf16, #tpu.memory_space<vmem>>, vector<512x512xbf16>
    %c0_1 = arith.constant 0 : index
    %c0_2 = arith.constant 0 : index
    %1 = vector.load %arg2[%c0_1, %c0_2] : memref<512x128xbf16, #tpu.memory_space<vmem>>, vector<512x128xbf16>
    %cst = arith.constant dense<0.000000e+00> : vector<512x128xf32>
    %2 = tpu.matmul %0, %1, %cst {dimension_numbers = #tpu.dot_dimension_numbers<[1], [0], [0], [1], [0, 0, 1, 1], [], []>} : vector<512x512xbf16>, vector<512x128xbf16>, vector<512x128xf32> -> vector<512x128xf32>
    %c0_3 = arith.constant 0 : index
    %c0_4 = arith.constant 0 : index
    %3 = vector.load %arg3[%c0_3, %c0_4] : memref<512x128xf32, #tpu.memory_space<vmem>>, vector<512x128xf32>
    tpu.vector_store %arg3[%c0_3, %c0_4], %2 {strides = array<i32>} : memref<512x128xf32, #tpu.memory_space<vmem>>, vector<512x128xf32>,
    return
  }
  func.func @transform_0(%arg0: i32) -> (i32, i32) {
    %c0_i32 = arith.constant 0 : i32
    %c0_i32_0 = arith.constant 0 : i32
    return %arg0, %c0_i32 : i32, i32
  }
  func.func @transform_1(%arg0: i32) -> (i32, i32) {
    %c0_i32 = arith.constant 0 : i32
    %c0_i32_0 = arith.constant 0 : i32
    %c0_i32_1 = arith.constant 0 : i32
    return %c0_i32, %c0_i32_0 : i32, i32
  }
  func.func @transform_2(%arg0: i32) -> (i32, i32) {
    %c0_i32 = arith.constant 0 : i32
    %c0_i32_0 = arith.constant 0 : i32
    return %arg0, %c0_i32 : i32, i32
  }
}

</mosaic_0001>

<bundles_post_ra>
// kernel: gcn_forward.4
= control target key start
LH: loop header
LB: loop body
LE: loop exit
PB: predicated region body
PF: predicated region fallthrough
CT: control target
= control target key end

     0   :  { %s1278_s1 = inlined_call_operand.vmem [shape: bf16[128,128], index: 1, kind: input, shape index: {}]   ;;  %s1279_s0 = inlined_call_operand.vmem [shape: bf16[512,128], index: 0, kind: input, shape index: {}]   ;;  %s1280_s2 = inlined_call_operand.vmem [shape: bf16[512,128], index: 2, kind: output, shape index: {}]  }
   0x1   :  { %v831_v0 = vld [vmem:[%s1278_s1 + $0x38] sm:$0xff]  ;;  %v830_v1 = vld [vmem:[%s1278_s1 + $0x30] sm:$0xff]  ;;  %v829_v2 = vld [vmem:[%s1278_s1 + $0x28] sm:$0xff] }
   0x2   :  { %331 = vmatpush.bf16.msra.mxu0 %v831_v0  ;;  %1023 = vmatpush.bf16.msra.mxu1 %v831_v0  ;;  %v828_v3 = vld [vmem:[%s1278_s1 + $0x20] sm:$0xff]  ;;  %v827_v4 = vld [vmem:[%s1278_s1 + $0x18] sm:$0xff]  ;;  %v826_v5 = vld [vmem:[%s1278_s1 + $0x10] sm:$0xff] }
   0x3   :  { %1024 = vmatpush.bf16.msra.mxu2 %v831_v0  ;;  %1025 = vmatpush.bf16.msra.mxu3 %v831_v0  ;;  %v825_v6 = vld [vmem:[%s1278_s1 + $0x8] sm:$0xff]  ;;  %v824_v7 = vld [vmem:[%s1278_s1] sm:$0xff]  ;;  %v794_v16 = vld [vmem:[%s1279_s0 + $0x10] sm:$0xff] }
   0x4   :  { %v792_v8 = vld [vmem:[%s1279_s0] sm:$0xff]  ;;  %v793_v12 = vld [vmem:[%s1279_s0 + $0x8] sm:$0xff]  ;;  %v802_v17 = vld [vmem:[%s1279_s0 + $0x50] sm:$0xff] }
   0x5   :  { %v800_v9 = vld [vmem:[%s1279_s0 + $0x40] sm:$0xff]  ;;  %v801_v13 = vld [vmem:[%s1279_s0 + $0x48] sm:$0xff]  ;;  %v810_v18 = vld [vmem:[%s1279_s0 + $0x90] sm:$0xff] }
   0x6   :  { %332 = vmatpush.bf16.msra.mxu0 %v830_v1  ;;  %1026 = vmatpush.bf16.msra.mxu1 %v830_v1  ;;  %v808_v10 = vld [vmem:[%s1279_s0 + $0x80] sm:$0xff]  ;;  %v809_v14 = vld [vmem:[%s1279_s0 + $0x88] sm:$0xff]  ;;  %v818_v19 = vld [vmem:[%s1279_s0 + $0xd0] sm:$0xff] }
   0x7   :  { %1027 = vmatpush.bf16.msra.mxu2 %v830_v1  ;;  %1028 = vmatpush.bf16.msra.mxu3 %v830_v1  ;;  %v816_v11 = vld [vmem:[%s1279_s0 + $0xc0] sm:$0xff]  ;;  %v817_v15 = vld [vmem:[%s1279_s0 + $0xc8] sm:$0xff]  ;;  %v795_v20 = vld [vmem:[%s1279_s0 + $0x18] sm:$0xff] }
   0x8   :  { %v803_v21 = vld [vmem:[%s1279_s0 + $0x58] sm:$0xff]  ;;  %v796_v24 = vld [vmem:[%s1279_s0 + $0x20] sm:$0xff]  ;;  %v797_v28 = vld [vmem:[%s1279_s0 + $0x28] sm:$0xff] }
   0x9   :  { %v811_v22 = vld [vmem:[%s1279_s0 + $0x98] sm:$0xff]  ;;  %v804_v25 = vld [vmem:[%s1279_s0 + $0x60] sm:$0xff]  ;;  %v805_v29 = vld [vmem:[%s1279_s0 + $0x68] sm:$0xff] }
   0xa   :  { %333 = vmatpush.bf16.msra.mxu0 %v829_v2  ;;  %1029 = vmatpush.bf16.msra.mxu1 %v829_v2  ;;  %v819_v23 = vld [vmem:[%s1279_s0 + $0xd8] sm:$0xff]  ;;  %v812_v26 = vld [vmem:[%s1279_s0 + $0xa0] sm:$0xff]  ;;  %v813_v30 = vld [vmem:[%s1279_s0 + $0xa8] sm:$0xff] }
   0xb   :  { %1030 = vmatpush.bf16.msra.mxu2 %v829_v2  ;;  %1031 = vmatpush.bf16.msra.mxu3 %v829_v2  ;;  %v820_v27 = vld [vmem:[%s1279_s0 + $0xe0] sm:$0xff]  ;;  %v821_v31 = vld [vmem:[%s1279_s0 + $0xe8] sm:$0xff]  ;;  %v798_v32 = vld [vmem:[%s1279_s0 + $0x30] sm:$0xff] }
   0xc   :  { %v806_v33 = vld [vmem:[%s1279_s0 + $0x70] sm:$0xff]  ;;  %v799_v36 = vld [vmem:[%s1279_s0 + $0x38] sm:$0xff] }
   0xd   :  { %v814_v34 = vld [vmem:[%s1279_s0 + $0xb0] sm:$0xff]  ;;  %v807_v37 = vld [vmem:[%s1279_s0 + $0x78] sm:$0xff] }
   0xe   :  { %334 = vmatpush.bf16.msra.mxu0 %v828_v3  ;;  %1032 = vmatpush.bf16.msra.mxu1 %v828_v3  ;;  %v822_v35 = vld [vmem:[%s1279_s0 + $0xf0] sm:$0xff]  ;;  %v815_v38 = vld [vmem:[%s1279_s0 + $0xb8] sm:$0xff] }
   0xf   :  { %1033 = vmatpush.bf16.msra.mxu2 %v828_v3  ;;  %1034 = vmatpush.bf16.msra.mxu3 %v828_v3  ;;  %v823_v39 = vld [vmem:[%s1279_s0 + $0xf8] sm:$0xff] }
  0x12   :  { %335 = vmatpush.bf16.msra.mxu0 %v827_v4  ;;  %1035 = vmatpush.bf16.msra.mxu1 %v827_v4 }
  0x13   :  { %1036 = vmatpush.bf16.msra.mxu2 %v827_v4  ;;  %1037 = vmatpush.bf16.msra.mxu3 %v827_v4 }
  0x16   :  { %336 = vmatpush.bf16.msra.mxu0 %v826_v5  ;;  %1038 = vmatpush.bf16.msra.mxu1 %v826_v5 }
  0x17   :  { %1039 = vmatpush.bf16.msra.mxu2 %v826_v5  ;;  %1040 = vmatpush.bf16.msra.mxu3 %v826_v5 }
  0x1a   :  { %337 = vmatpush.bf16.msra.mxu0 %v825_v6  ;;  %1041 = vmatpush.bf16.msra.mxu1 %v825_v6 }
  0x1b   :  { %1042 = vmatpush.bf16.msra.mxu2 %v825_v6  ;;  %1043 = vmatpush.bf16.msra.mxu3 %v825_v6 }
  0x1e   :  { %338 = vmatpush.bf16.msra.mxu0 %v824_v7  ;;  %1044 = vmatpush.bf16.msra.mxu1 %v824_v7 }
  0x1f   :  { %1045 = vmatpush.bf16.msra.mxu2 %v824_v7  ;;  %1046 = vmatpush.bf16.msra.mxu3 %v824_v7 }
  0x21   :  { %339 = vmatmul.bf16.vlgmr.msra.gmra.mxu0 %v792_v8  ;;  %379 = vmatmul.bf16.vlgmr.msra.gmra.mxu1 %v800_v9 }
  0x22   :  { %419 = vmatmul.bf16.vlgmr.msra.gmra.mxu2 %v808_v10  ;;  %459 = vmatmul.bf16.vlgmr.msra.gmra.mxu3 %v816_v11 }
  0x31   :  { %344 = vmatmul.bf16.gmra.mxu0 %v793_v12  ;;  %384 = vmatmul.bf16.gmra.mxu1 %v801_v13 }
  0x32   :  { %424 = vmatmul.bf16.gmra.mxu2 %v809_v14  ;;  %464 = vmatmul.bf16.gmra.mxu3 %v817_v15 }
  0x41   :  { %349 = vmatmul.bf16.gmra.mxu0 %v794_v16  ;;  %389 = vmatmul.bf16.gmra.mxu1 %v802_v17 }
  0x42   :  { %429 = vmatmul.bf16.gmra.mxu2 %v810_v18  ;;  %469 = vmatmul.bf16.gmra.mxu3 %v818_v19 }
  0x51   :  { %354 = vmatmul.bf16.gmra.mxu0 %v795_v20  ;;  %394 = vmatmul.bf16.gmra.mxu1 %v803_v21 }
  0x52   :  { %434 = vmatmul.bf16.gmra.mxu2 %v811_v22  ;;  %474 = vmatmul.bf16.gmra.mxu3 %v819_v23 }
  0x61   :  { %359 = vmatmul.bf16.gmra.mxu0 %v796_v24  ;;  %399 = vmatmul.bf16.gmra.mxu1 %v804_v25 }
  0x62   :  { %439 = vmatmul.bf16.gmra.mxu2 %v812_v26  ;;  %479 = vmatmul.bf16.gmra.mxu3 %v820_v27 }
  0x71   :  { %364 = vmatmul.bf16.gmra.mxu0 %v797_v28  ;;  %404 = vmatmul.bf16.gmra.mxu1 %v805_v29 }
  0x72   :  { %444 = vmatmul.bf16.gmra.mxu2 %v813_v30  ;;  %484 = vmatmul.bf16.gmra.mxu3 %v821_v31 }
  0x81   :  { %369 = vmatmul.bf16.gmra.mxu0 %v798_v32  ;;  %409 = vmatmul.bf16.gmra.mxu1 %v806_v33 }
  0x82   :  { %449 = vmatmul.bf16.gmra.mxu2 %v814_v34  ;;  %489 = vmatmul.bf16.gmra.mxu3 %v822_v35 }
  0x91   :  { %374 = vmatmul.bf16.gmra.mxu0 %v799_v36  ;;  %414 = vmatmul.bf16.gmra.mxu1 %v807_v37 }
  0x92   :  { %454 = vmatmul.bf16.gmra.mxu2 %v815_v38  ;;  %494 = vmatmul.bf16.gmra.mxu3 %v823_v39 }
  0x9e   :  { %v340_v40 = vpop.f32.mrf.mxu0  ;;  %v380_v41 = vpop.f32.mrf.mxu1 }
  0xa5   :  { %v420_v42 = vpop.f32.mrf.mxu2  ;;  %v460_v43 = vpop.f32.mrf.mxu3 }
  0xa6   :  { %v342_v44 = vpop.f32.mrf.mxu0  ;;  %v382_v45 = vpop.f32.mrf.mxu1 }
  0xa7   :  { %v835_v46 = vpack.c.bf16 %v342_v44, %v340_v40  ;;  %v875_v47 = vpack.c.bf16 %v382_v45, %v380_v41 }
  0xa9   :  { %836 = vst [vmem:[%s1280_s2] sm:$0xff] %v835_v46  }
  0xaa   :  { %999 = vst [vmem:[%s1280_s2 + $0x40] sm:$0xff] %v875_v47  }
  0xad   :  { %v422_v48 = vpop.f32.mrf.mxu2  ;;  %v462_v49 = vpop.f32.mrf.mxu3 }
  0xae   :  { %v915_v50 = vpack.c.bf16 %v422_v48, %v420_v42  ;;  %v955_v51 = vpack.c.bf16 %v462_v49, %v460_v43  ;;  %v345_v52 = vpop.f32.mrf.mxu0  ;;  %v385_v53 = vpop.f32.mrf.mxu1 }
  0xb0   :  { %1007 = vst [vmem:[%s1280_s2 + $0x80] sm:$0xff] %v915_v50  }
  0xb1   :  { %1015 = vst [vmem:[%s1280_s2 + $0xc0] sm:$0xff] %v955_v51  }
  0xb5   :  { %v425_v54 = vpop.f32.mrf.mxu2  ;;  %v465_v55 = vpop.f32.mrf.mxu3 }
  0xb6   :  { %v347_v56 = vpop.f32.mrf.mxu0  ;;  %v387_v57 = vpop.f32.mrf.mxu1 }
  0xb7   :  { %v840_v58 = vpack.c.bf16 %v347_v56, %v345_v52  ;;  %v880_v59 = vpack.c.bf16 %v387_v57, %v385_v53 }
  0xb9   :  { %992 = vst [vmem:[%s1280_s2 + $0x8] sm:$0xff] %v840_v58  }
  0xba   :  { %1000 = vst [vmem:[%s1280_s2 + $0x48] sm:$0xff] %v880_v59  }
  0xbd   :  { %v427_v60 = vpop.f32.mrf.mxu2  ;;  %v467_v61 = vpop.f32.mrf.mxu3 }
  0xbe   :  { %v920_v62 = vpack.c.bf16 %v427_v60, %v425_v54  ;;  %v960_v63 = vpack.c.bf16 %v467_v61, %v465_v55  ;;  %v350_v0 = vpop.f32.mrf.mxu0  ;;  %v390_v1 = vpop.f32.mrf.mxu1 }
  0xc0   :  { %1008 = vst [vmem:[%s1280_s2 + $0x88] sm:$0xff] %v920_v62  }
  0xc1   :  { %1016 = vst [vmem:[%s1280_s2 + $0xc8] sm:$0xff] %v960_v63  }
  0xc5   :  { %v430_v2 = vpop.f32.mrf.mxu2  ;;  %v470_v3 = vpop.f32.mrf.mxu3 }
  0xc6   :  { %v352_v4 = vpop.f32.mrf.mxu0  ;;  %v392_v5 = vpop.f32.mrf.mxu1 }
  0xc7   :  { %v845_v6 = vpack.c.bf16 %v352_v4, %v350_v0  ;;  %v885_v7 = vpack.c.bf16 %v392_v5, %v390_v1 }
  0xc9   :  { %993 = vst [vmem:[%s1280_s2 + $0x10] sm:$0xff] %v845_v6  }
  0xca   :  { %1001 = vst [vmem:[%s1280_s2 + $0x50] sm:$0xff] %v885_v7  }
  0xcd   :  { %v432_v8 = vpop.f32.mrf.mxu2  ;;  %v472_v9 = vpop.f32.mrf.mxu3 }
  0xce   :  { %v925_v10 = vpack.c.bf16 %v432_v8, %v430_v2  ;;  %v965_v11 = vpack.c.bf16 %v472_v9, %v470_v3  ;;  %v355_v12 = vpop.f32.mrf.mxu0  ;;  %v395_v13 = vpop.f32.mrf.mxu1 }
  0xd0   :  { %1009 = vst [vmem:[%s1280_s2 + $0x90] sm:$0xff] %v925_v10  }
  0xd1   :  { %1017 = vst [vmem:[%s1280_s2 + $0xd0] sm:$0xff] %v965_v11  }
  0xd5   :  { %v435_v14 = vpop.f32.mrf.mxu2  ;;  %v475_v15 = vpop.f32.mrf.mxu3 }
  0xd6   :  { %v357_v16 = vpop.f32.mrf.mxu0  ;;  %v397_v17 = vpop.f32.mrf.mxu1 }
  0xd7   :  { %v850_v18 = vpack.c.bf16 %v357_v16, %v355_v12  ;;  %v890_v19 = vpack.c.bf16 %v397_v17, %v395_v13 }
  0xd9   :  { %994 = vst [vmem:[%s1280_s2 + $0x18] sm:$0xff] %v850_v18  }
  0xda   :  { %1002 = vst [vmem:[%s1280_s2 + $0x58] sm:$0xff] %v890_v19  }
  0xdd   :  { %v437_v20 = vpop.f32.mrf.mxu2  ;;  %v477_v21 = vpop.f32.mrf.mxu3 }
  0xde   :  { %v930_v22 = vpack.c.bf16 %v437_v20, %v435_v14  ;;  %v970_v23 = vpack.c.bf16 %v477_v21, %v475_v15  ;;  %v360_v24 = vpop.f32.mrf.mxu0  ;;  %v400_v25 = vpop.f32.mrf.mxu1 }
  0xe0   :  { %1010 = vst [vmem:[%s1280_s2 + $0x98] sm:$0xff] %v930_v22  }
  0xe1   :  { %1018 = vst [vmem:[%s1280_s2 + $0xd8] sm:$0xff] %v970_v23  }
  0xe5   :  { %v440_v26 = vpop.f32.mrf.mxu2  ;;  %v480_v27 = vpop.f32.mrf.mxu3 }
  0xe6   :  { %v362_v28 = vpop.f32.mrf.mxu0  ;;  %v402_v29 = vpop.f32.mrf.mxu1 }
  0xe7   :  { %v855_v30 = vpack.c.bf16 %v362_v28, %v360_v24  ;;  %v895_v31 = vpack.c.bf16 %v402_v29, %v400_v25 }
  0xe9   :  { %995 = vst [vmem:[%s1280_s2 + $0x20] sm:$0xff] %v855_v30  }
  0xea   :  { %1003 = vst [vmem:[%s1280_s2 + $0x60] sm:$0xff] %v895_v31  }
  0xed   :  { %v442_v32 = vpop.f32.mrf.mxu2  ;;  %v482_v33 = vpop.f32.mrf.mxu3 }
  0xee   :  { %v935_v34 = vpack.c.bf16 %v442_v32, %v440_v26  ;;  %v975_v35 = vpack.c.bf16 %v482_v33, %v480_v27  ;;  %v365_v36 = vpop.f32.mrf.mxu0  ;;  %v405_v37 = vpop.f32.mrf.mxu1 }
  0xf0   :  { %1011 = vst [vmem:[%s1280_s2 + $0xa0] sm:$0xff] %v935_v34  }
  0xf1   :  { %1019 = vst [vmem:[%s1280_s2 + $0xe0] sm:$0xff] %v975_v35  }
  0xf5   :  { %v445_v38 = vpop.f32.mrf.mxu2  ;;  %v485_v39 = vpop.f32.mrf.mxu3 }
  0xf6   :  { %v367_v40 = vpop.f32.mrf.mxu0  ;;  %v407_v41 = vpop.f32.mrf.mxu1 }
  0xf7   :  { %v860_v42 = vpack.c.bf16 %v367_v40, %v365_v36  ;;  %v900_v43 = vpack.c.bf16 %v407_v41, %v405_v37 }
  0xf9   :  { %996 = vst [vmem:[%s1280_s2 + $0x28] sm:$0xff] %v860_v42  }
  0xfa   :  { %1004 = vst [vmem:[%s1280_s2 + $0x68] sm:$0xff] %v900_v43  }
  0xfd   :  { %v447_v44 = vpop.f32.mrf.mxu2  ;;  %v487_v45 = vpop.f32.mrf.mxu3 }
  0xfe   :  { %v940_v46 = vpack.c.bf16 %v447_v44, %v445_v38  ;;  %v980_v47 = vpack.c.bf16 %v487_v45, %v485_v39  ;;  %v370_v48 = vpop.f32.mrf.mxu0  ;;  %v410_v49 = vpop.f32.mrf.mxu1 }
 0x100   :  { %1012 = vst [vmem:[%s1280_s2 + $0xa8] sm:$0xff] %v940_v46  }
 0x101   :  { %1020 = vst [vmem:[%s1280_s2 + $0xe8] sm:$0xff] %v980_v47  }
 0x105   :  { %v450_v50 = vpop.f32.mrf.mxu2  ;;  %v490_v51 = vpop.f32.mrf.mxu3 }
 0x106   :  { %v372_v52 = vpop.f32.mrf.mxu0  ;;  %v412_v53 = vpop.f32.mrf.mxu1 }
 0x107   :  { %v865_v54 = vpack.c.bf16 %v372_v52, %v370_v48  ;;  %v905_v55 = vpack.c.bf16 %v412_v53, %v410_v49 }
 0x109   :  { %997 = vst [vmem:[%s1280_s2 + $0x30] sm:$0xff] %v865_v54  }
 0x10a   :  { %1005 = vst [vmem:[%s1280_s2 + $0x70] sm:$0xff] %v905_v55  }
 0x10d   :  { %v452_v56 = vpop.f32.mrf.mxu2  ;;  %v492_v57 = vpop.f32.mrf.mxu3 }
 0x10e   :  { %v945_v58 = vpack.c.bf16 %v452_v56, %v450_v50  ;;  %v985_v59 = vpack.c.bf16 %v492_v57, %v490_v51  ;;  %v375_v60 = vpop.f32.mrf.mxu0  ;;  %v415_v61 = vpop.f32.mrf.mxu1 }
 0x110   :  { %1013 = vst [vmem:[%s1280_s2 + $0xb0] sm:$0xff] %v945_v58  }
 0x111   :  { %1021 = vst [vmem:[%s1280_s2 + $0xf0] sm:$0xff] %v985_v59  }
 0x115   :  { %v455_v62 = vpop.f32.mrf.mxu2  ;;  %v495_v63 = vpop.f32.mrf.mxu3 }
 0x116   :  { %v377_v0 = vpop.f32.mrf.mxu0  ;;  %v417_v1 = vpop.f32.mrf.mxu1 }
 0x117   :  { %v870_v2 = vpack.c.bf16 %v377_v0, %v375_v60  ;;  %v910_v3 = vpack.c.bf16 %v417_v1, %v415_v61 }
 0x119   :  { %998 = vst [vmem:[%s1280_s2 + $0x38] sm:$0xff] %v870_v2  }
 0x11a   :  { %1006 = vst [vmem:[%s1280_s2 + $0x78] sm:$0xff] %v910_v3  }
 0x11d   :  { %v457_v4 = vpop.f32.mrf.mxu2  ;;  %v497_v5 = vpop.f32.mrf.mxu3 }
 0x11e   :  { %v950_v6 = vpack.c.bf16 %v457_v4, %v455_v62  ;;  %v990_v7 = vpack.c.bf16 %v497_v5, %v495_v63 }
 0x120   :  { %1014 = vst [vmem:[%s1280_s2 + $0xb8] sm:$0xff] %v950_v6  }
 0x121   :  { %1022 = vst [vmem:[%s1280_s2 + $0xf8] sm:$0xff] %v990_v7  }

// kernel: gcn_forward.7
= control target key start
LH: loop header
LB: loop body
LE: loop exit
PB: predicated region body
PF: predicated region fallthrough
CT: control target
= control target key end

     0   :  { %s3650_s1 = inlined_call_operand.vmem [shape: bf16[512,128], index: 1, kind: input, shape index: {}]   ;;  %s3651_s0 = inlined_call_operand.vmem [shape: bf16[512,512], index: 0, kind: input, shape index: {}]   ;;  %s3652_s2 = inlined_call_operand.vmem [shape: f32[512,128], index: 2, kind: output, shape index: {}]  }
   0x1   :  { %v2554_v0 = vld [vmem:[%s3650_s1 + $0x38] sm:$0xff]  ;;  %v2553_v4 = vld [vmem:[%s3650_s1 + $0x30] sm:$0xff]  ;;  %v2552_v8 = vld [vmem:[%s3650_s1 + $0x28] sm:$0xff] }
   0x2   :  { %v2562_v1 = vld [vmem:[%s3650_s1 + $0x78] sm:$0xff]  ;;  %1035 = vmatpush.bf16.msra.mxu0 %v2554_v0  ;;  %v2561_v5 = vld [vmem:[%s3650_s1 + $0x70] sm:$0xff]  ;;  %v2560_v9 = vld [vmem:[%s3650_s1 + $0x68] sm:$0xff] }
   0x3   :  { %v2570_v2 = vld [vmem:[%s3650_s1 + $0xb8] sm:$0xff]  ;;  %1204 = vmatpush.bf16.msra.mxu1 %v2562_v1  ;;  %v2569_v6 = vld [vmem:[%s3650_s1 + $0xb0] sm:$0xff]  ;;  %v2568_v10 = vld [vmem:[%s3650_s1 + $0xa8] sm:$0xff] }
   0x4   :  { %v2578_v3 = vld [vmem:[%s3650_s1 + $0xf8] sm:$0xff]  ;;  %1373 = vmatpush.bf16.msra.mxu2 %v2570_v2  ;;  %v2577_v7 = vld [vmem:[%s3650_s1 + $0xf0] sm:$0xff]  ;;  %v2576_v11 = vld [vmem:[%s3650_s1 + $0xe8] sm:$0xff] }
   0x5   :  { %1542 = vmatpush.bf16.msra.mxu3 %v2578_v3  ;;  %v2551_v12 = vld [vmem:[%s3650_s1 + $0x20] sm:$0xff]  ;;  %v2550_v16 = vld [vmem:[%s3650_s1 + $0x18] sm:$0xff]  ;;  %v2549_v20 = vld [vmem:[%s3650_s1 + $0x10] sm:$0xff] }
   0x6   :  { %1036 = vmatpush.bf16.msra.mxu0 %v2553_v4  ;;  %v2559_v13 = vld [vmem:[%s3650_s1 + $0x60] sm:$0xff]  ;;  %v2558_v17 = vld [vmem:[%s3650_s1 + $0x58] sm:$0xff]  ;;  %v2557_v21 = vld [vmem:[%s3650_s1 + $0x50] sm:$0xff] }
   0x7   :  { %1205 = vmatpush.bf16.msra.mxu1 %v2561_v5  ;;  %v2567_v14 = vld [vmem:[%s3650_s1 + $0xa0] sm:$0xff]  ;;  %v2566_v18 = vld [vmem:[%s3650_s1 + $0x98] sm:$0xff]  ;;  %v2565_v22 = vld [vmem:[%s3650_s1 + $0x90] sm:$0xff] }
   0x8   :  { %1374 = vmatpush.bf16.msra.mxu2 %v2569_v6  ;;  %v2575_v15 = vld [vmem:[%s3650_s1 + $0xe0] sm:$0xff]  ;;  %v2574_v19 = vld [vmem:[%s3650_s1 + $0xd8] sm:$0xff]  ;;  %v2573_v23 = vld [vmem:[%s3650_s1 + $0xd0] sm:$0xff] }
   0x9   :  { %1543 = vmatpush.bf16.msra.mxu3 %v2577_v7  ;;  %v2548_v24 = vld [vmem:[%s3650_s1 + $0x8] sm:$0xff]  ;;  %v2547_v28 = vld [vmem:[%s3650_s1] sm:$0xff]  ;;  %v2421_v33 = vld [vmem:[%s3651_s0 + $0xc] sm:$0xf0] }
   0xa   :  { %1037 = vmatpush.bf16.msra.mxu0 %v2552_v8  ;;  %v2556_v25 = vld [vmem:[%s3650_s1 + $0x48] sm:$0xff]  ;;  %v2555_v29 = vld [vmem:[%s3650_s1 + $0x40] sm:$0xff]  ;;  %v1783_v35 = vld [vmem:[%s3651_s0 + $0x10] sm:$0xf0] }
   0xb   :  { %1206 = vmatpush.bf16.msra.mxu1 %v2560_v9  ;;  %v2564_v26 = vld [vmem:[%s3650_s1 + $0x88] sm:$0xff]  ;;  %v2563_v30 = vld [vmem:[%s3650_s1 + $0x80] sm:$0xff]  ;;  %v2422_v37 = vld [vmem:[%s3651_s0 + $0x14] sm:$0xf0] }
   0xc   :  { %1375 = vmatpush.bf16.msra.mxu2 %v2568_v10  ;;  %v2572_v27 = vld [vmem:[%s3650_s1 + $0xc8] sm:$0xff]  ;;  %v2571_v31 = vld [vmem:[%s3650_s1 + $0xc0] sm:$0xff]  ;;  %v1791_v39 = vld [vmem:[%s3651_s0 + $0x18] sm:$0xf0] }
   0xd   :  { %1544 = vmatpush.bf16.msra.mxu3 %v2576_v11  ;;  %v1781_v32 = vld [vmem:[%s3651_s0] sm:$0xf]  ;;  %v2419_v34 = vld [vmem:[%s3651_s0 + $0x4] sm:$0xf]  ;;  %v1789_v36 = vld [vmem:[%s3651_s0 + $0x8] sm:$0xf] }
   0xe   :  { %1038 = vmatpush.bf16.msra.mxu0 %v2551_v12  ;;  %v2420_v38 = vld [vmem:[%s3651_s0 + $0xc] sm:$0xf]  ;;  %v1782_v40 = vor.u32 %v2421_v33, %v1781_v32  ;;  %v1786_v41 = vor.u32 %v2419_v34, %v1783_v35  ;;  %v1790_v42 = vor.u32 %v2422_v37, %v1789_v36  ;;  %v1797_v44 = vld [vmem:[%s3651_s0 + $0x20] sm:$0xf]  ;;  %v2425_v45 = vld [vmem:[%s3651_s0 + $0x2c] sm:$0xf0] }
   0xf   :  { %1207 = vmatpush.bf16.msra.mxu1 %v2559_v13  ;;  %v1794_v43 = vor.u32 %v2420_v38, %v1791_v39  ;;  %v2423_v46 = vld [vmem:[%s3651_s0 + $0x24] sm:$0xf]  ;;  %v1799_v47 = vld [vmem:[%s3651_s0 + $0x30] sm:$0xf0]  ;;  %v1805_v48 = vld [vmem:[%s3651_s0 + $0x28] sm:$0xf]  ;;  %v1798_v52 = vor.u32 %v2425_v45, %v1797_v44 }
  0x10   :  { %1376 = vmatpush.bf16.msra.mxu2 %v2567_v14  ;;  %v2426_v49 = vld [vmem:[%s3651_s0 + $0x34] sm:$0xf0]  ;;  %v2424_v50 = vld [vmem:[%s3651_s0 + $0x2c] sm:$0xf]  ;;  %v1807_v51 = vld [vmem:[%s3651_s0 + $0x38] sm:$0xf0]  ;;  %v1802_v53 = vor.u32 %v2423_v46, %v1799_v47 }
  0x11   :  { %1545 = vmatpush.bf16.msra.mxu3 %v2575_v15  ;;  %v1806_v54 = vor.u32 %v2426_v49, %v1805_v48  ;;  %v1810_v55 = vor.u32 %v2424_v50, %v1807_v51  ;;  %v1813_v56 = vld [vmem:[%s3651_s0 + $0x40] sm:$0xf]  ;;  %v2429_v57 = vld [vmem:[%s3651_s0 + $0x4c] sm:$0xf0]  ;;  %v2427_v58 = vld [vmem:[%s3651_s0 + $0x44] sm:$0xf] }
  0x12   :  { %1039 = vmatpush.bf16.msra.mxu0 %v2550_v16  ;;  %v1815_v59 = vld [vmem:[%s3651_s0 + $0x50] sm:$0xf0]  ;;  %v1821_v60 = vld [vmem:[%s3651_s0 + $0x48] sm:$0xf]  ;;  %v2430_v61 = vld [vmem:[%s3651_s0 + $0x54] sm:$0xf0]  ;;  %v1814_v0 = vor.u32 %v2429_v57, %v1813_v56 }
  0x13   :  { %1208 = vmatpush.bf16.msra.mxu1 %v2558_v17  ;;  %v2428_v62 = vld [vmem:[%s3651_s0 + $0x4c] sm:$0xf]  ;;  %v1823_v63 = vld [vmem:[%s3651_s0 + $0x58] sm:$0xf0]  ;;  %v1818_v1 = vor.u32 %v2427_v58, %v1815_v59  ;;  %v1822_v2 = vor.u32 %v2430_v61, %v1821_v60  ;;  %v1829_v4 = vld [vmem:[%s3651_s0 + $0x60] sm:$0xf] }
  0x14   :  { %1377 = vmatpush.bf16.msra.mxu2 %v2566_v18  ;;  %v1826_v3 = vor.u32 %v2428_v62, %v1823_v63  ;;  %v2433_v5 = vld [vmem:[%s3651_s0 + $0x6c] sm:$0xf0]  ;;  %v2431_v6 = vld [vmem:[%s3651_s0 + $0x64] sm:$0xf]  ;;  %v1831_v7 = vld [vmem:[%s3651_s0 + $0x70] sm:$0xf0] }
  0x15   :  { %1546 = vmatpush.bf16.msra.mxu3 %v2574_v19  ;;  %v1837_v8 = vld [vmem:[%s3651_s0 + $0x68] sm:$0xf]  ;;  %v2434_v9 = vld [vmem:[%s3651_s0 + $0x74] sm:$0xf0]  ;;  %v2432_v10 = vld [vmem:[%s3651_s0 + $0x6c] sm:$0xf]  ;;  %v1830_v12 = vor.u32 %v2433_v5, %v1829_v4  ;;  %v1834_v13 = vor.u32 %v2431_v6, %v1831_v7 }
  0x16   :  { %1040 = vmatpush.bf16.msra.mxu0 %v2549_v20  ;;  %v1839_v11 = vld [vmem:[%s3651_s0 + $0x78] sm:$0xf0]  ;;  %v1838_v14 = vor.u32 %v2434_v9, %v1837_v8  ;;  %v1845_v16 = vld [vmem:[%s3651_s0 + $0x80] sm:$0xf]  ;;  %v2437_v17 = vld [vmem:[%s3651_s0 + $0x8c] sm:$0xf0] }
  0x17   :  { %1209 = vmatpush.bf16.msra.mxu1 %v2557_v21  ;;  %v1842_v15 = vor.u32 %v2432_v10, %v1839_v11  ;;  %v2435_v18 = vld [vmem:[%s3651_s0 + $0x84] sm:$0xf]  ;;  %v1847_v19 = vld [vmem:[%s3651_s0 + $0x90] sm:$0xf0]  ;;  %v1853_v20 = vld [vmem:[%s3651_s0 + $0x88] sm:$0xf] }
  0x18   :  { %1378 = vmatpush.bf16.msra.mxu2 %v2565_v22  ;;  %v2438_v21 = vld [vmem:[%s3651_s0 + $0x94] sm:$0xf0]  ;;  %v2436_v22 = vld [vmem:[%s3651_s0 + $0x8c] sm:$0xf]  ;;  %v1869_v32 = vld [vmem:[%s3651_s0 + $0xa8] sm:$0xf] }
  0x19   :  { %1547 = vmatpush.bf16.msra.mxu3 %v2573_v23  ;;  %v1855_v23 = vld [vmem:[%s3651_s0 + $0x98] sm:$0xf0]  ;;  %v2442_v33 = vld [vmem:[%s3651_s0 + $0xb4] sm:$0xf0]  ;;  %v2440_v34 = vld [vmem:[%s3651_s0 + $0xac] sm:$0xf] }
  0x1a   :  { %1041 = vmatpush.bf16.msra.mxu0 %v2548_v24  ;;  %v1846_v24 = vor.u32 %v2437_v17, %v1845_v16  ;;  %v1871_v35 = vld [vmem:[%s3651_s0 + $0xb8] sm:$0xf0]  ;;  %v1870_v38 = vor.u32 %v2442_v33, %v1869_v32  ;;  %v1885_v44 = vld [vmem:[%s3651_s0 + $0xc8] sm:$0xf]  ;;  %v2446_v45 = vld [vmem:[%s3651_s0 + $0xd4] sm:$0xf0] }
  0x1b   :  { %1210 = vmatpush.bf16.msra.mxu1 %v2556_v25  ;;  %v1850_v25 = vor.u32 %v2435_v18, %v1847_v19  ;;  %v1874_v39 = vor.u32 %v2440_v34, %v1871_v35  ;;  %v2444_v46 = vld [vmem:[%s3651_s0 + $0xcc] sm:$0xf]  ;;  %v1887_v47 = vld [vmem:[%s3651_s0 + $0xd8] sm:$0xf0]  ;;  %v1886_v50 = vor.u32 %v2446_v45, %v1885_v44  ;;  %v1901_v56 = vld [vmem:[%s3651_s0 + $0xe8] sm:$0xf] }
  0x1c   :  { %1379 = vmatpush.bf16.msra.mxu2 %v2564_v26  ;;  %v1854_v26 = vor.u32 %v2438_v21, %v1853_v20  ;;  %v1890_v51 = vor.u32 %v2444_v46, %v1887_v47  ;;  %v2450_v57 = vld [vmem:[%s3651_s0 + $0xf4] sm:$0xf0]  ;;  %v2448_v58 = vld [vmem:[%s3651_s0 + $0xec] sm:$0xf]  ;;  %v1903_v59 = vld [vmem:[%s3651_s0 + $0xf8] sm:$0xf0] }
  0x1d   :  { %1548 = vmatpush.bf16.msra.mxu3 %v2572_v27  ;;  %v1858_v27 = vor.u32 %v2436_v22, %v1855_v23  ;;  %v1902_v62 = vor.u32 %v2450_v57, %v1901_v56  ;;  %v1906_v63 = vor.u32 %v2448_v58, %v1903_v59  ;;  %v1917_v4 = vld [vmem:[%s3651_s0 + $0x108] sm:$0xf]  ;;  %v2454_v5 = vld [vmem:[%s3651_s0 + $0x114] sm:$0xf0]  ;;  %v2452_v6 = vld [vmem:[%s3651_s0 + $0x10c] sm:$0xf] }
  0x1e   :  { %1042 = vmatpush.bf16.msra.mxu0 %v2547_v28  ;;  %v1861_v28 = vld [vmem:[%s3651_s0 + $0xa0] sm:$0xf]  ;;  %v1919_v7 = vld [vmem:[%s3651_s0 + $0x118] sm:$0xf0]  ;;  %v2457_v22 = vld [vmem:[%s3651_s0 + $0x12c] sm:$0xf0] }
  0x1f   :  { %1211 = vmatpush.bf16.msra.mxu1 %v2555_v29  ;;  %v2441_v29 = vld [vmem:[%s3651_s0 + $0xac] sm:$0xf0]  ;;  %v1925_v21 = vld [vmem:[%s3651_s0 + $0x120] sm:$0xf]  ;;  %v2455_v23 = vld [vmem:[%s3651_s0 + $0x124] sm:$0xf] }
  0x20   :  { %1380 = vmatpush.bf16.msra.mxu2 %v2563_v30  ;;  %v2439_v30 = vld [vmem:[%s3651_s0 + $0xa4] sm:$0xf]  ;;  %v1862_v36 = vor.u32 %v2441_v29, %v1861_v28  ;;  %v1935_v28 = vld [vmem:[%s3651_s0 + $0x138] sm:$0xf0]  ;;  %v1926_v32 = vor.u32 %v2457_v22, %v1925_v21  ;;  %v1941_v47 = vld [vmem:[%s3651_s0 + $0x140] sm:$0xf] }
  0x21   :  { %1549 = vmatpush.bf16.msra.mxu3 %v2571_v31  ;;  %1043 = vmatmul.bf16.vlgmr.msra.gmra.mxu0 %v1782_v40  ;;  %v1863_v31 = vld [vmem:[%s3651_s0 + $0xb0] sm:$0xf0]  ;;  %v1877_v40 = vld [vmem:[%s3651_s0 + $0xc0] sm:$0xf] }
  0x22   :  { %1212 = vmatmul.bf16.vlgmr.msra.gmra.mxu1 %v1786_v41  ;;  %v1866_v37 = vor.u32 %v2439_v30, %v1863_v31  ;;  %v2445_v41 = vld [vmem:[%s3651_s0 + $0xcc] sm:$0xf0] }
  0x23   :  { %1381 = vmatmul.bf16.vlgmr.msra.gmra.mxu2 %v1790_v42  ;;  %v2443_v42 = vld [vmem:[%s3651_s0 + $0xc4] sm:$0xf]  ;;  %v1878_v48 = vor.u32 %v2445_v41, %v1877_v40 }
  0x24   :  { %1550 = vmatmul.bf16.vlgmr.msra.gmra.mxu3 %v1794_v43  ;;  %v1879_v43 = vld [vmem:[%s3651_s0 + $0xd0] sm:$0xf0] }
  0x25   :  { %v1882_v49 = vor.u32 %v2443_v42, %v1879_v43 }
  0x31   :  { %1048 = vmatmul.bf16.gmra.mxu0 %v1798_v52  ;;  %v1893_v52 = vld [vmem:[%s3651_s0 + $0xe0] sm:$0xf] }
  0x32   :  { %1217 = vmatmul.bf16.gmra.mxu1 %v1802_v53  ;;  %v2449_v53 = vld [vmem:[%s3651_s0 + $0xec] sm:$0xf0] }
  0x33   :  { %1386 = vmatmul.bf16.gmra.mxu2 %v1806_v54  ;;  %v2447_v54 = vld [vmem:[%s3651_s0 + $0xe4] sm:$0xf]  ;;  %v1894_v60 = vor.u32 %v2449_v53, %v1893_v52  ;;  %v2462_v52 = vld [vmem:[%s3651_s0 + $0x154] sm:$0xf0]  ;;  %v2460_v53 = vld [vmem:[%s3651_s0 + $0x14c] sm:$0xf] }
  0x34   :  { %1555 = vmatmul.bf16.gmra.mxu3 %v1810_v55  ;;  %v1895_v55 = vld [vmem:[%s3651_s0 + $0xf0] sm:$0xf0] }
  0x35   :  { %v1898_v61 = vor.u32 %v2447_v54, %v1895_v55  ;;  %v1951_v54 = vld [vmem:[%s3651_s0 + $0x158] sm:$0xf0] }
  0x41   :  { %1053 = vmatmul.bf16.gmra.mxu0 %v1814_v0  ;;  %v1909_v0 = vld [vmem:[%s3651_s0 + $0x100] sm:$0xf] }
  0x42   :  { %1222 = vmatmul.bf16.gmra.mxu1 %v1818_v1  ;;  %v2453_v1 = vld [vmem:[%s3651_s0 + $0x10c] sm:$0xf0] }
  0x43   :  { %1391 = vmatmul.bf16.gmra.mxu2 %v1822_v2  ;;  %v2451_v2 = vld [vmem:[%s3651_s0 + $0x104] sm:$0xf]  ;;  %v1910_v8 = vor.u32 %v2453_v1, %v1909_v0  ;;  %v1954_v0 = vor.u32 %v2460_v53, %v1951_v54 }
  0x44   :  { %1560 = vmatmul.bf16.gmra.mxu3 %v1826_v3  ;;  %v1911_v3 = vld [vmem:[%s3651_s0 + $0x110] sm:$0xf0] }
  0x45   :  { %v1914_v9 = vor.u32 %v2451_v2, %v1911_v3 }
  0x51   :  { %1058 = vmatmul.bf16.gmra.mxu0 %v1830_v12  ;;  %v1918_v12 = vor.u32 %v2454_v5, %v1917_v4 }
  0x52   :  { %1227 = vmatmul.bf16.gmra.mxu1 %v1834_v13  ;;  %v1922_v13 = vor.u32 %v2452_v6, %v1919_v7 }
  0x53   :  { %1396 = vmatmul.bf16.gmra.mxu2 %v1838_v14 }
  0x54   :  { %1565 = vmatmul.bf16.gmra.mxu3 %v1842_v15 }
  0x61   :  { %1063 = vmatmul.bf16.gmra.mxu0 %v1846_v24  ;;  %v1927_v24 = vld [vmem:[%s3651_s0 + $0x130] sm:$0xf0] }
  0x62   :  { %1232 = vmatmul.bf16.gmra.mxu1 %v1850_v25  ;;  %v1933_v25 = vld [vmem:[%s3651_s0 + $0x128] sm:$0xf]  ;;  %v1930_v33 = vor.u32 %v2455_v23, %v1927_v24 }
  0x63   :  { %1401 = vmatmul.bf16.gmra.mxu2 %v1854_v26  ;;  %v2458_v26 = vld [vmem:[%s3651_s0 + $0x134] sm:$0xf0] }
  0x64   :  { %1570 = vmatmul.bf16.gmra.mxu3 %v1858_v27  ;;  %v2456_v27 = vld [vmem:[%s3651_s0 + $0x12c] sm:$0xf] }
  0x71   :  { %1068 = vmatmul.bf16.gmra.mxu0 %v1862_v36 }
  0x72   :  { %1237 = vmatmul.bf16.gmra.mxu1 %v1866_v37  ;;  %v1934_v37 = vor.u32 %v2458_v26, %v1933_v25 }
  0x73   :  { %1406 = vmatmul.bf16.gmra.mxu2 %v1870_v38  ;;  %v1938_v38 = vor.u32 %v2456_v27, %v1935_v28 }
  0x74   :  { %1575 = vmatmul.bf16.gmra.mxu3 %v1874_v39 }
  0x81   :  { %1073 = vmatmul.bf16.gmra.mxu0 %v1878_v48  ;;  %v2461_v48 = vld [vmem:[%s3651_s0 + $0x14c] sm:$0xf0] }
  0x82   :  { %1242 = vmatmul.bf16.gmra.mxu1 %v1882_v49  ;;  %v2459_v49 = vld [vmem:[%s3651_s0 + $0x144] sm:$0xf]  ;;  %v1942_v58 = vor.u32 %v2461_v48, %v1941_v47 }
  0x83   :  { %1411 = vmatmul.bf16.gmra.mxu2 %v1886_v50  ;;  %v1943_v50 = vld [vmem:[%s3651_s0 + $0x150] sm:$0xf0] }
  0x84   :  { %1580 = vmatmul.bf16.gmra.mxu3 %v1890_v51  ;;  %v1949_v51 = vld [vmem:[%s3651_s0 + $0x148] sm:$0xf]  ;;  %v1946_v59 = vor.u32 %v2459_v49, %v1943_v50 }
  0x91   :  { %1078 = vmatmul.bf16.gmra.mxu0 %v1894_v60 }
  0x92   :  { %1247 = vmatmul.bf16.gmra.mxu1 %v1898_v61 }
  0x93   :  { %1416 = vmatmul.bf16.gmra.mxu2 %v1902_v62 }
  0x94   :  { %1585 = vmatmul.bf16.gmra.mxu3 %v1906_v63  ;;  %v1950_v63 = vor.u32 %v2462_v52, %v1949_v51 }
  0x9e   :  { %v1044_v10 = vpop.f32.mrf.mxu0 }
  0x9f   :  { %v1213_v11 = vpop.f32.mrf.mxu1 }
  0xa0   :  { %v1214_v14 = vadd.f32 %v1213_v11, %v1044_v10  ;;  %v2465_v10 = vld [vmem:[%s3651_s0 + $0x16c] sm:$0xf0]  ;;  %v2463_v11 = vld [vmem:[%s3651_s0 + $0x164] sm:$0xf] }
  0xa1   :  { %1083 = vmatmul.bf16.gmra.mxu0 %v1910_v8 }
  0xa2   :  { %1252 = vmatmul.bf16.gmra.mxu1 %v1914_v9  ;;  %v1957_v9 = vld [vmem:[%s3651_s0 + $0x160] sm:$0xf] }
  0xa3   :  { %1421 = vmatmul.bf16.gmra.mxu2 %v1918_v12  ;;  %v1959_v12 = vld [vmem:[%s3651_s0 + $0x170] sm:$0xf0] }
  0xa4   :  { %1590 = vmatmul.bf16.gmra.mxu3 %v1922_v13  ;;  %v1965_v13 = vld [vmem:[%s3651_s0 + $0x168] sm:$0xf]  ;;  %v1962_v21 = vor.u32 %v2463_v11, %v1959_v12 }
  0xa6   :  { %v1382_v15 = vpop.f32.mrf.mxu2  ;;  %v1046_v18 = vpop.f32.mrf.mxu0 }
  0xa7   :  { %v1551_v16 = vpop.f32.mrf.mxu3  ;;  %v1383_v17 = vadd.f32 %v1382_v15, %v1214_v14  ;;  %v1215_v19 = vpop.f32.mrf.mxu1  ;;  %v2466_v14 = vld [vmem:[%s3651_s0 + $0x174] sm:$0xf0]  ;;  %v2464_v15 = vld [vmem:[%s3651_s0 + $0x16c] sm:$0xf] }
  0xa8   :  { %v1216_v29 = vadd.f32 %v1215_v19, %v1046_v18  ;;  %v1966_v25 = vor.u32 %v2466_v14, %v1965_v13 }
  0xa9   :  { %v1552_v20 = vadd.f32 %v1551_v16, %v1383_v17  ;;  %v1967_v16 = vld [vmem:[%s3651_s0 + $0x178] sm:$0xf0] }
  0xaa   :  { %v1970_v26 = vor.u32 %v2464_v15, %v1967_v16 }
  0xab   :  { %1711 = vst [vmem:[%s3652_s2] sm:$0xff] %v1552_v20  ;;  %v1958_v20 = vor.u32 %v2465_v10, %v1957_v9 }
  0xae   :  { %v1384_v30 = vpop.f32.mrf.mxu2  ;;  %v1049_v35 = vpop.f32.mrf.mxu0 }
  0xaf   :  { %v1553_v31 = vpop.f32.mrf.mxu3  ;;  %v1385_v34 = vadd.f32 %v1384_v30, %v1216_v29  ;;  %v1218_v36 = vpop.f32.mrf.mxu1 }
  0xb0   :  { %v1219_v40 = vadd.f32 %v1218_v36, %v1049_v35  ;;  %v1973_v35 = vld [vmem:[%s3651_s0 + $0x180] sm:$0xf]  ;;  %v2469_v36 = vld [vmem:[%s3651_s0 + $0x18c] sm:$0xf0] }
  0xb1   :  { %v1554_v39 = vadd.f32 %v1553_v31, %v1385_v34  ;;  %1088 = vmatmul.bf16.gmra.mxu0 %v1926_v32 }
  0xb2   :  { %1257 = vmatmul.bf16.gmra.mxu1 %v1930_v33 }
  0xb3   :  { %1712 = vst [vmem:[%s3652_s2 + $0x8] sm:$0xff] %v1554_v39  ;;  %1426 = vmatmul.bf16.gmra.mxu2 %v1934_v37  ;;  %v2467_v37 = vld [vmem:[%s3651_s0 + $0x184] sm:$0xf]  ;;  %v1981_v39 = vld [vmem:[%s3651_s0 + $0x188] sm:$0xf] }
  0xb4   :  { %1595 = vmatmul.bf16.gmra.mxu3 %v1938_v38  ;;  %v1975_v38 = vld [vmem:[%s3651_s0 + $0x190] sm:$0xf0] }
  0xb5   :  { %v1978_v47 = vor.u32 %v2467_v37, %v1975_v38 }
  0xb6   :  { %v1387_v41 = vpop.f32.mrf.mxu2  ;;  %v1051_v44 = vpop.f32.mrf.mxu0 }
  0xb7   :  { %v1556_v42 = vpop.f32.mrf.mxu3  ;;  %v1388_v43 = vadd.f32 %v1387_v41, %v1219_v40  ;;  %v1220_v45 = vpop.f32.mrf.mxu1  ;;  %v2470_v40 = vld [vmem:[%s3651_s0 + $0x194] sm:$0xf0]  ;;  %v2468_v41 = vld [vmem:[%s3651_s0 + $0x18c] sm:$0xf] }
  0xb8   :  { %v1221_v55 = vadd.f32 %v1220_v45, %v1051_v44  ;;  %v1982_v51 = vor.u32 %v2470_v40, %v1981_v39 }
  0xb9   :  { %v1557_v46 = vadd.f32 %v1556_v42, %v1388_v43  ;;  %v1983_v42 = vld [vmem:[%s3651_s0 + $0x198] sm:$0xf0] }
  0xba   :  { %v1986_v52 = vor.u32 %v2468_v41, %v1983_v42 }
  0xbb   :  { %1713 = vst [vmem:[%s3652_s2 + $0x10] sm:$0xff] %v1557_v46  ;;  %v1974_v46 = vor.u32 %v2469_v36, %v1973_v35 }
  0xbe   :  { %v1389_v56 = vpop.f32.mrf.mxu2  ;;  %v1054_v61 = vpop.f32.mrf.mxu0 }
  0xbf   :  { %v1558_v57 = vpop.f32.mrf.mxu3  ;;  %v1390_v60 = vadd.f32 %v1389_v56, %v1221_v55  ;;  %v1223_v62 = vpop.f32.mrf.mxu1 }
  0xc0   :  { %v1224_v2 = vadd.f32 %v1223_v62, %v1054_v61  ;;  %v1989_v61 = vld [vmem:[%s3651_s0 + $0x1a0] sm:$0xf]  ;;  %v2473_v62 = vld [vmem:[%s3651_s0 + $0x1ac] sm:$0xf0] }
  0xc1   :  { %v1559_v1 = vadd.f32 %v1558_v57, %v1390_v60  ;;  %1093 = vmatmul.bf16.gmra.mxu0 %v1942_v58 }
  0xc2   :  { %1262 = vmatmul.bf16.gmra.mxu1 %v1946_v59 }
  0xc3   :  { %1714 = vst [vmem:[%s3652_s2 + $0x18] sm:$0xff] %v1559_v1  ;;  %1431 = vmatmul.bf16.gmra.mxu2 %v1950_v63  ;;  %v2471_v63 = vld [vmem:[%s3651_s0 + $0x1a4] sm:$0xf]  ;;  %v1997_v1 = vld [vmem:[%s3651_s0 + $0x1a8] sm:$0xf] }
  0xc4   :  { %1600 = vmatmul.bf16.gmra.mxu3 %v1954_v0  ;;  %v1991_v0 = vld [vmem:[%s3651_s0 + $0x1b0] sm:$0xf0] }
  0xc5   :  { %v1994_v9 = vor.u32 %v2471_v63, %v1991_v0 }
  0xc6   :  { %v1392_v3 = vpop.f32.mrf.mxu2  ;;  %v1056_v6 = vpop.f32.mrf.mxu0 }
  0xc7   :  { %v1561_v4 = vpop.f32.mrf.mxu3  ;;  %v1393_v5 = vadd.f32 %v1392_v3, %v1224_v2  ;;  %v1225_v7 = vpop.f32.mrf.mxu1  ;;  %v2474_v2 = vld [vmem:[%s3651_s0 + $0x1b4] sm:$0xf0]  ;;  %v2472_v3 = vld [vmem:[%s3651_s0 + $0x1ac] sm:$0xf] }
  0xc8   :  { %v1226_v17 = vadd.f32 %v1225_v7, %v1056_v6  ;;  %v1998_v13 = vor.u32 %v2474_v2, %v1997_v1 }
  0xc9   :  { %v1562_v8 = vadd.f32 %v1561_v4, %v1393_v5  ;;  %v1999_v4 = vld [vmem:[%s3651_s0 + $0x1b8] sm:$0xf0] }
  0xca   :  { %v2002_v14 = vor.u32 %v2472_v3, %v1999_v4 }
  0xcb   :  { %1715 = vst [vmem:[%s3652_s2 + $0x20] sm:$0xff] %v1562_v8  ;;  %v1990_v8 = vor.u32 %v2473_v62, %v1989_v61 }
  0xce   :  { %v1394_v18 = vpop.f32.mrf.mxu2  ;;  %v1059_v23 = vpop.f32.mrf.mxu0 }
  0xcf   :  { %v1563_v19 = vpop.f32.mrf.mxu3  ;;  %v1395_v22 = vadd.f32 %v1394_v18, %v1226_v17  ;;  %v1228_v24 = vpop.f32.mrf.mxu1 }
  0xd0   :  { %v1229_v28 = vadd.f32 %v1228_v24, %v1059_v23  ;;  %v2005_v23 = vld [vmem:[%s3651_s0 + $0x1c0] sm:$0xf]  ;;  %v2477_v24 = vld [vmem:[%s3651_s0 + $0x1cc] sm:$0xf0] }
  0xd1   :  { %v1564_v27 = vadd.f32 %v1563_v19, %v1395_v22  ;;  %1098 = vmatmul.bf16.gmra.mxu0 %v1958_v20 }
  0xd2   :  { %1267 = vmatmul.bf16.gmra.mxu1 %v1962_v21 }
  0xd3   :  { %1716 = vst [vmem:[%s3652_s2 + $0x28] sm:$0xff] %v1564_v27  ;;  %1436 = vmatmul.bf16.gmra.mxu2 %v1966_v25  ;;  %v2475_v25 = vld [vmem:[%s3651_s0 + $0x1c4] sm:$0xf]  ;;  %v2013_v27 = vld [vmem:[%s3651_s0 + $0x1c8] sm:$0xf] }
  0xd4   :  { %1605 = vmatmul.bf16.gmra.mxu3 %v1970_v26  ;;  %v2007_v26 = vld [vmem:[%s3651_s0 + $0x1d0] sm:$0xf0] }
  0xd5   :  { %v2010_v35 = vor.u32 %v2475_v25, %v2007_v26 }
  0xd6   :  { %v1397_v29 = vpop.f32.mrf.mxu2  ;;  %v1061_v32 = vpop.f32.mrf.mxu0 }
  0xd7   :  { %v1566_v30 = vpop.f32.mrf.mxu3  ;;  %v1398_v31 = vadd.f32 %v1397_v29, %v1229_v28  ;;  %v1230_v33 = vpop.f32.mrf.mxu1  ;;  %v2478_v28 = vld [vmem:[%s3651_s0 + $0x1d4] sm:$0xf0]  ;;  %v2476_v29 = vld [vmem:[%s3651_s0 + $0x1cc] sm:$0xf] }
  0xd8   :  { %v1231_v43 = vadd.f32 %v1230_v33, %v1061_v32  ;;  %v2014_v39 = vor.u32 %v2478_v28, %v2013_v27 }
  0xd9   :  { %v1567_v34 = vadd.f32 %v1566_v30, %v1398_v31  ;;  %v2015_v30 = vld [vmem:[%s3651_s0 + $0x1d8] sm:$0xf0] }
  0xda   :  { %v2018_v40 = vor.u32 %v2476_v29, %v2015_v30 }
  0xdb   :  { %1717 = vst [vmem:[%s3652_s2 + $0x30] sm:$0xff] %v1567_v34  ;;  %v2006_v34 = vor.u32 %v2477_v24, %v2005_v23 }
  0xde   :  { %v1399_v44 = vpop.f32.mrf.mxu2  ;;  %v1064_v49 = vpop.f32.mrf.mxu0 }
  0xdf   :  { %v1568_v45 = vpop.f32.mrf.mxu3  ;;  %v1400_v48 = vadd.f32 %v1399_v44, %v1231_v43  ;;  %v1233_v50 = vpop.f32.mrf.mxu1 }
  0xe0   :  { %v1234_v54 = vadd.f32 %v1233_v50, %v1064_v49  ;;  %v2021_v49 = vld [vmem:[%s3651_s0 + $0x1e0] sm:$0xf]  ;;  %v2481_v50 = vld [vmem:[%s3651_s0 + $0x1ec] sm:$0xf0] }
  0xe1   :  { %v1569_v53 = vadd.f32 %v1568_v45, %v1400_v48  ;;  %1103 = vmatmul.bf16.gmra.mxu0 %v1974_v46 }
  0xe2   :  { %1272 = vmatmul.bf16.gmra.mxu1 %v1978_v47 }
  0xe3   :  { %1718 = vst [vmem:[%s3652_s2 + $0x38] sm:$0xff] %v1569_v53  ;;  %1441 = vmatmul.bf16.gmra.mxu2 %v1982_v51  ;;  %v2479_v51 = vld [vmem:[%s3651_s0 + $0x1e4] sm:$0xf]  ;;  %v2029_v53 = vld [vmem:[%s3651_s0 + $0x1e8] sm:$0xf] }
  0xe4   :  { %1610 = vmatmul.bf16.gmra.mxu3 %v1986_v52  ;;  %v2023_v52 = vld [vmem:[%s3651_s0 + $0x1f0] sm:$0xf0] }
  0xe5   :  { %v2026_v61 = vor.u32 %v2479_v51, %v2023_v52 }
  0xe6   :  { %v1402_v55 = vpop.f32.mrf.mxu2  ;;  %v1066_v58 = vpop.f32.mrf.mxu0 }
  0xe7   :  { %v1571_v56 = vpop.f32.mrf.mxu3  ;;  %v1403_v57 = vadd.f32 %v1402_v55, %v1234_v54  ;;  %v1235_v59 = vpop.f32.mrf.mxu1  ;;  %v2482_v54 = vld [vmem:[%s3651_s0 + $0x1f4] sm:$0xf0]  ;;  %v2480_v55 = vld [vmem:[%s3651_s0 + $0x1ec] sm:$0xf] }
  0xe8   :  { %v1236_v5 = vadd.f32 %v1235_v59, %v1066_v58  ;;  %v2030_v1 = vor.u32 %v2482_v54, %v2029_v53 }
  0xe9   :  { %v1572_v60 = vadd.f32 %v1571_v56, %v1403_v57  ;;  %v2031_v56 = vld [vmem:[%s3651_s0 + $0x1f8] sm:$0xf0] }
  0xea   :  { %v2034_v2 = vor.u32 %v2480_v55, %v2031_v56 }
  0xeb   :  { %1719 = vst [vmem:[%s3652_s2 + $0x40] sm:$0xff] %v1572_v60  ;;  %v2022_v60 = vor.u32 %v2481_v50, %v2021_v49 }
  0xee   :  { %v1404_v6 = vpop.f32.mrf.mxu2  ;;  %v1069_v11 = vpop.f32.mrf.mxu0 }
  0xef   :  { %v1573_v7 = vpop.f32.mrf.mxu3  ;;  %v1405_v10 = vadd.f32 %v1404_v6, %v1236_v5  ;;  %v1238_v12 = vpop.f32.mrf.mxu1 }
  0xf0   :  { %v1239_v16 = vadd.f32 %v1238_v12, %v1069_v11  ;;  %v2037_v11 = vld [vmem:[%s3651_s0 + $0x200] sm:$0xf]  ;;  %v2485_v12 = vld [vmem:[%s3651_s0 + $0x20c] sm:$0xf0] }
  0xf1   :  { %v1574_v15 = vadd.f32 %v1573_v7, %v1405_v10  ;;  %1108 = vmatmul.bf16.gmra.mxu0 %v1990_v8 }
  0xf2   :  { %1277 = vmatmul.bf16.gmra.mxu1 %v1994_v9 }
  0xf3   :  { %1720 = vst [vmem:[%s3652_s2 + $0x48] sm:$0xff] %v1574_v15  ;;  %1446 = vmatmul.bf16.gmra.mxu2 %v1998_v13  ;;  %v2483_v13 = vld [vmem:[%s3651_s0 + $0x204] sm:$0xf]  ;;  %v2045_v15 = vld [vmem:[%s3651_s0 + $0x208] sm:$0xf] }
  0xf4   :  { %1615 = vmatmul.bf16.gmra.mxu3 %v2002_v14  ;;  %v2039_v14 = vld [vmem:[%s3651_s0 + $0x210] sm:$0xf0] }
  0xf5   :  { %v2042_v23 = vor.u32 %v2483_v13, %v2039_v14 }
  0xf6   :  { %v1407_v17 = vpop.f32.mrf.mxu2  ;;  %v1071_v20 = vpop.f32.mrf.mxu0 }
  0xf7   :  { %v1576_v18 = vpop.f32.mrf.mxu3  ;;  %v1408_v19 = vadd.f32 %v1407_v17, %v1239_v16  ;;  %v1240_v21 = vpop.f32.mrf.mxu1  ;;  %v2486_v16 = vld [vmem:[%s3651_s0 + $0x214] sm:$0xf0]  ;;  %v2484_v17 = vld [vmem:[%s3651_s0 + $0x20c] sm:$0xf] }
  0xf8   :  { %v1241_v31 = vadd.f32 %v1240_v21, %v1071_v20  ;;  %v2046_v27 = vor.u32 %v2486_v16, %v2045_v15 }
  0xf9   :  { %v1577_v22 = vadd.f32 %v1576_v18, %v1408_v19  ;;  %v2047_v18 = vld [vmem:[%s3651_s0 + $0x218] sm:$0xf0] }
  0xfa   :  { %v2050_v28 = vor.u32 %v2484_v17, %v2047_v18 }
  0xfb   :  { %1721 = vst [vmem:[%s3652_s2 + $0x50] sm:$0xff] %v1577_v22  ;;  %v2038_v22 = vor.u32 %v2485_v12, %v2037_v11 }
  0xfe   :  { %v1409_v32 = vpop.f32.mrf.mxu2  ;;  %v1074_v37 = vpop.f32.mrf.mxu0 }
  0xff   :  { %v1578_v33 = vpop.f32.mrf.mxu3  ;;  %v1410_v36 = vadd.f32 %v1409_v32, %v1241_v31  ;;  %v1243_v38 = vpop.f32.mrf.mxu1 }
 0x100   :  { %v1244_v42 = vadd.f32 %v1243_v38, %v1074_v37  ;;  %v2053_v37 = vld [vmem:[%s3651_s0 + $0x220] sm:$0xf]  ;;  %v2489_v38 = vld [vmem:[%s3651_s0 + $0x22c] sm:$0xf0] }
 0x101   :  { %v1579_v41 = vadd.f32 %v1578_v33, %v1410_v36  ;;  %1113 = vmatmul.bf16.gmra.mxu0 %v2006_v34 }
 0x102   :  { %1282 = vmatmul.bf16.gmra.mxu1 %v2010_v35 }
 0x103   :  { %1722 = vst [vmem:[%s3652_s2 + $0x58] sm:$0xff] %v1579_v41  ;;  %1451 = vmatmul.bf16.gmra.mxu2 %v2014_v39  ;;  %v2487_v39 = vld [vmem:[%s3651_s0 + $0x224] sm:$0xf]  ;;  %v2061_v41 = vld [vmem:[%s3651_s0 + $0x228] sm:$0xf] }
 0x104   :  { %1620 = vmatmul.bf16.gmra.mxu3 %v2018_v40  ;;  %v2055_v40 = vld [vmem:[%s3651_s0 + $0x230] sm:$0xf0] }
 0x105   :  { %v2058_v49 = vor.u32 %v2487_v39, %v2055_v40 }
 0x106   :  { %v1412_v43 = vpop.f32.mrf.mxu2  ;;  %v1076_v46 = vpop.f32.mrf.mxu0 }
 0x107   :  { %v1581_v44 = vpop.f32.mrf.mxu3  ;;  %v1413_v45 = vadd.f32 %v1412_v43, %v1244_v42  ;;  %v1245_v47 = vpop.f32.mrf.mxu1  ;;  %v2490_v42 = vld [vmem:[%s3651_s0 + $0x234] sm:$0xf0]  ;;  %v2488_v43 = vld [vmem:[%s3651_s0 + $0x22c] sm:$0xf] }
 0x108   :  { %v1246_v57 = vadd.f32 %v1245_v47, %v1076_v46  ;;  %v2062_v53 = vor.u32 %v2490_v42, %v2061_v41 }
 0x109   :  { %v1582_v48 = vadd.f32 %v1581_v44, %v1413_v45  ;;  %v2063_v44 = vld [vmem:[%s3651_s0 + $0x238] sm:$0xf0] }
 0x10a   :  { %v2066_v54 = vor.u32 %v2488_v43, %v2063_v44 }
 0x10b   :  { %1723 = vst [vmem:[%s3652_s2 + $0x60] sm:$0xff] %v1582_v48  ;;  %v2054_v48 = vor.u32 %v2489_v38, %v2053_v37 }
 0x10e   :  { %v1414_v58 = vpop.f32.mrf.mxu2  ;;  %v1079_v63 = vpop.f32.mrf.mxu0 }
 0x10f   :  { %v1583_v59 = vpop.f32.mrf.mxu3  ;;  %v1415_v62 = vadd.f32 %v1414_v58, %v1246_v57  ;;  %v1248_v0 = vpop.f32.mrf.mxu1 }
 0x110   :  { %v1249_v4 = vadd.f32 %v1248_v0, %v1079_v63  ;;  %v2069_v63 = vld [vmem:[%s3651_s0 + $0x240] sm:$0xf]  ;;  %v2493_v0 = vld [vmem:[%s3651_s0 + $0x24c] sm:$0xf0] }
 0x111   :  { %v1584_v3 = vadd.f32 %v1583_v59, %v1415_v62  ;;  %1118 = vmatmul.bf16.gmra.mxu0 %v2022_v60 }
 0x112   :  { %1287 = vmatmul.bf16.gmra.mxu1 %v2026_v61 }
 0x113   :  { %1724 = vst [vmem:[%s3652_s2 + $0x68] sm:$0xff] %v1584_v3  ;;  %1456 = vmatmul.bf16.gmra.mxu2 %v2030_v1  ;;  %v2491_v1 = vld [vmem:[%s3651_s0 + $0x244] sm:$0xf]  ;;  %v2077_v3 = vld [vmem:[%s3651_s0 + $0x248] sm:$0xf] }
 0x114   :  { %1625 = vmatmul.bf16.gmra.mxu3 %v2034_v2  ;;  %v2071_v2 = vld [vmem:[%s3651_s0 + $0x250] sm:$0xf0] }
 0x115   :  { %v2074_v11 = vor.u32 %v2491_v1, %v2071_v2 }
 0x116   :  { %v1417_v5 = vpop.f32.mrf.mxu2  ;;  %v1081_v8 = vpop.f32.mrf.mxu0 }
 0x117   :  { %v1586_v6 = vpop.f32.mrf.mxu3  ;;  %v1418_v7 = vadd.f32 %v1417_v5, %v1249_v4  ;;  %v1250_v9 = vpop.f32.mrf.mxu1  ;;  %v2494_v4 = vld [vmem:[%s3651_s0 + $0x254] sm:$0xf0]  ;;  %v2492_v5 = vld [vmem:[%s3651_s0 + $0x24c] sm:$0xf] }
 0x118   :  { %v1251_v19 = vadd.f32 %v1250_v9, %v1081_v8  ;;  %v2078_v15 = vor.u32 %v2494_v4, %v2077_v3 }
 0x119   :  { %v1587_v10 = vadd.f32 %v1586_v6, %v1418_v7  ;;  %v2079_v6 = vld [vmem:[%s3651_s0 + $0x258] sm:$0xf0] }
 0x11a   :  { %v2082_v16 = vor.u32 %v2492_v5, %v2079_v6 }
 0x11b   :  { %1725 = vst [vmem:[%s3652_s2 + $0x70] sm:$0xff] %v1587_v10  ;;  %v2070_v10 = vor.u32 %v2493_v0, %v2069_v63 }
 0x11e   :  { %v1419_v20 = vpop.f32.mrf.mxu2  ;;  %v1084_v25 = vpop.f32.mrf.mxu0 }
 0x11f   :  { %v1588_v21 = vpop.f32.mrf.mxu3  ;;  %v1420_v24 = vadd.f32 %v1419_v20, %v1251_v19  ;;  %v1253_v26 = vpop.f32.mrf.mxu1 }
 0x120   :  { %v1254_v30 = vadd.f32 %v1253_v26, %v1084_v25  ;;  %v2085_v25 = vld [vmem:[%s3651_s0 + $0x260] sm:$0xf]  ;;  %v2497_v26 = vld [vmem:[%s3651_s0 + $0x26c] sm:$0xf0] }
 0x121   :  { %v1589_v29 = vadd.f32 %v1588_v21, %v1420_v24  ;;  %1123 = vmatmul.bf16.gmra.mxu0 %v2038_v22 }
 0x122   :  { %1292 = vmatmul.bf16.gmra.mxu1 %v2042_v23 }
 0x123   :  { %1726 = vst [vmem:[%s3652_s2 + $0x78] sm:$0xff] %v1589_v29  ;;  %1461 = vmatmul.bf16.gmra.mxu2 %v2046_v27  ;;  %v2495_v27 = vld [vmem:[%s3651_s0 + $0x264] sm:$0xf]  ;;  %v2093_v29 = vld [vmem:[%s3651_s0 + $0x268] sm:$0xf] }
 0x124   :  { %1630 = vmatmul.bf16.gmra.mxu3 %v2050_v28  ;;  %v2087_v28 = vld [vmem:[%s3651_s0 + $0x270] sm:$0xf0] }
 0x125   :  { %v2090_v37 = vor.u32 %v2495_v27, %v2087_v28 }
 0x126   :  { %v1422_v31 = vpop.f32.mrf.mxu2  ;;  %v1086_v34 = vpop.f32.mrf.mxu0 }
 0x127   :  { %v1591_v32 = vpop.f32.mrf.mxu3  ;;  %v1423_v33 = vadd.f32 %v1422_v31, %v1254_v30  ;;  %v1255_v35 = vpop.f32.mrf.mxu1  ;;  %v2498_v30 = vld [vmem:[%s3651_s0 + $0x274] sm:$0xf0]  ;;  %v2496_v31 = vld [vmem:[%s3651_s0 + $0x26c] sm:$0xf] }
 0x128   :  { %v1256_v45 = vadd.f32 %v1255_v35, %v1086_v34  ;;  %v2094_v41 = vor.u32 %v2498_v30, %v2093_v29 }
 0x129   :  { %v1592_v36 = vadd.f32 %v1591_v32, %v1423_v33  ;;  %v2095_v32 = vld [vmem:[%s3651_s0 + $0x278] sm:$0xf0] }
 0x12a   :  { %v2098_v42 = vor.u32 %v2496_v31, %v2095_v32 }
 0x12b   :  { %1727 = vst [vmem:[%s3652_s2 + $0x80] sm:$0xff] %v1592_v36  ;;  %v2086_v36 = vor.u32 %v2497_v26, %v2085_v25 }
 0x12e   :  { %v1424_v46 = vpop.f32.mrf.mxu2  ;;  %v1089_v51 = vpop.f32.mrf.mxu0 }
 0x12f   :  { %v1593_v47 = vpop.f32.mrf.mxu3  ;;  %v1425_v50 = vadd.f32 %v1424_v46, %v1256_v45  ;;  %v1258_v52 = vpop.f32.mrf.mxu1 }
 0x130   :  { %v1259_v56 = vadd.f32 %v1258_v52, %v1089_v51  ;;  %v2101_v51 = vld [vmem:[%s3651_s0 + $0x280] sm:$0xf]  ;;  %v2501_v52 = vld [vmem:[%s3651_s0 + $0x28c] sm:$0xf0] }
 0x131   :  { %v1594_v55 = vadd.f32 %v1593_v47, %v1425_v50  ;;  %1128 = vmatmul.bf16.gmra.mxu0 %v2054_v48 }
 0x132   :  { %1297 = vmatmul.bf16.gmra.mxu1 %v2058_v49 }
 0x133   :  { %1728 = vst [vmem:[%s3652_s2 + $0x88] sm:$0xff] %v1594_v55  ;;  %1466 = vmatmul.bf16.gmra.mxu2 %v2062_v53  ;;  %v2499_v53 = vld [vmem:[%s3651_s0 + $0x284] sm:$0xf]  ;;  %v2109_v55 = vld [vmem:[%s3651_s0 + $0x288] sm:$0xf] }
 0x134   :  { %1635 = vmatmul.bf16.gmra.mxu3 %v2066_v54  ;;  %v2103_v54 = vld [vmem:[%s3651_s0 + $0x290] sm:$0xf0] }
 0x135   :  { %v2106_v63 = vor.u32 %v2499_v53, %v2103_v54 }
 0x136   :  { %v1427_v57 = vpop.f32.mrf.mxu2  ;;  %v1091_v60 = vpop.f32.mrf.mxu0 }
 0x137   :  { %v1596_v58 = vpop.f32.mrf.mxu3  ;;  %v1428_v59 = vadd.f32 %v1427_v57, %v1259_v56  ;;  %v1260_v61 = vpop.f32.mrf.mxu1  ;;  %v2502_v56 = vld [vmem:[%s3651_s0 + $0x294] sm:$0xf0]  ;;  %v2500_v57 = vld [vmem:[%s3651_s0 + $0x28c] sm:$0xf] }
 0x138   :  { %v1261_v7 = vadd.f32 %v1260_v61, %v1091_v60  ;;  %v2110_v3 = vor.u32 %v2502_v56, %v2109_v55 }
 0x139   :  { %v1597_v62 = vadd.f32 %v1596_v58, %v1428_v59  ;;  %v2111_v58 = vld [vmem:[%s3651_s0 + $0x298] sm:$0xf0] }
 0x13a   :  { %v2114_v4 = vor.u32 %v2500_v57, %v2111_v58 }
 0x13b   :  { %1729 = vst [vmem:[%s3652_s2 + $0x90] sm:$0xff] %v1597_v62  ;;  %v2102_v62 = vor.u32 %v2501_v52, %v2101_v51 }
 0x13e   :  { %v1429_v8 = vpop.f32.mrf.mxu2  ;;  %v1094_v13 = vpop.f32.mrf.mxu0 }
 0x13f   :  { %v1598_v9 = vpop.f32.mrf.mxu3  ;;  %v1430_v12 = vadd.f32 %v1429_v8, %v1261_v7  ;;  %v1263_v14 = vpop.f32.mrf.mxu1 }
 0x140   :  { %v1264_v18 = vadd.f32 %v1263_v14, %v1094_v13  ;;  %v2117_v13 = vld [vmem:[%s3651_s0 + $0x2a0] sm:$0xf]  ;;  %v2505_v14 = vld [vmem:[%s3651_s0 + $0x2ac] sm:$0xf0] }
 0x141   :  { %v1599_v17 = vadd.f32 %v1598_v9, %v1430_v12  ;;  %1133 = vmatmul.bf16.gmra.mxu0 %v2070_v10 }
 0x142   :  { %1302 = vmatmul.bf16.gmra.mxu1 %v2074_v11 }
 0x143   :  { %1730 = vst [vmem:[%s3652_s2 + $0x98] sm:$0xff] %v1599_v17  ;;  %1471 = vmatmul.bf16.gmra.mxu2 %v2078_v15  ;;  %v2503_v15 = vld [vmem:[%s3651_s0 + $0x2a4] sm:$0xf]  ;;  %v2125_v17 = vld [vmem:[%s3651_s0 + $0x2a8] sm:$0xf] }
 0x144   :  { %1640 = vmatmul.bf16.gmra.mxu3 %v2082_v16  ;;  %v2119_v16 = vld [vmem:[%s3651_s0 + $0x2b0] sm:$0xf0] }
 0x145   :  { %v2122_v25 = vor.u32 %v2503_v15, %v2119_v16 }
 0x146   :  { %v1432_v19 = vpop.f32.mrf.mxu2  ;;  %v1096_v22 = vpop.f32.mrf.mxu0 }
 0x147   :  { %v1601_v20 = vpop.f32.mrf.mxu3  ;;  %v1433_v21 = vadd.f32 %v1432_v19, %v1264_v18  ;;  %v1265_v23 = vpop.f32.mrf.mxu1  ;;  %v2506_v18 = vld [vmem:[%s3651_s0 + $0x2b4] sm:$0xf0]  ;;  %v2504_v19 = vld [vmem:[%s3651_s0 + $0x2ac] sm:$0xf] }
 0x148   :  { %v1266_v33 = vadd.f32 %v1265_v23, %v1096_v22  ;;  %v2126_v29 = vor.u32 %v2506_v18, %v2125_v17 }
 0x149   :  { %v1602_v24 = vadd.f32 %v1601_v20, %v1433_v21  ;;  %v2127_v20 = vld [vmem:[%s3651_s0 + $0x2b8] sm:$0xf0] }
 0x14a   :  { %v2130_v30 = vor.u32 %v2504_v19, %v2127_v20 }
 0x14b   :  { %1731 = vst [vmem:[%s3652_s2 + $0xa0] sm:$0xff] %v1602_v24  ;;  %v2118_v24 = vor.u32 %v2505_v14, %v2117_v13 }
 0x14e   :  { %v1434_v34 = vpop.f32.mrf.mxu2  ;;  %v1099_v39 = vpop.f32.mrf.mxu0 }
 0x14f   :  { %v1603_v35 = vpop.f32.mrf.mxu3  ;;  %v1435_v38 = vadd.f32 %v1434_v34, %v1266_v33  ;;  %v1268_v40 = vpop.f32.mrf.mxu1 }
 0x150   :  { %v1269_v44 = vadd.f32 %v1268_v40, %v1099_v39  ;;  %v2133_v39 = vld [vmem:[%s3651_s0 + $0x2c0] sm:$0xf]  ;;  %v2509_v40 = vld [vmem:[%s3651_s0 + $0x2cc] sm:$0xf0] }
 0x151   :  { %v1604_v43 = vadd.f32 %v1603_v35, %v1435_v38  ;;  %1138 = vmatmul.bf16.gmra.mxu0 %v2086_v36 }
 0x152   :  { %1307 = vmatmul.bf16.gmra.mxu1 %v2090_v37 }
 0x153   :  { %1732 = vst [vmem:[%s3652_s2 + $0xa8] sm:$0xff] %v1604_v43  ;;  %1476 = vmatmul.bf16.gmra.mxu2 %v2094_v41  ;;  %v2507_v41 = vld [vmem:[%s3651_s0 + $0x2c4] sm:$0xf]  ;;  %v2141_v43 = vld [vmem:[%s3651_s0 + $0x2c8] sm:$0xf] }
 0x154   :  { %1645 = vmatmul.bf16.gmra.mxu3 %v2098_v42  ;;  %v2135_v42 = vld [vmem:[%s3651_s0 + $0x2d0] sm:$0xf0] }
 0x155   :  { %v2138_v51 = vor.u32 %v2507_v41, %v2135_v42 }
 0x156   :  { %v1437_v45 = vpop.f32.mrf.mxu2  ;;  %v1101_v48 = vpop.f32.mrf.mxu0 }
 0x157   :  { %v1606_v46 = vpop.f32.mrf.mxu3  ;;  %v1438_v47 = vadd.f32 %v1437_v45, %v1269_v44  ;;  %v1270_v49 = vpop.f32.mrf.mxu1  ;;  %v2510_v44 = vld [vmem:[%s3651_s0 + $0x2d4] sm:$0xf0]  ;;  %v2508_v45 = vld [vmem:[%s3651_s0 + $0x2cc] sm:$0xf] }
 0x158   :  { %v1271_v59 = vadd.f32 %v1270_v49, %v1101_v48  ;;  %v2142_v55 = vor.u32 %v2510_v44, %v2141_v43 }
 0x159   :  { %v1607_v50 = vadd.f32 %v1606_v46, %v1438_v47  ;;  %v2143_v46 = vld [vmem:[%s3651_s0 + $0x2d8] sm:$0xf0] }
 0x15a   :  { %v2146_v56 = vor.u32 %v2508_v45, %v2143_v46 }
 0x15b   :  { %1733 = vst [vmem:[%s3652_s2 + $0xb0] sm:$0xff] %v1607_v50  ;;  %v2134_v50 = vor.u32 %v2509_v40, %v2133_v39 }
 0x15e   :  { %v1439_v60 = vpop.f32.mrf.mxu2  ;;  %v1104_v1 = vpop.f32.mrf.mxu0 }
 0x15f   :  { %v1608_v61 = vpop.f32.mrf.mxu3  ;;  %v1440_v0 = vadd.f32 %v1439_v60, %v1271_v59  ;;  %v1273_v2 = vpop.f32.mrf.mxu1 }
 0x160   :  { %v1274_v6 = vadd.f32 %v1273_v2, %v1104_v1  ;;  %v2149_v1 = vld [vmem:[%s3651_s0 + $0x2e0] sm:$0xf]  ;;  %v2513_v2 = vld [vmem:[%s3651_s0 + $0x2ec] sm:$0xf0] }
 0x161   :  { %v1609_v5 = vadd.f32 %v1608_v61, %v1440_v0  ;;  %1143 = vmatmul.bf16.gmra.mxu0 %v2102_v62 }
 0x162   :  { %1312 = vmatmul.bf16.gmra.mxu1 %v2106_v63 }
 0x163   :  { %1734 = vst [vmem:[%s3652_s2 + $0xb8] sm:$0xff] %v1609_v5  ;;  %1481 = vmatmul.bf16.gmra.mxu2 %v2110_v3  ;;  %v2511_v3 = vld [vmem:[%s3651_s0 + $0x2e4] sm:$0xf]  ;;  %v2157_v5 = vld [vmem:[%s3651_s0 + $0x2e8] sm:$0xf] }
 0x164   :  { %1650 = vmatmul.bf16.gmra.mxu3 %v2114_v4  ;;  %v2151_v4 = vld [vmem:[%s3651_s0 + $0x2f0] sm:$0xf0] }
 0x165   :  { %v2154_v13 = vor.u32 %v2511_v3, %v2151_v4 }
 0x166   :  { %v1442_v7 = vpop.f32.mrf.mxu2  ;;  %v1106_v10 = vpop.f32.mrf.mxu0 }
 0x167   :  { %v1611_v8 = vpop.f32.mrf.mxu3  ;;  %v1443_v9 = vadd.f32 %v1442_v7, %v1274_v6  ;;  %v1275_v11 = vpop.f32.mrf.mxu1  ;;  %v2514_v6 = vld [vmem:[%s3651_s0 + $0x2f4] sm:$0xf0]  ;;  %v2512_v7 = vld [vmem:[%s3651_s0 + $0x2ec] sm:$0xf] }
 0x168   :  { %v1276_v21 = vadd.f32 %v1275_v11, %v1106_v10  ;;  %v2158_v17 = vor.u32 %v2514_v6, %v2157_v5 }
 0x169   :  { %v1612_v12 = vadd.f32 %v1611_v8, %v1443_v9  ;;  %v2159_v8 = vld [vmem:[%s3651_s0 + $0x2f8] sm:$0xf0] }
 0x16a   :  { %v2162_v18 = vor.u32 %v2512_v7, %v2159_v8 }
 0x16b   :  { %1735 = vst [vmem:[%s3652_s2 + $0xc0] sm:$0xff] %v1612_v12  ;;  %v2150_v12 = vor.u32 %v2513_v2, %v2149_v1 }
 0x16e   :  { %v1444_v22 = vpop.f32.mrf.mxu2  ;;  %v1109_v27 = vpop.f32.mrf.mxu0 }
 0x16f   :  { %v1613_v23 = vpop.f32.mrf.mxu3  ;;  %v1445_v26 = vadd.f32 %v1444_v22, %v1276_v21  ;;  %v1278_v28 = vpop.f32.mrf.mxu1 }
 0x170   :  { %v1279_v32 = vadd.f32 %v1278_v28, %v1109_v27  ;;  %v2165_v27 = vld [vmem:[%s3651_s0 + $0x300] sm:$0xf]  ;;  %v2517_v28 = vld [vmem:[%s3651_s0 + $0x30c] sm:$0xf0] }
 0x171   :  { %v1614_v31 = vadd.f32 %v1613_v23, %v1445_v26  ;;  %1148 = vmatmul.bf16.gmra.mxu0 %v2118_v24 }
 0x172   :  { %1317 = vmatmul.bf16.gmra.mxu1 %v2122_v25 }
 0x173   :  { %1736 = vst [vmem:[%s3652_s2 + $0xc8] sm:$0xff] %v1614_v31  ;;  %1486 = vmatmul.bf16.gmra.mxu2 %v2126_v29  ;;  %v2515_v29 = vld [vmem:[%s3651_s0 + $0x304] sm:$0xf]  ;;  %v2173_v31 = vld [vmem:[%s3651_s0 + $0x308] sm:$0xf] }
 0x174   :  { %1655 = vmatmul.bf16.gmra.mxu3 %v2130_v30  ;;  %v2167_v30 = vld [vmem:[%s3651_s0 + $0x310] sm:$0xf0] }
 0x175   :  { %v2170_v39 = vor.u32 %v2515_v29, %v2167_v30 }
 0x176   :  { %v1447_v33 = vpop.f32.mrf.mxu2  ;;  %v1111_v36 = vpop.f32.mrf.mxu0 }
 0x177   :  { %v1616_v34 = vpop.f32.mrf.mxu3  ;;  %v1448_v35 = vadd.f32 %v1447_v33, %v1279_v32  ;;  %v1280_v37 = vpop.f32.mrf.mxu1  ;;  %v2518_v32 = vld [vmem:[%s3651_s0 + $0x314] sm:$0xf0]  ;;  %v2516_v33 = vld [vmem:[%s3651_s0 + $0x30c] sm:$0xf] }
 0x178   :  { %v1281_v47 = vadd.f32 %v1280_v37, %v1111_v36  ;;  %v2174_v43 = vor.u32 %v2518_v32, %v2173_v31 }
 0x179   :  { %v1617_v38 = vadd.f32 %v1616_v34, %v1448_v35  ;;  %v2175_v34 = vld [vmem:[%s3651_s0 + $0x318] sm:$0xf0] }
 0x17a   :  { %v2178_v44 = vor.u32 %v2516_v33, %v2175_v34 }
 0x17b   :  { %1737 = vst [vmem:[%s3652_s2 + $0xd0] sm:$0xff] %v1617_v38  ;;  %v2166_v38 = vor.u32 %v2517_v28, %v2165_v27 }
 0x17e   :  { %v1449_v48 = vpop.f32.mrf.mxu2  ;;  %v1114_v53 = vpop.f32.mrf.mxu0 }
 0x17f   :  { %v1618_v49 = vpop.f32.mrf.mxu3  ;;  %v1450_v52 = vadd.f32 %v1449_v48, %v1281_v47  ;;  %v1283_v54 = vpop.f32.mrf.mxu1 }
 0x180   :  { %v1284_v58 = vadd.f32 %v1283_v54, %v1114_v53  ;;  %v2181_v53 = vld [vmem:[%s3651_s0 + $0x320] sm:$0xf]  ;;  %v2521_v54 = vld [vmem:[%s3651_s0 + $0x32c] sm:$0xf0] }
 0x181   :  { %v1619_v57 = vadd.f32 %v1618_v49, %v1450_v52  ;;  %1153 = vmatmul.bf16.gmra.mxu0 %v2134_v50 }
 0x182   :  { %1322 = vmatmul.bf16.gmra.mxu1 %v2138_v51 }
 0x183   :  { %1738 = vst [vmem:[%s3652_s2 + $0xd8] sm:$0xff] %v1619_v57  ;;  %1491 = vmatmul.bf16.gmra.mxu2 %v2142_v55  ;;  %v2519_v55 = vld [vmem:[%s3651_s0 + $0x324] sm:$0xf]  ;;  %v2189_v57 = vld [vmem:[%s3651_s0 + $0x328] sm:$0xf] }
 0x184   :  { %1660 = vmatmul.bf16.gmra.mxu3 %v2146_v56  ;;  %v2183_v56 = vld [vmem:[%s3651_s0 + $0x330] sm:$0xf0] }
 0x185   :  { %v2186_v1 = vor.u32 %v2519_v55, %v2183_v56 }
 0x186   :  { %v1452_v59 = vpop.f32.mrf.mxu2  ;;  %v1116_v62 = vpop.f32.mrf.mxu0 }
 0x187   :  { %v1621_v60 = vpop.f32.mrf.mxu3  ;;  %v1453_v61 = vadd.f32 %v1452_v59, %v1284_v58  ;;  %v1285_v63 = vpop.f32.mrf.mxu1  ;;  %v2522_v58 = vld [vmem:[%s3651_s0 + $0x334] sm:$0xf0]  ;;  %v2520_v59 = vld [vmem:[%s3651_s0 + $0x32c] sm:$0xf] }
 0x188   :  { %v1286_v9 = vadd.f32 %v1285_v63, %v1116_v62  ;;  %v2190_v5 = vor.u32 %v2522_v58, %v2189_v57 }
 0x189   :  { %v1622_v0 = vadd.f32 %v1621_v60, %v1453_v61  ;;  %v2191_v60 = vld [vmem:[%s3651_s0 + $0x338] sm:$0xf0] }
 0x18a   :  { %v2194_v6 = vor.u32 %v2520_v59, %v2191_v60 }
 0x18b   :  { %1739 = vst [vmem:[%s3652_s2 + $0xe0] sm:$0xff] %v1622_v0  ;;  %v2182_v0 = vor.u32 %v2521_v54, %v2181_v53 }
 0x18e   :  { %v1454_v10 = vpop.f32.mrf.mxu2  ;;  %v1119_v15 = vpop.f32.mrf.mxu0 }
 0x18f   :  { %v1623_v11 = vpop.f32.mrf.mxu3  ;;  %v1455_v14 = vadd.f32 %v1454_v10, %v1286_v9  ;;  %v1288_v16 = vpop.f32.mrf.mxu1 }
 0x190   :  { %v1289_v20 = vadd.f32 %v1288_v16, %v1119_v15  ;;  %v2197_v15 = vld [vmem:[%s3651_s0 + $0x340] sm:$0xf]  ;;  %v2525_v16 = vld [vmem:[%s3651_s0 + $0x34c] sm:$0xf0] }
 0x191   :  { %v1624_v19 = vadd.f32 %v1623_v11, %v1455_v14  ;;  %1158 = vmatmul.bf16.gmra.mxu0 %v2150_v12 }
 0x192   :  { %1327 = vmatmul.bf16.gmra.mxu1 %v2154_v13 }
 0x193   :  { %1740 = vst [vmem:[%s3652_s2 + $0xe8] sm:$0xff] %v1624_v19  ;;  %1496 = vmatmul.bf16.gmra.mxu2 %v2158_v17  ;;  %v2523_v17 = vld [vmem:[%s3651_s0 + $0x344] sm:$0xf]  ;;  %v2205_v19 = vld [vmem:[%s3651_s0 + $0x348] sm:$0xf] }
 0x194   :  { %1665 = vmatmul.bf16.gmra.mxu3 %v2162_v18  ;;  %v2199_v18 = vld [vmem:[%s3651_s0 + $0x350] sm:$0xf0] }
 0x195   :  { %v2202_v27 = vor.u32 %v2523_v17, %v2199_v18 }
 0x196   :  { %v1457_v21 = vpop.f32.mrf.mxu2  ;;  %v1121_v24 = vpop.f32.mrf.mxu0 }
 0x197   :  { %v1626_v22 = vpop.f32.mrf.mxu3  ;;  %v1458_v23 = vadd.f32 %v1457_v21, %v1289_v20  ;;  %v1290_v25 = vpop.f32.mrf.mxu1  ;;  %v2526_v20 = vld [vmem:[%s3651_s0 + $0x354] sm:$0xf0]  ;;  %v2524_v21 = vld [vmem:[%s3651_s0 + $0x34c] sm:$0xf] }
 0x198   :  { %v1291_v35 = vadd.f32 %v1290_v25, %v1121_v24  ;;  %v2206_v31 = vor.u32 %v2526_v20, %v2205_v19 }
 0x199   :  { %v1627_v26 = vadd.f32 %v1626_v22, %v1458_v23  ;;  %v2207_v22 = vld [vmem:[%s3651_s0 + $0x358] sm:$0xf0] }
 0x19a   :  { %v2210_v32 = vor.u32 %v2524_v21, %v2207_v22 }
 0x19b   :  { %1741 = vst [vmem:[%s3652_s2 + $0xf0] sm:$0xff] %v1627_v26  ;;  %v2198_v26 = vor.u32 %v2525_v16, %v2197_v15 }
 0x19e   :  { %v1459_v36 = vpop.f32.mrf.mxu2  ;;  %v1124_v41 = vpop.f32.mrf.mxu0 }
 0x19f   :  { %v1628_v37 = vpop.f32.mrf.mxu3  ;;  %v1460_v40 = vadd.f32 %v1459_v36, %v1291_v35  ;;  %v1293_v42 = vpop.f32.mrf.mxu1 }
 0x1a0   :  { %v1294_v46 = vadd.f32 %v1293_v42, %v1124_v41  ;;  %v2213_v41 = vld [vmem:[%s3651_s0 + $0x360] sm:$0xf]  ;;  %v2529_v42 = vld [vmem:[%s3651_s0 + $0x36c] sm:$0xf0] }
 0x1a1   :  { %v1629_v45 = vadd.f32 %v1628_v37, %v1460_v40  ;;  %1163 = vmatmul.bf16.gmra.mxu0 %v2166_v38 }
 0x1a2   :  { %1332 = vmatmul.bf16.gmra.mxu1 %v2170_v39 }
 0x1a3   :  { %1742 = vst [vmem:[%s3652_s2 + $0xf8] sm:$0xff] %v1629_v45  ;;  %1501 = vmatmul.bf16.gmra.mxu2 %v2174_v43  ;;  %v2527_v43 = vld [vmem:[%s3651_s0 + $0x364] sm:$0xf]  ;;  %v2221_v45 = vld [vmem:[%s3651_s0 + $0x368] sm:$0xf] }
 0x1a4   :  { %1670 = vmatmul.bf16.gmra.mxu3 %v2178_v44  ;;  %v2215_v44 = vld [vmem:[%s3651_s0 + $0x370] sm:$0xf0] }
 0x1a5   :  { %v2218_v53 = vor.u32 %v2527_v43, %v2215_v44 }
 0x1a6   :  { %v1462_v47 = vpop.f32.mrf.mxu2  ;;  %v1126_v50 = vpop.f32.mrf.mxu0 }
 0x1a7   :  { %v1631_v48 = vpop.f32.mrf.mxu3  ;;  %v1463_v49 = vadd.f32 %v1462_v47, %v1294_v46  ;;  %v1295_v51 = vpop.f32.mrf.mxu1  ;;  %v2530_v46 = vld [vmem:[%s3651_s0 + $0x374] sm:$0xf0]  ;;  %v2528_v47 = vld [vmem:[%s3651_s0 + $0x36c] sm:$0xf] }
 0x1a8   :  { %v1296_v61 = vadd.f32 %v1295_v51, %v1126_v50  ;;  %v2222_v57 = vor.u32 %v2530_v46, %v2221_v45 }
 0x1a9   :  { %v1632_v52 = vadd.f32 %v1631_v48, %v1463_v49  ;;  %v2223_v48 = vld [vmem:[%s3651_s0 + $0x378] sm:$0xf0] }
 0x1aa   :  { %v2226_v58 = vor.u32 %v2528_v47, %v2223_v48 }
 0x1ab   :  { %1743 = vst [vmem:[%s3652_s2 + $0x100] sm:$0xff] %v1632_v52  ;;  %v2214_v52 = vor.u32 %v2529_v42, %v2213_v41 }
 0x1ae   :  { %v1464_v62 = vpop.f32.mrf.mxu2  ;;  %v1129_v3 = vpop.f32.mrf.mxu0 }
 0x1af   :  { %v1633_v63 = vpop.f32.mrf.mxu3  ;;  %v1465_v2 = vadd.f32 %v1464_v62, %v1296_v61  ;;  %v1298_v4 = vpop.f32.mrf.mxu1 }
 0x1b0   :  { %v1299_v8 = vadd.f32 %v1298_v4, %v1129_v3  ;;  %v2229_v3 = vld [vmem:[%s3651_s0 + $0x380] sm:$0xf]  ;;  %v2533_v4 = vld [vmem:[%s3651_s0 + $0x38c] sm:$0xf0] }
 0x1b1   :  { %v1634_v7 = vadd.f32 %v1633_v63, %v1465_v2  ;;  %1168 = vmatmul.bf16.gmra.mxu0 %v2182_v0 }
 0x1b2   :  { %1337 = vmatmul.bf16.gmra.mxu1 %v2186_v1 }
 0x1b3   :  { %1744 = vst [vmem:[%s3652_s2 + $0x108] sm:$0xff] %v1634_v7  ;;  %1506 = vmatmul.bf16.gmra.mxu2 %v2190_v5  ;;  %v2531_v5 = vld [vmem:[%s3651_s0 + $0x384] sm:$0xf]  ;;  %v2237_v7 = vld [vmem:[%s3651_s0 + $0x388] sm:$0xf] }
 0x1b4   :  { %1675 = vmatmul.bf16.gmra.mxu3 %v2194_v6  ;;  %v2231_v6 = vld [vmem:[%s3651_s0 + $0x390] sm:$0xf0] }
 0x1b5   :  { %v2234_v15 = vor.u32 %v2531_v5, %v2231_v6 }
 0x1b6   :  { %v1467_v9 = vpop.f32.mrf.mxu2  ;;  %v1131_v12 = vpop.f32.mrf.mxu0 }
 0x1b7   :  { %v1636_v10 = vpop.f32.mrf.mxu3  ;;  %v1468_v11 = vadd.f32 %v1467_v9, %v1299_v8  ;;  %v1300_v13 = vpop.f32.mrf.mxu1  ;;  %v2534_v8 = vld [vmem:[%s3651_s0 + $0x394] sm:$0xf0]  ;;  %v2532_v9 = vld [vmem:[%s3651_s0 + $0x38c] sm:$0xf] }
 0x1b8   :  { %v1301_v23 = vadd.f32 %v1300_v13, %v1131_v12  ;;  %v2238_v19 = vor.u32 %v2534_v8, %v2237_v7 }
 0x1b9   :  { %v1637_v14 = vadd.f32 %v1636_v10, %v1468_v11  ;;  %v2239_v10 = vld [vmem:[%s3651_s0 + $0x398] sm:$0xf0] }
 0x1ba   :  { %v2242_v20 = vor.u32 %v2532_v9, %v2239_v10 }
 0x1bb   :  { %1745 = vst [vmem:[%s3652_s2 + $0x110] sm:$0xff] %v1637_v14  ;;  %v2230_v14 = vor.u32 %v2533_v4, %v2229_v3 }
 0x1be   :  { %v1469_v24 = vpop.f32.mrf.mxu2  ;;  %v1134_v29 = vpop.f32.mrf.mxu0 }
 0x1bf   :  { %v1638_v25 = vpop.f32.mrf.mxu3  ;;  %v1470_v28 = vadd.f32 %v1469_v24, %v1301_v23  ;;  %v1303_v30 = vpop.f32.mrf.mxu1 }
 0x1c0   :  { %v1304_v34 = vadd.f32 %v1303_v30, %v1134_v29  ;;  %v2245_v29 = vld [vmem:[%s3651_s0 + $0x3a0] sm:$0xf]  ;;  %v2537_v30 = vld [vmem:[%s3651_s0 + $0x3ac] sm:$0xf0] }
 0x1c1   :  { %v1639_v33 = vadd.f32 %v1638_v25, %v1470_v28  ;;  %1173 = vmatmul.bf16.gmra.mxu0 %v2198_v26 }
 0x1c2   :  { %1342 = vmatmul.bf16.gmra.mxu1 %v2202_v27 }
 0x1c3   :  { %1746 = vst [vmem:[%s3652_s2 + $0x118] sm:$0xff] %v1639_v33  ;;  %1511 = vmatmul.bf16.gmra.mxu2 %v2206_v31  ;;  %v2535_v31 = vld [vmem:[%s3651_s0 + $0x3a4] sm:$0xf]  ;;  %v2253_v33 = vld [vmem:[%s3651_s0 + $0x3a8] sm:$0xf] }
 0x1c4   :  { %1680 = vmatmul.bf16.gmra.mxu3 %v2210_v32  ;;  %v2247_v32 = vld [vmem:[%s3651_s0 + $0x3b0] sm:$0xf0] }
 0x1c5   :  { %v2250_v41 = vor.u32 %v2535_v31, %v2247_v32 }
 0x1c6   :  { %v1472_v35 = vpop.f32.mrf.mxu2  ;;  %v1136_v38 = vpop.f32.mrf.mxu0 }
 0x1c7   :  { %v1641_v36 = vpop.f32.mrf.mxu3  ;;  %v1473_v37 = vadd.f32 %v1472_v35, %v1304_v34  ;;  %v1305_v39 = vpop.f32.mrf.mxu1  ;;  %v2538_v34 = vld [vmem:[%s3651_s0 + $0x3b4] sm:$0xf0]  ;;  %v2536_v35 = vld [vmem:[%s3651_s0 + $0x3ac] sm:$0xf] }
 0x1c8   :  { %v1306_v49 = vadd.f32 %v1305_v39, %v1136_v38  ;;  %v2254_v45 = vor.u32 %v2538_v34, %v2253_v33 }
 0x1c9   :  { %v1642_v40 = vadd.f32 %v1641_v36, %v1473_v37  ;;  %v2255_v36 = vld [vmem:[%s3651_s0 + $0x3b8] sm:$0xf0] }
 0x1ca   :  { %v2258_v46 = vor.u32 %v2536_v35, %v2255_v36 }
 0x1cb   :  { %1747 = vst [vmem:[%s3652_s2 + $0x120] sm:$0xff] %v1642_v40  ;;  %v2246_v40 = vor.u32 %v2537_v30, %v2245_v29 }
 0x1ce   :  { %v1474_v50 = vpop.f32.mrf.mxu2  ;;  %v1139_v55 = vpop.f32.mrf.mxu0 }
 0x1cf   :  { %v1643_v51 = vpop.f32.mrf.mxu3  ;;  %v1475_v54 = vadd.f32 %v1474_v50, %v1306_v49  ;;  %v1308_v56 = vpop.f32.mrf.mxu1 }
 0x1d0   :  { %v1309_v60 = vadd.f32 %v1308_v56, %v1139_v55  ;;  %v2261_v55 = vld [vmem:[%s3651_s0 + $0x3c0] sm:$0xf]  ;;  %v2541_v56 = vld [vmem:[%s3651_s0 + $0x3cc] sm:$0xf0] }
 0x1d1   :  { %v1644_v59 = vadd.f32 %v1643_v51, %v1475_v54  ;;  %1178 = vmatmul.bf16.gmra.mxu0 %v2214_v52 }
 0x1d2   :  { %1347 = vmatmul.bf16.gmra.mxu1 %v2218_v53 }
 0x1d3   :  { %1748 = vst [vmem:[%s3652_s2 + $0x128] sm:$0xff] %v1644_v59  ;;  %1516 = vmatmul.bf16.gmra.mxu2 %v2222_v57  ;;  %v2539_v57 = vld [vmem:[%s3651_s0 + $0x3c4] sm:$0xf]  ;;  %v2269_v59 = vld [vmem:[%s3651_s0 + $0x3c8] sm:$0xf] }
 0x1d4   :  { %1685 = vmatmul.bf16.gmra.mxu3 %v2226_v58  ;;  %v2263_v58 = vld [vmem:[%s3651_s0 + $0x3d0] sm:$0xf0] }
 0x1d5   :  { %v2266_v3 = vor.u32 %v2539_v57, %v2263_v58 }
 0x1d6   :  { %v1477_v61 = vpop.f32.mrf.mxu2  ;;  %v1141_v0 = vpop.f32.mrf.mxu0 }
 0x1d7   :  { %v1646_v62 = vpop.f32.mrf.mxu3  ;;  %v1478_v63 = vadd.f32 %v1477_v61, %v1309_v60  ;;  %v1310_v1 = vpop.f32.mrf.mxu1  ;;  %v2542_v60 = vld [vmem:[%s3651_s0 + $0x3d4] sm:$0xf0]  ;;  %v2540_v61 = vld [vmem:[%s3651_s0 + $0x3cc] sm:$0xf] }
 0x1d8   :  { %v1311_v11 = vadd.f32 %v1310_v1, %v1141_v0  ;;  %v2270_v7 = vor.u32 %v2542_v60, %v2269_v59 }
 0x1d9   :  { %v1647_v2 = vadd.f32 %v1646_v62, %v1478_v63  ;;  %v2271_v62 = vld [vmem:[%s3651_s0 + $0x3d8] sm:$0xf0] }
 0x1da   :  { %v2274_v8 = vor.u32 %v2540_v61, %v2271_v62 }
 0x1db   :  { %1749 = vst [vmem:[%s3652_s2 + $0x130] sm:$0xff] %v1647_v2  ;;  %v2262_v2 = vor.u32 %v2541_v56, %v2261_v55 }
 0x1de   :  { %v1479_v12 = vpop.f32.mrf.mxu2  ;;  %v1144_v17 = vpop.f32.mrf.mxu0 }
 0x1df   :  { %v1648_v13 = vpop.f32.mrf.mxu3  ;;  %v1480_v16 = vadd.f32 %v1479_v12, %v1311_v11  ;;  %v1313_v18 = vpop.f32.mrf.mxu1 }
 0x1e0   :  { %v1314_v22 = vadd.f32 %v1313_v18, %v1144_v17  ;;  %v2277_v17 = vld [vmem:[%s3651_s0 + $0x3e0] sm:$0xf]  ;;  %v2545_v18 = vld [vmem:[%s3651_s0 + $0x3ec] sm:$0xf0] }
 0x1e1   :  { %v1649_v21 = vadd.f32 %v1648_v13, %v1480_v16  ;;  %1183 = vmatmul.bf16.gmra.mxu0 %v2230_v14 }
 0x1e2   :  { %1352 = vmatmul.bf16.gmra.mxu1 %v2234_v15 }
 0x1e3   :  { %1750 = vst [vmem:[%s3652_s2 + $0x138] sm:$0xff] %v1649_v21  ;;  %1521 = vmatmul.bf16.gmra.mxu2 %v2238_v19  ;;  %v2543_v19 = vld [vmem:[%s3651_s0 + $0x3e4] sm:$0xf]  ;;  %v2285_v21 = vld [vmem:[%s3651_s0 + $0x3e8] sm:$0xf] }
 0x1e4   :  { %1690 = vmatmul.bf16.gmra.mxu3 %v2242_v20  ;;  %v2279_v20 = vld [vmem:[%s3651_s0 + $0x3f0] sm:$0xf0] }
 0x1e5   :  { %v2282_v29 = vor.u32 %v2543_v19, %v2279_v20 }
 0x1e6   :  { %v1482_v23 = vpop.f32.mrf.mxu2  ;;  %v1146_v26 = vpop.f32.mrf.mxu0 }
 0x1e7   :  { %v1651_v24 = vpop.f32.mrf.mxu3  ;;  %v1483_v25 = vadd.f32 %v1482_v23, %v1314_v22  ;;  %v1315_v27 = vpop.f32.mrf.mxu1  ;;  %v2546_v22 = vld [vmem:[%s3651_s0 + $0x3f4] sm:$0xf0]  ;;  %v2544_v23 = vld [vmem:[%s3651_s0 + $0x3ec] sm:$0xf] }
 0x1e8   :  { %v1316_v37 = vadd.f32 %v1315_v27, %v1146_v26  ;;  %v2286_v33 = vor.u32 %v2546_v22, %v2285_v21 }
 0x1e9   :  { %v1652_v28 = vadd.f32 %v1651_v24, %v1483_v25  ;;  %v2287_v24 = vld [vmem:[%s3651_s0 + $0x3f8] sm:$0xf0] }
 0x1ea   :  { %v2290_v34 = vor.u32 %v2544_v23, %v2287_v24 }
 0x1eb   :  { %1751 = vst [vmem:[%s3652_s2 + $0x140] sm:$0xff] %v1652_v28  ;;  %v2278_v28 = vor.u32 %v2545_v18, %v2277_v17 }
 0x1ee   :  { %v1484_v38 = vpop.f32.mrf.mxu2  ;;  %v1149_v43 = vpop.f32.mrf.mxu0 }
 0x1ef   :  { %v1653_v39 = vpop.f32.mrf.mxu3  ;;  %v1485_v42 = vadd.f32 %v1484_v38, %v1316_v37  ;;  %v1318_v44 = vpop.f32.mrf.mxu1 }
 0x1f0   :  { %v1319_v48 = vadd.f32 %v1318_v44, %v1149_v43 }
 0x1f1   :  { %v1654_v47 = vadd.f32 %v1653_v39, %v1485_v42  ;;  %1188 = vmatmul.bf16.gmra.mxu0 %v2246_v40 }
 0x1f2   :  { %1357 = vmatmul.bf16.gmra.mxu1 %v2250_v41 }
 0x1f3   :  { %1752 = vst [vmem:[%s3652_s2 + $0x148] sm:$0xff] %v1654_v47  ;;  %1526 = vmatmul.bf16.gmra.mxu2 %v2254_v45 }
 0x1f4   :  { %1695 = vmatmul.bf16.gmra.mxu3 %v2258_v46 }
 0x1f6   :  { %v1487_v49 = vpop.f32.mrf.mxu2  ;;  %v1151_v52 = vpop.f32.mrf.mxu0 }
 0x1f7   :  { %v1656_v50 = vpop.f32.mrf.mxu3  ;;  %v1488_v51 = vadd.f32 %v1487_v49, %v1319_v48  ;;  %v1320_v53 = vpop.f32.mrf.mxu1 }
 0x1f8   :  { %v1321_v63 = vadd.f32 %v1320_v53, %v1151_v52 }
 0x1f9   :  { %v1657_v54 = vadd.f32 %v1656_v50, %v1488_v51 }
 0x1fb   :  { %1753 = vst [vmem:[%s3652_s2 + $0x150] sm:$0xff] %v1657_v54 }
 0x1fe   :  { %v1489_v0 = vpop.f32.mrf.mxu2  ;;  %v1154_v5 = vpop.f32.mrf.mxu0 }
 0x1ff   :  { %v1658_v1 = vpop.f32.mrf.mxu3  ;;  %v1490_v4 = vadd.f32 %v1489_v0, %v1321_v63  ;;  %v1323_v6 = vpop.f32.mrf.mxu1 }
 0x200   :  { %v1324_v10 = vadd.f32 %v1323_v6, %v1154_v5 }
 0x201   :  { %v1659_v9 = vadd.f32 %v1658_v1, %v1490_v4  ;;  %1193 = vmatmul.bf16.gmra.mxu0 %v2262_v2 }
 0x202   :  { %1362 = vmatmul.bf16.gmra.mxu1 %v2266_v3 }
 0x203   :  { %1754 = vst [vmem:[%s3652_s2 + $0x158] sm:$0xff] %v1659_v9  ;;  %1531 = vmatmul.bf16.gmra.mxu2 %v2270_v7 }
 0x204   :  { %1700 = vmatmul.bf16.gmra.mxu3 %v2274_v8 }
 0x206   :  { %v1492_v11 = vpop.f32.mrf.mxu2  ;;  %v1156_v14 = vpop.f32.mrf.mxu0 }
 0x207   :  { %v1661_v12 = vpop.f32.mrf.mxu3  ;;  %v1493_v13 = vadd.f32 %v1492_v11, %v1324_v10  ;;  %v1325_v15 = vpop.f32.mrf.mxu1 }
 0x208   :  { %v1326_v25 = vadd.f32 %v1325_v15, %v1156_v14 }
 0x209   :  { %v1662_v16 = vadd.f32 %v1661_v12, %v1493_v13 }
 0x20b   :  { %1755 = vst [vmem:[%s3652_s2 + $0x160] sm:$0xff] %v1662_v16 }
 0x20e   :  { %v1494_v26 = vpop.f32.mrf.mxu2  ;;  %v1159_v31 = vpop.f32.mrf.mxu0 }
 0x20f   :  { %v1663_v27 = vpop.f32.mrf.mxu3  ;;  %v1495_v30 = vadd.f32 %v1494_v26, %v1326_v25  ;;  %v1328_v32 = vpop.f32.mrf.mxu1 }
 0x210   :  { %v1329_v36 = vadd.f32 %v1328_v32, %v1159_v31 }
 0x211   :  { %v1664_v35 = vadd.f32 %v1663_v27, %v1495_v30  ;;  %1198 = vmatmul.bf16.gmra.mxu0 %v2278_v28 }
 0x212   :  { %1367 = vmatmul.bf16.gmra.mxu1 %v2282_v29 }
 0x213   :  { %1756 = vst [vmem:[%s3652_s2 + $0x168] sm:$0xff] %v1664_v35  ;;  %1536 = vmatmul.bf16.gmra.mxu2 %v2286_v33 }
 0x214   :  { %1705 = vmatmul.bf16.gmra.mxu3 %v2290_v34 }
 0x216   :  { %v1497_v37 = vpop.f32.mrf.mxu2  ;;  %v1161_v40 = vpop.f32.mrf.mxu0 }
 0x217   :  { %v1666_v38 = vpop.f32.mrf.mxu3  ;;  %v1498_v39 = vadd.f32 %v1497_v37, %v1329_v36  ;;  %v1330_v41 = vpop.f32.mrf.mxu1 }
 0x218   :  { %v1331_v43 = vadd.f32 %v1330_v41, %v1161_v40 }
 0x219   :  { %v1667_v42 = vadd.f32 %v1666_v38, %v1498_v39 }
 0x21b   :  { %1757 = vst [vmem:[%s3652_s2 + $0x170] sm:$0xff] %v1667_v42 }
 0x21e   :  { %v1499_v44 = vpop.f32.mrf.mxu2  ;;  %v1164_v47 = vpop.f32.mrf.mxu0 }
 0x21f   :  { %v1668_v45 = vpop.f32.mrf.mxu3  ;;  %v1500_v46 = vadd.f32 %v1499_v44, %v1331_v43  ;;  %v1333_v48 = vpop.f32.mrf.mxu1 }
 0x220   :  { %v1334_v50 = vadd.f32 %v1333_v48, %v1164_v47 }
 0x221   :  { %v1669_v49 = vadd.f32 %v1668_v45, %v1500_v46 }
 0x223   :  { %1758 = vst [vmem:[%s3652_s2 + $0x178] sm:$0xff] %v1669_v49 }
 0x226   :  { %v1502_v51 = vpop.f32.mrf.mxu2  ;;  %v1166_v54 = vpop.f32.mrf.mxu0 }
 0x227   :  { %v1671_v52 = vpop.f32.mrf.mxu3  ;;  %v1503_v53 = vadd.f32 %v1502_v51, %v1334_v50  ;;  %v1335_v55 = vpop.f32.mrf.mxu1 }
 0x228   :  { %v1336_v57 = vadd.f32 %v1335_v55, %v1166_v54 }
 0x229   :  { %v1672_v56 = vadd.f32 %v1671_v52, %v1503_v53 }
 0x22b   :  { %1759 = vst [vmem:[%s3652_s2 + $0x180] sm:$0xff] %v1672_v56 }
 0x22e   :  { %v1504_v58 = vpop.f32.mrf.mxu2  ;;  %v1169_v61 = vpop.f32.mrf.mxu0 }
 0x22f   :  { %v1673_v59 = vpop.f32.mrf.mxu3  ;;  %v1505_v60 = vadd.f32 %v1504_v58, %v1336_v57  ;;  %v1338_v62 = vpop.f32.mrf.mxu1 }
 0x230   :  { %v1339_v0 = vadd.f32 %v1338_v62, %v1169_v61 }
 0x231   :  { %v1674_v63 = vadd.f32 %v1673_v59, %v1505_v60 }
 0x233   :  { %1760 = vst [vmem:[%s3652_s2 + $0x188] sm:$0xff] %v1674_v63 }
 0x236   :  { %v1507_v1 = vpop.f32.mrf.mxu2  ;;  %v1171_v4 = vpop.f32.mrf.mxu0 }
 0x237   :  { %v1676_v2 = vpop.f32.mrf.mxu3  ;;  %v1508_v3 = vadd.f32 %v1507_v1, %v1339_v0  ;;  %v1340_v5 = vpop.f32.mrf.mxu1 }
 0x238   :  { %v1341_v7 = vadd.f32 %v1340_v5, %v1171_v4 }
 0x239   :  { %v1677_v6 = vadd.f32 %v1676_v2, %v1508_v3 }
 0x23b   :  { %1761 = vst [vmem:[%s3652_s2 + $0x190] sm:$0xff] %v1677_v6 }
 0x23e   :  { %v1509_v8 = vpop.f32.mrf.mxu2  ;;  %v1174_v11 = vpop.f32.mrf.mxu0 }
 0x23f   :  { %v1678_v9 = vpop.f32.mrf.mxu3  ;;  %v1510_v10 = vadd.f32 %v1509_v8, %v1341_v7  ;;  %v1343_v12 = vpop.f32.mrf.mxu1 }
 0x240   :  { %v1344_v14 = vadd.f32 %v1343_v12, %v1174_v11 }
 0x241   :  { %v1679_v13 = vadd.f32 %v1678_v9, %v1510_v10 }
 0x243   :  { %1762 = vst [vmem:[%s3652_s2 + $0x198] sm:$0xff] %v1679_v13 }
 0x246   :  { %v1512_v15 = vpop.f32.mrf.mxu2  ;;  %v1176_v18 = vpop.f32.mrf.mxu0 }
 0x247   :  { %v1681_v16 = vpop.f32.mrf.mxu3  ;;  %v1513_v17 = vadd.f32 %v1512_v15, %v1344_v14  ;;  %v1345_v19 = vpop.f32.mrf.mxu1 }
 0x248   :  { %v1346_v21 = vadd.f32 %v1345_v19, %v1176_v18 }
 0x249   :  { %v1682_v20 = vadd.f32 %v1681_v16, %v1513_v17 }
 0x24b   :  { %1763 = vst [vmem:[%s3652_s2 + $0x1a0] sm:$0xff] %v1682_v20 }
 0x24e   :  { %v1514_v22 = vpop.f32.mrf.mxu2  ;;  %v1179_v25 = vpop.f32.mrf.mxu0 }
 0x24f   :  { %v1683_v23 = vpop.f32.mrf.mxu3  ;;  %v1515_v24 = vadd.f32 %v1514_v22, %v1346_v21  ;;  %v1348_v26 = vpop.f32.mrf.mxu1 }
 0x250   :  { %v1349_v28 = vadd.f32 %v1348_v26, %v1179_v25 }
 0x251   :  { %v1684_v27 = vadd.f32 %v1683_v23, %v1515_v24 }
 0x253   :  { %1764 = vst [vmem:[%s3652_s2 + $0x1a8] sm:$0xff] %v1684_v27 }
 0x256   :  { %v1517_v29 = vpop.f32.mrf.mxu2  ;;  %v1181_v32 = vpop.f32.mrf.mxu0 }
 0x257   :  { %v1686_v30 = vpop.f32.mrf.mxu3  ;;  %v1518_v31 = vadd.f32 %v1517_v29, %v1349_v28  ;;  %v1350_v33 = vpop.f32.mrf.mxu1 }
 0x258   :  { %v1351_v35 = vadd.f32 %v1350_v33, %v1181_v32 }
 0x259   :  { %v1687_v34 = vadd.f32 %v1686_v30, %v1518_v31 }
 0x25b   :  { %1765 = vst [vmem:[%s3652_s2 + $0x1b0] sm:$0xff] %v1687_v34 }
 0x25e   :  { %v1519_v36 = vpop.f32.mrf.mxu2  ;;  %v1184_v39 = vpop.f32.mrf.mxu0 }
 0x25f   :  { %v1688_v37 = vpop.f32.mrf.mxu3  ;;  %v1520_v38 = vadd.f32 %v1519_v36, %v1351_v35  ;;  %v1353_v40 = vpop.f32.mrf.mxu1 }
 0x260   :  { %v1354_v42 = vadd.f32 %v1353_v40, %v1184_v39 }
 0x261   :  { %v1689_v41 = vadd.f32 %v1688_v37, %v1520_v38 }
 0x263   :  { %1766 = vst [vmem:[%s3652_s2 + $0x1b8] sm:$0xff] %v1689_v41 }
 0x266   :  { %v1522_v43 = vpop.f32.mrf.mxu2  ;;  %v1186_v46 = vpop.f32.mrf.mxu0 }
 0x267   :  { %v1691_v44 = vpop.f32.mrf.mxu3  ;;  %v1523_v45 = vadd.f32 %v1522_v43, %v1354_v42  ;;  %v1355_v47 = vpop.f32.mrf.mxu1 }
 0x268   :  { %v1356_v49 = vadd.f32 %v1355_v47, %v1186_v46 }
 0x269   :  { %v1692_v48 = vadd.f32 %v1691_v44, %v1523_v45 }
 0x26b   :  { %1767 = vst [vmem:[%s3652_s2 + $0x1c0] sm:$0xff] %v1692_v48 }
 0x26e   :  { %v1524_v50 = vpop.f32.mrf.mxu2  ;;  %v1189_v53 = vpop.f32.mrf.mxu0 }
 0x26f   :  { %v1693_v51 = vpop.f32.mrf.mxu3  ;;  %v1525_v52 = vadd.f32 %v1524_v50, %v1356_v49  ;;  %v1358_v54 = vpop.f32.mrf.mxu1 }
 0x270   :  { %v1359_v56 = vadd.f32 %v1358_v54, %v1189_v53 }
 0x271   :  { %v1694_v55 = vadd.f32 %v1693_v51, %v1525_v52 }
 0x273   :  { %1768 = vst [vmem:[%s3652_s2 + $0x1c8] sm:$0xff] %v1694_v55 }
 0x276   :  { %v1527_v57 = vpop.f32.mrf.mxu2  ;;  %v1191_v60 = vpop.f32.mrf.mxu0 }
 0x277   :  { %v1696_v58 = vpop.f32.mrf.mxu3  ;;  %v1528_v59 = vadd.f32 %v1527_v57, %v1359_v56  ;;  %v1360_v61 = vpop.f32.mrf.mxu1 }
 0x278   :  { %v1361_v63 = vadd.f32 %v1360_v61, %v1191_v60 }
 0x279   :  { %v1697_v62 = vadd.f32 %v1696_v58, %v1528_v59 }
 0x27b   :  { %1769 = vst [vmem:[%s3652_s2 + $0x1d0] sm:$0xff] %v1697_v62 }
 0x27e   :  { %v1529_v0 = vpop.f32.mrf.mxu2  ;;  %v1194_v3 = vpop.f32.mrf.mxu0 }
 0x27f   :  { %v1698_v1 = vpop.f32.mrf.mxu3  ;;  %v1530_v2 = vadd.f32 %v1529_v0, %v1361_v63  ;;  %v1363_v4 = vpop.f32.mrf.mxu1 }
 0x280   :  { %v1364_v6 = vadd.f32 %v1363_v4, %v1194_v3 }
 0x281   :  { %v1699_v5 = vadd.f32 %v1698_v1, %v1530_v2 }
 0x283   :  { %1770 = vst [vmem:[%s3652_s2 + $0x1d8] sm:$0xff] %v1699_v5 }
 0x286   :  { %v1532_v7 = vpop.f32.mrf.mxu2  ;;  %v1196_v10 = vpop.f32.mrf.mxu0 }
 0x287   :  { %v1701_v8 = vpop.f32.mrf.mxu3  ;;  %v1533_v9 = vadd.f32 %v1532_v7, %v1364_v6  ;;  %v1365_v11 = vpop.f32.mrf.mxu1 }
 0x288   :  { %v1366_v13 = vadd.f32 %v1365_v11, %v1196_v10 }
 0x289   :  { %v1702_v12 = vadd.f32 %v1701_v8, %v1533_v9 }
 0x28b   :  { %1771 = vst [vmem:[%s3652_s2 + $0x1e0] sm:$0xff] %v1702_v12 }
 0x28e   :  { %v1534_v14 = vpop.f32.mrf.mxu2  ;;  %v1199_v17 = vpop.f32.mrf.mxu0 }
 0x28f   :  { %v1703_v15 = vpop.f32.mrf.mxu3  ;;  %v1535_v16 = vadd.f32 %v1534_v14, %v1366_v13  ;;  %v1368_v18 = vpop.f32.mrf.mxu1 }
 0x290   :  { %v1369_v20 = vadd.f32 %v1368_v18, %v1199_v17 }
 0x291   :  { %v1704_v19 = vadd.f32 %v1703_v15, %v1535_v16 }
 0x293   :  { %1772 = vst [vmem:[%s3652_s2 + $0x1e8] sm:$0xff] %v1704_v19 }
 0x296   :  { %v1537_v21 = vpop.f32.mrf.mxu2  ;;  %v1201_v25 = vpop.f32.mrf.mxu0 }
 0x297   :  { %v1706_v22 = vpop.f32.mrf.mxu3  ;;  %v1538_v23 = vadd.f32 %v1537_v21, %v1369_v20  ;;  %v1370_v26 = vpop.f32.mrf.mxu1 }
 0x298   :  { %v1371_v27 = vadd.f32 %v1370_v26, %v1201_v25 }
 0x299   :  { %v1707_v24 = vadd.f32 %v1706_v22, %v1538_v23 }
 0x29b   :  { %1773 = vst [vmem:[%s3652_s2 + $0x1f0] sm:$0xff] %v1707_v24 }
 0x29e   :  { %v1539_v28 = vpop.f32.mrf.mxu2 }
 0x29f   :  { %v1540_v29 = vadd.f32 %v1539_v28, %v1371_v27  ;;  %v1708_v30 = vpop.f32.mrf.mxu3 }
 0x2a1   :  { %v1709_v31 = vadd.f32 %v1708_v30, %v1540_v29 }
 0x2a3   :  { %1774 = vst [vmem:[%s3652_s2 + $0x1f8] sm:$0xff] %v1709_v31 }

// kernel: gcn_forward.5
= control target key start
LH: loop header
LB: loop body
LE: loop exit
PB: predicated region body
PF: predicated region fallthrough
CT: control target
= control target key end

     0   :  { %s3809_s1 = inlined_call_operand.vmem [shape: bf16[512,128], index: 1, kind: input, shape index: {}]   ;;  %s3810_s0 = inlined_call_operand.vmem [shape: bf16[512,512], index: 0, kind: input, shape index: {}]   ;;  %s3811_s2 = inlined_call_operand.vmem [shape: bf16[512,128], index: 2, kind: output, shape index: {}]  }
   0x1   :  { %v2618_v0 = vld [vmem:[%s3809_s1 + $0x38] sm:$0xff]  ;;  %v2617_v4 = vld [vmem:[%s3809_s1 + $0x30] sm:$0xff]  ;;  %v2616_v8 = vld [vmem:[%s3809_s1 + $0x28] sm:$0xff] }
   0x2   :  { %v2626_v1 = vld [vmem:[%s3809_s1 + $0x78] sm:$0xff]  ;;  %1035 = vmatpush.bf16.msra.mxu0 %v2618_v0  ;;  %v2625_v5 = vld [vmem:[%s3809_s1 + $0x70] sm:$0xff]  ;;  %v2624_v9 = vld [vmem:[%s3809_s1 + $0x68] sm:$0xff] }
   0x3   :  { %v2634_v2 = vld [vmem:[%s3809_s1 + $0xb8] sm:$0xff]  ;;  %1204 = vmatpush.bf16.msra.mxu1 %v2626_v1  ;;  %v2633_v6 = vld [vmem:[%s3809_s1 + $0xb0] sm:$0xff]  ;;  %v2632_v10 = vld [vmem:[%s3809_s1 + $0xa8] sm:$0xff] }
   0x4   :  { %v2642_v3 = vld [vmem:[%s3809_s1 + $0xf8] sm:$0xff]  ;;  %1373 = vmatpush.bf16.msra.mxu2 %v2634_v2  ;;  %v2641_v7 = vld [vmem:[%s3809_s1 + $0xf0] sm:$0xff]  ;;  %v2640_v11 = vld [vmem:[%s3809_s1 + $0xe8] sm:$0xff] }
   0x5   :  { %1542 = vmatpush.bf16.msra.mxu3 %v2642_v3  ;;  %v2615_v12 = vld [vmem:[%s3809_s1 + $0x20] sm:$0xff]  ;;  %v2614_v16 = vld [vmem:[%s3809_s1 + $0x18] sm:$0xff]  ;;  %v2613_v20 = vld [vmem:[%s3809_s1 + $0x10] sm:$0xff] }
   0x6   :  { %1036 = vmatpush.bf16.msra.mxu0 %v2617_v4  ;;  %v2623_v13 = vld [vmem:[%s3809_s1 + $0x60] sm:$0xff]  ;;  %v2622_v17 = vld [vmem:[%s3809_s1 + $0x58] sm:$0xff]  ;;  %v2621_v21 = vld [vmem:[%s3809_s1 + $0x50] sm:$0xff] }
   0x7   :  { %1205 = vmatpush.bf16.msra.mxu1 %v2625_v5  ;;  %v2631_v14 = vld [vmem:[%s3809_s1 + $0xa0] sm:$0xff]  ;;  %v2630_v18 = vld [vmem:[%s3809_s1 + $0x98] sm:$0xff]  ;;  %v2629_v22 = vld [vmem:[%s3809_s1 + $0x90] sm:$0xff] }
   0x8   :  { %1374 = vmatpush.bf16.msra.mxu2 %v2633_v6  ;;  %v2639_v15 = vld [vmem:[%s3809_s1 + $0xe0] sm:$0xff]  ;;  %v2638_v19 = vld [vmem:[%s3809_s1 + $0xd8] sm:$0xff]  ;;  %v2637_v23 = vld [vmem:[%s3809_s1 + $0xd0] sm:$0xff] }
   0x9   :  { %1543 = vmatpush.bf16.msra.mxu3 %v2641_v7  ;;  %v2612_v24 = vld [vmem:[%s3809_s1 + $0x8] sm:$0xff]  ;;  %v2611_v28 = vld [vmem:[%s3809_s1] sm:$0xff]  ;;  %v2485_v33 = vld [vmem:[%s3810_s0 + $0xc] sm:$0xf0] }
   0xa   :  { %1037 = vmatpush.bf16.msra.mxu0 %v2616_v8  ;;  %v2620_v25 = vld [vmem:[%s3809_s1 + $0x48] sm:$0xff]  ;;  %v2619_v29 = vld [vmem:[%s3809_s1 + $0x40] sm:$0xff]  ;;  %v1847_v35 = vld [vmem:[%s3810_s0 + $0x10] sm:$0xf0] }
   0xb   :  { %1206 = vmatpush.bf16.msra.mxu1 %v2624_v9  ;;  %v2628_v26 = vld [vmem:[%s3809_s1 + $0x88] sm:$0xff]  ;;  %v2627_v30 = vld [vmem:[%s3809_s1 + $0x80] sm:$0xff]  ;;  %v2486_v37 = vld [vmem:[%s3810_s0 + $0x14] sm:$0xf0] }
   0xc   :  { %1375 = vmatpush.bf16.msra.mxu2 %v2632_v10  ;;  %v2636_v27 = vld [vmem:[%s3809_s1 + $0xc8] sm:$0xff]  ;;  %v2635_v31 = vld [vmem:[%s3809_s1 + $0xc0] sm:$0xff]  ;;  %v1855_v39 = vld [vmem:[%s3810_s0 + $0x18] sm:$0xf0] }
   0xd   :  { %1544 = vmatpush.bf16.msra.mxu3 %v2640_v11  ;;  %v1845_v32 = vld [vmem:[%s3810_s0] sm:$0xf]  ;;  %v2483_v34 = vld [vmem:[%s3810_s0 + $0x4] sm:$0xf]  ;;  %v1853_v36 = vld [vmem:[%s3810_s0 + $0x8] sm:$0xf] }
   0xe   :  { %1038 = vmatpush.bf16.msra.mxu0 %v2615_v12  ;;  %v2484_v38 = vld [vmem:[%s3810_s0 + $0xc] sm:$0xf]  ;;  %v1846_v40 = vor.u32 %v2485_v33, %v1845_v32  ;;  %v1850_v41 = vor.u32 %v2483_v34, %v1847_v35  ;;  %v1854_v42 = vor.u32 %v2486_v37, %v1853_v36  ;;  %v1861_v44 = vld [vmem:[%s3810_s0 + $0x20] sm:$0xf]  ;;  %v2489_v45 = vld [vmem:[%s3810_s0 + $0x2c] sm:$0xf0] }
   0xf   :  { %1207 = vmatpush.bf16.msra.mxu1 %v2623_v13  ;;  %v1858_v43 = vor.u32 %v2484_v38, %v1855_v39  ;;  %v2487_v46 = vld [vmem:[%s3810_s0 + $0x24] sm:$0xf]  ;;  %v1863_v47 = vld [vmem:[%s3810_s0 + $0x30] sm:$0xf0]  ;;  %v1869_v48 = vld [vmem:[%s3810_s0 + $0x28] sm:$0xf]  ;;  %v1862_v52 = vor.u32 %v2489_v45, %v1861_v44 }
  0x10   :  { %1376 = vmatpush.bf16.msra.mxu2 %v2631_v14  ;;  %v2490_v49 = vld [vmem:[%s3810_s0 + $0x34] sm:$0xf0]  ;;  %v2488_v50 = vld [vmem:[%s3810_s0 + $0x2c] sm:$0xf]  ;;  %v1871_v51 = vld [vmem:[%s3810_s0 + $0x38] sm:$0xf0]  ;;  %v1866_v53 = vor.u32 %v2487_v46, %v1863_v47 }
  0x11   :  { %1545 = vmatpush.bf16.msra.mxu3 %v2639_v15  ;;  %v1870_v54 = vor.u32 %v2490_v49, %v1869_v48  ;;  %v1874_v55 = vor.u32 %v2488_v50, %v1871_v51  ;;  %v1877_v56 = vld [vmem:[%s3810_s0 + $0x40] sm:$0xf]  ;;  %v2493_v57 = vld [vmem:[%s3810_s0 + $0x4c] sm:$0xf0]  ;;  %v2491_v58 = vld [vmem:[%s3810_s0 + $0x44] sm:$0xf] }
  0x12   :  { %1039 = vmatpush.bf16.msra.mxu0 %v2614_v16  ;;  %v1879_v59 = vld [vmem:[%s3810_s0 + $0x50] sm:$0xf0]  ;;  %v1885_v60 = vld [vmem:[%s3810_s0 + $0x48] sm:$0xf]  ;;  %v2494_v61 = vld [vmem:[%s3810_s0 + $0x54] sm:$0xf0]  ;;  %v1878_v0 = vor.u32 %v2493_v57, %v1877_v56 }
  0x13   :  { %1208 = vmatpush.bf16.msra.mxu1 %v2622_v17  ;;  %v2492_v62 = vld [vmem:[%s3810_s0 + $0x4c] sm:$0xf]  ;;  %v1887_v63 = vld [vmem:[%s3810_s0 + $0x58] sm:$0xf0]  ;;  %v1882_v1 = vor.u32 %v2491_v58, %v1879_v59  ;;  %v1886_v2 = vor.u32 %v2494_v61, %v1885_v60  ;;  %v1893_v4 = vld [vmem:[%s3810_s0 + $0x60] sm:$0xf] }
  0x14   :  { %1377 = vmatpush.bf16.msra.mxu2 %v2630_v18  ;;  %v1890_v3 = vor.u32 %v2492_v62, %v1887_v63  ;;  %v2497_v5 = vld [vmem:[%s3810_s0 + $0x6c] sm:$0xf0]  ;;  %v2495_v6 = vld [vmem:[%s3810_s0 + $0x64] sm:$0xf]  ;;  %v1895_v7 = vld [vmem:[%s3810_s0 + $0x70] sm:$0xf0] }
  0x15   :  { %1546 = vmatpush.bf16.msra.mxu3 %v2638_v19  ;;  %v1901_v8 = vld [vmem:[%s3810_s0 + $0x68] sm:$0xf]  ;;  %v2498_v9 = vld [vmem:[%s3810_s0 + $0x74] sm:$0xf0]  ;;  %v2496_v10 = vld [vmem:[%s3810_s0 + $0x6c] sm:$0xf]  ;;  %v1894_v12 = vor.u32 %v2497_v5, %v1893_v4  ;;  %v1898_v13 = vor.u32 %v2495_v6, %v1895_v7 }
  0x16   :  { %1040 = vmatpush.bf16.msra.mxu0 %v2613_v20  ;;  %v1903_v11 = vld [vmem:[%s3810_s0 + $0x78] sm:$0xf0]  ;;  %v1902_v14 = vor.u32 %v2498_v9, %v1901_v8  ;;  %v1909_v16 = vld [vmem:[%s3810_s0 + $0x80] sm:$0xf]  ;;  %v2501_v17 = vld [vmem:[%s3810_s0 + $0x8c] sm:$0xf0] }
  0x17   :  { %1209 = vmatpush.bf16.msra.mxu1 %v2621_v21  ;;  %v1906_v15 = vor.u32 %v2496_v10, %v1903_v11  ;;  %v2499_v18 = vld [vmem:[%s3810_s0 + $0x84] sm:$0xf]  ;;  %v1911_v19 = vld [vmem:[%s3810_s0 + $0x90] sm:$0xf0]  ;;  %v1917_v20 = vld [vmem:[%s3810_s0 + $0x88] sm:$0xf] }
  0x18   :  { %1378 = vmatpush.bf16.msra.mxu2 %v2629_v22  ;;  %v2502_v21 = vld [vmem:[%s3810_s0 + $0x94] sm:$0xf0]  ;;  %v2500_v22 = vld [vmem:[%s3810_s0 + $0x8c] sm:$0xf]  ;;  %v1933_v32 = vld [vmem:[%s3810_s0 + $0xa8] sm:$0xf] }
  0x19   :  { %1547 = vmatpush.bf16.msra.mxu3 %v2637_v23  ;;  %v1919_v23 = vld [vmem:[%s3810_s0 + $0x98] sm:$0xf0]  ;;  %v2506_v33 = vld [vmem:[%s3810_s0 + $0xb4] sm:$0xf0]  ;;  %v2504_v34 = vld [vmem:[%s3810_s0 + $0xac] sm:$0xf] }
  0x1a   :  { %1041 = vmatpush.bf16.msra.mxu0 %v2612_v24  ;;  %v1910_v24 = vor.u32 %v2501_v17, %v1909_v16  ;;  %v1935_v35 = vld [vmem:[%s3810_s0 + $0xb8] sm:$0xf0]  ;;  %v1934_v38 = vor.u32 %v2506_v33, %v1933_v32  ;;  %v1949_v44 = vld [vmem:[%s3810_s0 + $0xc8] sm:$0xf]  ;;  %v2510_v45 = vld [vmem:[%s3810_s0 + $0xd4] sm:$0xf0] }
  0x1b   :  { %1210 = vmatpush.bf16.msra.mxu1 %v2620_v25  ;;  %v1914_v25 = vor.u32 %v2499_v18, %v1911_v19  ;;  %v1938_v39 = vor.u32 %v2504_v34, %v1935_v35  ;;  %v2508_v46 = vld [vmem:[%s3810_s0 + $0xcc] sm:$0xf]  ;;  %v1951_v47 = vld [vmem:[%s3810_s0 + $0xd8] sm:$0xf0]  ;;  %v1950_v50 = vor.u32 %v2510_v45, %v1949_v44  ;;  %v1965_v56 = vld [vmem:[%s3810_s0 + $0xe8] sm:$0xf] }
  0x1c   :  { %1379 = vmatpush.bf16.msra.mxu2 %v2628_v26  ;;  %v1918_v26 = vor.u32 %v2502_v21, %v1917_v20  ;;  %v1954_v51 = vor.u32 %v2508_v46, %v1951_v47  ;;  %v2514_v57 = vld [vmem:[%s3810_s0 + $0xf4] sm:$0xf0]  ;;  %v2512_v58 = vld [vmem:[%s3810_s0 + $0xec] sm:$0xf]  ;;  %v1967_v59 = vld [vmem:[%s3810_s0 + $0xf8] sm:$0xf0] }
  0x1d   :  { %1548 = vmatpush.bf16.msra.mxu3 %v2636_v27  ;;  %v1922_v27 = vor.u32 %v2500_v22, %v1919_v23  ;;  %v1966_v62 = vor.u32 %v2514_v57, %v1965_v56  ;;  %v1970_v63 = vor.u32 %v2512_v58, %v1967_v59  ;;  %v1981_v4 = vld [vmem:[%s3810_s0 + $0x108] sm:$0xf]  ;;  %v2518_v5 = vld [vmem:[%s3810_s0 + $0x114] sm:$0xf0]  ;;  %v2516_v6 = vld [vmem:[%s3810_s0 + $0x10c] sm:$0xf] }
  0x1e   :  { %1042 = vmatpush.bf16.msra.mxu0 %v2611_v28  ;;  %v1925_v28 = vld [vmem:[%s3810_s0 + $0xa0] sm:$0xf]  ;;  %v1983_v7 = vld [vmem:[%s3810_s0 + $0x118] sm:$0xf0]  ;;  %v2521_v20 = vld [vmem:[%s3810_s0 + $0x12c] sm:$0xf0] }
  0x1f   :  { %1211 = vmatpush.bf16.msra.mxu1 %v2619_v29  ;;  %v2505_v29 = vld [vmem:[%s3810_s0 + $0xac] sm:$0xf0]  ;;  %v1989_v19 = vld [vmem:[%s3810_s0 + $0x120] sm:$0xf]  ;;  %v2519_v21 = vld [vmem:[%s3810_s0 + $0x124] sm:$0xf] }
  0x20   :  { %1380 = vmatpush.bf16.msra.mxu2 %v2627_v30  ;;  %v2503_v30 = vld [vmem:[%s3810_s0 + $0xa4] sm:$0xf]  ;;  %v1926_v36 = vor.u32 %v2505_v29, %v1925_v28  ;;  %v1991_v22 = vld [vmem:[%s3810_s0 + $0x130] sm:$0xf0]  ;;  %v1997_v23 = vld [vmem:[%s3810_s0 + $0x128] sm:$0xf] }
  0x21   :  { %1549 = vmatpush.bf16.msra.mxu3 %v2635_v31  ;;  %1043 = vmatmul.bf16.vlgmr.msra.gmra.mxu0 %v1846_v40  ;;  %v1927_v31 = vld [vmem:[%s3810_s0 + $0xb0] sm:$0xf0]  ;;  %v1941_v40 = vld [vmem:[%s3810_s0 + $0xc0] sm:$0xf]  ;;  %v1994_v32 = vor.u32 %v2519_v21, %v1991_v22  ;;  %v2525_v47 = vld [vmem:[%s3810_s0 + $0x14c] sm:$0xf0] }
  0x22   :  { %1212 = vmatmul.bf16.vlgmr.msra.gmra.mxu1 %v1850_v41  ;;  %v1930_v37 = vor.u32 %v2503_v30, %v1927_v31  ;;  %v2509_v41 = vld [vmem:[%s3810_s0 + $0xcc] sm:$0xf0]  ;;  %v1990_v31 = vor.u32 %v2521_v20, %v1989_v19  ;;  %v2005_v46 = vld [vmem:[%s3810_s0 + $0x140] sm:$0xf] }
  0x23   :  { %1381 = vmatmul.bf16.vlgmr.msra.gmra.mxu2 %v1854_v42  ;;  %v2507_v42 = vld [vmem:[%s3810_s0 + $0xc4] sm:$0xf]  ;;  %v1942_v48 = vor.u32 %v2509_v41, %v1941_v40  ;;  %v2006_v58 = vor.u32 %v2525_v47, %v2005_v46 }
  0x24   :  { %1550 = vmatmul.bf16.vlgmr.msra.gmra.mxu3 %v1858_v43  ;;  %v1943_v43 = vld [vmem:[%s3810_s0 + $0xd0] sm:$0xf0] }
  0x25   :  { %v1946_v49 = vor.u32 %v2507_v42, %v1943_v43 }
  0x31   :  { %1048 = vmatmul.bf16.gmra.mxu0 %v1862_v52  ;;  %v1957_v52 = vld [vmem:[%s3810_s0 + $0xe0] sm:$0xf] }
  0x32   :  { %1217 = vmatmul.bf16.gmra.mxu1 %v1866_v53  ;;  %v2513_v53 = vld [vmem:[%s3810_s0 + $0xec] sm:$0xf0] }
  0x33   :  { %1386 = vmatmul.bf16.gmra.mxu2 %v1870_v54  ;;  %v2511_v54 = vld [vmem:[%s3810_s0 + $0xe4] sm:$0xf]  ;;  %v1958_v60 = vor.u32 %v2513_v53, %v1957_v52  ;;  %v2524_v52 = vld [vmem:[%s3810_s0 + $0x14c] sm:$0xf]  ;;  %v2015_v53 = vld [vmem:[%s3810_s0 + $0x158] sm:$0xf0] }
  0x34   :  { %1555 = vmatmul.bf16.gmra.mxu3 %v1874_v55  ;;  %v1959_v55 = vld [vmem:[%s3810_s0 + $0xf0] sm:$0xf0] }
  0x35   :  { %v1962_v61 = vor.u32 %v2511_v54, %v1959_v55 }
  0x41   :  { %1053 = vmatmul.bf16.gmra.mxu0 %v1878_v0  ;;  %v1973_v0 = vld [vmem:[%s3810_s0 + $0x100] sm:$0xf] }
  0x42   :  { %1222 = vmatmul.bf16.gmra.mxu1 %v1882_v1  ;;  %v2517_v1 = vld [vmem:[%s3810_s0 + $0x10c] sm:$0xf0] }
  0x43   :  { %1391 = vmatmul.bf16.gmra.mxu2 %v1886_v2  ;;  %v2515_v2 = vld [vmem:[%s3810_s0 + $0x104] sm:$0xf]  ;;  %v1974_v8 = vor.u32 %v2517_v1, %v1973_v0  ;;  %v2018_v0 = vor.u32 %v2524_v52, %v2015_v53 }
  0x44   :  { %1560 = vmatmul.bf16.gmra.mxu3 %v1890_v3  ;;  %v1975_v3 = vld [vmem:[%s3810_s0 + $0x110] sm:$0xf0] }
  0x45   :  { %v1978_v9 = vor.u32 %v2515_v2, %v1975_v3 }
  0x51   :  { %1058 = vmatmul.bf16.gmra.mxu0 %v1894_v12  ;;  %v1982_v12 = vor.u32 %v2518_v5, %v1981_v4 }
  0x52   :  { %1227 = vmatmul.bf16.gmra.mxu1 %v1898_v13  ;;  %v1986_v13 = vor.u32 %v2516_v6, %v1983_v7 }
  0x53   :  { %1396 = vmatmul.bf16.gmra.mxu2 %v1902_v14 }
  0x54   :  { %1565 = vmatmul.bf16.gmra.mxu3 %v1906_v15 }
  0x61   :  { %1063 = vmatmul.bf16.gmra.mxu0 %v1910_v24  ;;  %v2522_v24 = vld [vmem:[%s3810_s0 + $0x134] sm:$0xf0] }
  0x62   :  { %1232 = vmatmul.bf16.gmra.mxu1 %v1914_v25  ;;  %v2520_v25 = vld [vmem:[%s3810_s0 + $0x12c] sm:$0xf] }
  0x63   :  { %1401 = vmatmul.bf16.gmra.mxu2 %v1918_v26  ;;  %v1999_v26 = vld [vmem:[%s3810_s0 + $0x138] sm:$0xf0] }
  0x64   :  { %1570 = vmatmul.bf16.gmra.mxu3 %v1922_v27 }
  0x71   :  { %1068 = vmatmul.bf16.gmra.mxu0 %v1926_v36  ;;  %v1998_v36 = vor.u32 %v2522_v24, %v1997_v23 }
  0x72   :  { %1237 = vmatmul.bf16.gmra.mxu1 %v1930_v37  ;;  %v2002_v37 = vor.u32 %v2520_v25, %v1999_v26 }
  0x73   :  { %1406 = vmatmul.bf16.gmra.mxu2 %v1934_v38 }
  0x74   :  { %1575 = vmatmul.bf16.gmra.mxu3 %v1938_v39 }
  0x81   :  { %1073 = vmatmul.bf16.gmra.mxu0 %v1942_v48  ;;  %v2523_v48 = vld [vmem:[%s3810_s0 + $0x144] sm:$0xf] }
  0x82   :  { %1242 = vmatmul.bf16.gmra.mxu1 %v1946_v49  ;;  %v2007_v49 = vld [vmem:[%s3810_s0 + $0x150] sm:$0xf0] }
  0x83   :  { %1411 = vmatmul.bf16.gmra.mxu2 %v1950_v50  ;;  %v2013_v50 = vld [vmem:[%s3810_s0 + $0x148] sm:$0xf]  ;;  %v2010_v59 = vor.u32 %v2523_v48, %v2007_v49 }
  0x84   :  { %1580 = vmatmul.bf16.gmra.mxu3 %v1954_v51  ;;  %v2526_v51 = vld [vmem:[%s3810_s0 + $0x154] sm:$0xf0] }
  0x91   :  { %1078 = vmatmul.bf16.gmra.mxu0 %v1958_v60 }
  0x92   :  { %1247 = vmatmul.bf16.gmra.mxu1 %v1962_v61 }
  0x93   :  { %1416 = vmatmul.bf16.gmra.mxu2 %v1966_v62 }
  0x94   :  { %1585 = vmatmul.bf16.gmra.mxu3 %v1970_v63  ;;  %v2014_v63 = vor.u32 %v2526_v51, %v2013_v50 }
  0x9e   :  { %v1044_v10 = vpop.f32.mrf.mxu0 }
  0x9f   :  { %v1213_v11 = vpop.f32.mrf.mxu1 }
  0xa0   :  { %v1214_v18 = vadd.f32 %v1213_v11, %v1044_v10  ;;  %v2529_v10 = vld [vmem:[%s3810_s0 + $0x16c] sm:$0xf0]  ;;  %v2527_v11 = vld [vmem:[%s3810_s0 + $0x164] sm:$0xf] }
  0xa1   :  { %1083 = vmatmul.bf16.gmra.mxu0 %v1974_v8 }
  0xa2   :  { %1252 = vmatmul.bf16.gmra.mxu1 %v1978_v9  ;;  %v2021_v9 = vld [vmem:[%s3810_s0 + $0x160] sm:$0xf] }
  0xa3   :  { %1421 = vmatmul.bf16.gmra.mxu2 %v1982_v12  ;;  %v2023_v12 = vld [vmem:[%s3810_s0 + $0x170] sm:$0xf0]  ;;  %v2022_v21 = vor.u32 %v2529_v10, %v2021_v9 }
  0xa4   :  { %1590 = vmatmul.bf16.gmra.mxu3 %v1986_v13  ;;  %v2029_v13 = vld [vmem:[%s3810_s0 + $0x168] sm:$0xf]  ;;  %v2026_v22 = vor.u32 %v2527_v11, %v2023_v12 }
  0xa6   :  { %v1382_v14 = vpop.f32.mrf.mxu2  ;;  %v1046_v16 = vpop.f32.mrf.mxu0 }
  0xa7   :  { %v1551_v15 = vpop.f32.mrf.mxu3  ;;  %v1215_v17 = vpop.f32.mrf.mxu1  ;;  %v1383_v27 = vadd.f32 %v1382_v14, %v1214_v18  ;;  %v2530_v14 = vld [vmem:[%s3810_s0 + $0x174] sm:$0xf0] }
  0xa8   :  { %v1216_v28 = vadd.f32 %v1215_v17, %v1046_v16  ;;  %v2031_v16 = vld [vmem:[%s3810_s0 + $0x178] sm:$0xf0]  ;;  %v2030_v26 = vor.u32 %v2530_v14, %v2029_v13 }
  0xa9   :  { %v1552_v38 = vadd.f32 %v1551_v15, %v1383_v27  ;;  %v2528_v15 = vld [vmem:[%s3810_s0 + $0x16c] sm:$0xf] }
  0xaa   :  { %v2034_v27 = vor.u32 %v2528_v15, %v2031_v16 }
  0xae   :  { %v1384_v29 = vpop.f32.mrf.mxu2  ;;  %v1049_v34 = vpop.f32.mrf.mxu0 }
  0xaf   :  { %v1553_v30 = vpop.f32.mrf.mxu3  ;;  %v1385_v33 = vadd.f32 %v1384_v29, %v1216_v28  ;;  %v1218_v35 = vpop.f32.mrf.mxu1 }
  0xb0   :  { %v1219_v45 = vadd.f32 %v1218_v35, %v1049_v34 }
  0xb1   :  { %v1554_v39 = vadd.f32 %v1553_v30, %v1385_v33  ;;  %1088 = vmatmul.bf16.gmra.mxu0 %v1990_v31 }
  0xb2   :  { %1257 = vmatmul.bf16.gmra.mxu1 %v1994_v32 }
  0xb3   :  { %v2646_v40 = vpack.c.bf16 %v1554_v39, %v1552_v38  ;;  %1426 = vmatmul.bf16.gmra.mxu2 %v1998_v36  ;;  %v2037_v36 = vld [vmem:[%s3810_s0 + $0x180] sm:$0xf]  ;;  %v2531_v38 = vld [vmem:[%s3810_s0 + $0x184] sm:$0xf]  ;;  %v2039_v39 = vld [vmem:[%s3810_s0 + $0x190] sm:$0xf0] }
  0xb4   :  { %1595 = vmatmul.bf16.gmra.mxu3 %v2002_v37  ;;  %v2533_v37 = vld [vmem:[%s3810_s0 + $0x18c] sm:$0xf0]  ;;  %v2042_v49 = vor.u32 %v2531_v38, %v2039_v39 }
  0xb5   :  { %2647 = vst [vmem:[%s3811_s2] sm:$0xff] %v2646_v40   ;;  %v2045_v40 = vld [vmem:[%s3810_s0 + $0x188] sm:$0xf]  ;;  %v2038_v48 = vor.u32 %v2533_v37, %v2037_v36 }
  0xb6   :  { %v1387_v41 = vpop.f32.mrf.mxu2  ;;  %v1051_v43 = vpop.f32.mrf.mxu0 }
  0xb7   :  { %v1556_v42 = vpop.f32.mrf.mxu3  ;;  %v1220_v44 = vpop.f32.mrf.mxu1  ;;  %v1388_v54 = vadd.f32 %v1387_v41, %v1219_v45  ;;  %v2534_v41 = vld [vmem:[%s3810_s0 + $0x194] sm:$0xf0] }
  0xb8   :  { %v1221_v55 = vadd.f32 %v1220_v44, %v1051_v43  ;;  %v2047_v43 = vld [vmem:[%s3810_s0 + $0x198] sm:$0xf0]  ;;  %v2046_v53 = vor.u32 %v2534_v41, %v2045_v40 }
  0xb9   :  { %v1557_v1 = vadd.f32 %v1556_v42, %v1388_v54  ;;  %v2532_v42 = vld [vmem:[%s3810_s0 + $0x18c] sm:$0xf] }
  0xba   :  { %v2050_v54 = vor.u32 %v2532_v42, %v2047_v43 }
  0xbe   :  { %v1389_v56 = vpop.f32.mrf.mxu2  ;;  %v1054_v61 = vpop.f32.mrf.mxu0 }
  0xbf   :  { %v1558_v57 = vpop.f32.mrf.mxu3  ;;  %v1390_v60 = vadd.f32 %v1389_v56, %v1221_v55  ;;  %v1223_v62 = vpop.f32.mrf.mxu1 }
  0xc0   :  { %v1224_v8 = vadd.f32 %v1223_v62, %v1054_v61 }
  0xc1   :  { %v1559_v2 = vadd.f32 %v1558_v57, %v1390_v60  ;;  %1093 = vmatmul.bf16.gmra.mxu0 %v2006_v58 }
  0xc2   :  { %1262 = vmatmul.bf16.gmra.mxu1 %v2010_v59 }
  0xc3   :  { %v2651_v3 = vpack.c.bf16 %v1559_v2, %v1557_v1  ;;  %1431 = vmatmul.bf16.gmra.mxu2 %v2014_v63  ;;  %v2053_v63 = vld [vmem:[%s3810_s0 + $0x1a0] sm:$0xf]  ;;  %v2535_v1 = vld [vmem:[%s3810_s0 + $0x1a4] sm:$0xf]  ;;  %v2055_v2 = vld [vmem:[%s3810_s0 + $0x1b0] sm:$0xf0] }
  0xc4   :  { %1600 = vmatmul.bf16.gmra.mxu3 %v2018_v0  ;;  %v2537_v0 = vld [vmem:[%s3810_s0 + $0x1ac] sm:$0xf0]  ;;  %v2058_v12 = vor.u32 %v2535_v1, %v2055_v2 }
  0xc5   :  { %2803 = vst [vmem:[%s3811_s2 + $0x8] sm:$0xff] %v2651_v3   ;;  %v2061_v3 = vld [vmem:[%s3810_s0 + $0x1a8] sm:$0xf]  ;;  %v2054_v11 = vor.u32 %v2537_v0, %v2053_v63 }
  0xc6   :  { %v1392_v4 = vpop.f32.mrf.mxu2  ;;  %v1056_v6 = vpop.f32.mrf.mxu0 }
  0xc7   :  { %v1561_v5 = vpop.f32.mrf.mxu3  ;;  %v1225_v7 = vpop.f32.mrf.mxu1  ;;  %v1393_v17 = vadd.f32 %v1392_v4, %v1224_v8  ;;  %v2538_v4 = vld [vmem:[%s3810_s0 + $0x1b4] sm:$0xf0] }
  0xc8   :  { %v1226_v18 = vadd.f32 %v1225_v7, %v1056_v6  ;;  %v2063_v6 = vld [vmem:[%s3810_s0 + $0x1b8] sm:$0xf0]  ;;  %v2062_v16 = vor.u32 %v2538_v4, %v2061_v3 }
  0xc9   :  { %v1562_v28 = vadd.f32 %v1561_v5, %v1393_v17  ;;  %v2536_v5 = vld [vmem:[%s3810_s0 + $0x1ac] sm:$0xf] }
  0xca   :  { %v2066_v17 = vor.u32 %v2536_v5, %v2063_v6 }
  0xce   :  { %v1394_v19 = vpop.f32.mrf.mxu2  ;;  %v1059_v24 = vpop.f32.mrf.mxu0 }
  0xcf   :  { %v1563_v20 = vpop.f32.mrf.mxu3  ;;  %v1395_v23 = vadd.f32 %v1394_v19, %v1226_v18  ;;  %v1228_v25 = vpop.f32.mrf.mxu1 }
  0xd0   :  { %v1229_v35 = vadd.f32 %v1228_v25, %v1059_v24 }
  0xd1   :  { %v1564_v29 = vadd.f32 %v1563_v20, %v1395_v23  ;;  %1098 = vmatmul.bf16.gmra.mxu0 %v2022_v21 }
  0xd2   :  { %1267 = vmatmul.bf16.gmra.mxu1 %v2026_v22 }
  0xd3   :  { %v2656_v30 = vpack.c.bf16 %v1564_v29, %v1562_v28  ;;  %1436 = vmatmul.bf16.gmra.mxu2 %v2030_v26  ;;  %v2069_v26 = vld [vmem:[%s3810_s0 + $0x1c0] sm:$0xf]  ;;  %v2539_v28 = vld [vmem:[%s3810_s0 + $0x1c4] sm:$0xf]  ;;  %v2071_v29 = vld [vmem:[%s3810_s0 + $0x1d0] sm:$0xf0] }
  0xd4   :  { %1605 = vmatmul.bf16.gmra.mxu3 %v2034_v27  ;;  %v2541_v27 = vld [vmem:[%s3810_s0 + $0x1cc] sm:$0xf0]  ;;  %v2074_v39 = vor.u32 %v2539_v28, %v2071_v29 }
  0xd5   :  { %2804 = vst [vmem:[%s3811_s2 + $0x10] sm:$0xff] %v2656_v30   ;;  %v2077_v30 = vld [vmem:[%s3810_s0 + $0x1c8] sm:$0xf]  ;;  %v2070_v38 = vor.u32 %v2541_v27, %v2069_v26 }
  0xd6   :  { %v1397_v31 = vpop.f32.mrf.mxu2  ;;  %v1061_v33 = vpop.f32.mrf.mxu0 }
  0xd7   :  { %v1566_v32 = vpop.f32.mrf.mxu3  ;;  %v1230_v34 = vpop.f32.mrf.mxu1  ;;  %v1398_v44 = vadd.f32 %v1397_v31, %v1229_v35  ;;  %v2542_v31 = vld [vmem:[%s3810_s0 + $0x1d4] sm:$0xf0] }
  0xd8   :  { %v1231_v45 = vadd.f32 %v1230_v34, %v1061_v33  ;;  %v2079_v33 = vld [vmem:[%s3810_s0 + $0x1d8] sm:$0xf0]  ;;  %v2078_v43 = vor.u32 %v2542_v31, %v2077_v30 }
  0xd9   :  { %v1567_v55 = vadd.f32 %v1566_v32, %v1398_v44  ;;  %v2540_v32 = vld [vmem:[%s3810_s0 + $0x1cc] sm:$0xf] }
  0xda   :  { %v2082_v44 = vor.u32 %v2540_v32, %v2079_v33 }
  0xde   :  { %v1399_v46 = vpop.f32.mrf.mxu2  ;;  %v1064_v51 = vpop.f32.mrf.mxu0 }
  0xdf   :  { %v1568_v47 = vpop.f32.mrf.mxu3  ;;  %v1400_v50 = vadd.f32 %v1399_v46, %v1231_v45  ;;  %v1233_v52 = vpop.f32.mrf.mxu1 }
  0xe0   :  { %v1234_v62 = vadd.f32 %v1233_v52, %v1064_v51 }
  0xe1   :  { %v1569_v56 = vadd.f32 %v1568_v47, %v1400_v50  ;;  %1103 = vmatmul.bf16.gmra.mxu0 %v2038_v48 }
  0xe2   :  { %1272 = vmatmul.bf16.gmra.mxu1 %v2042_v49 }
  0xe3   :  { %v2661_v57 = vpack.c.bf16 %v1569_v56, %v1567_v55  ;;  %1441 = vmatmul.bf16.gmra.mxu2 %v2046_v53  ;;  %v2085_v53 = vld [vmem:[%s3810_s0 + $0x1e0] sm:$0xf]  ;;  %v2543_v55 = vld [vmem:[%s3810_s0 + $0x1e4] sm:$0xf]  ;;  %v2087_v56 = vld [vmem:[%s3810_s0 + $0x1f0] sm:$0xf0] }
  0xe4   :  { %1610 = vmatmul.bf16.gmra.mxu3 %v2050_v54  ;;  %v2545_v54 = vld [vmem:[%s3810_s0 + $0x1ec] sm:$0xf0]  ;;  %v2090_v2 = vor.u32 %v2543_v55, %v2087_v56 }
  0xe5   :  { %2805 = vst [vmem:[%s3811_s2 + $0x18] sm:$0xff] %v2661_v57   ;;  %v2093_v57 = vld [vmem:[%s3810_s0 + $0x1e8] sm:$0xf]  ;;  %v2086_v1 = vor.u32 %v2545_v54, %v2085_v53 }
  0xe6   :  { %v1402_v58 = vpop.f32.mrf.mxu2  ;;  %v1066_v60 = vpop.f32.mrf.mxu0 }
  0xe7   :  { %v1571_v59 = vpop.f32.mrf.mxu3  ;;  %v1235_v61 = vpop.f32.mrf.mxu1  ;;  %v1403_v7 = vadd.f32 %v1402_v58, %v1234_v62  ;;  %v2546_v58 = vld [vmem:[%s3810_s0 + $0x1f4] sm:$0xf0] }
  0xe8   :  { %v1236_v8 = vadd.f32 %v1235_v61, %v1066_v60  ;;  %v2095_v60 = vld [vmem:[%s3810_s0 + $0x1f8] sm:$0xf0]  ;;  %v2094_v6 = vor.u32 %v2546_v58, %v2093_v57 }
  0xe9   :  { %v1572_v18 = vadd.f32 %v1571_v59, %v1403_v7  ;;  %v2544_v59 = vld [vmem:[%s3810_s0 + $0x1ec] sm:$0xf] }
  0xea   :  { %v2098_v7 = vor.u32 %v2544_v59, %v2095_v60 }
  0xee   :  { %v1404_v9 = vpop.f32.mrf.mxu2  ;;  %v1069_v14 = vpop.f32.mrf.mxu0 }
  0xef   :  { %v1573_v10 = vpop.f32.mrf.mxu3  ;;  %v1405_v13 = vadd.f32 %v1404_v9, %v1236_v8  ;;  %v1238_v15 = vpop.f32.mrf.mxu1 }
  0xf0   :  { %v1239_v25 = vadd.f32 %v1238_v15, %v1069_v14 }
  0xf1   :  { %v1574_v19 = vadd.f32 %v1573_v10, %v1405_v13  ;;  %1108 = vmatmul.bf16.gmra.mxu0 %v2054_v11 }
  0xf2   :  { %1277 = vmatmul.bf16.gmra.mxu1 %v2058_v12 }
  0xf3   :  { %v2666_v20 = vpack.c.bf16 %v1574_v19, %v1572_v18  ;;  %1446 = vmatmul.bf16.gmra.mxu2 %v2062_v16  ;;  %v2101_v16 = vld [vmem:[%s3810_s0 + $0x200] sm:$0xf]  ;;  %v2547_v18 = vld [vmem:[%s3810_s0 + $0x204] sm:$0xf]  ;;  %v2103_v19 = vld [vmem:[%s3810_s0 + $0x210] sm:$0xf0] }
  0xf4   :  { %1615 = vmatmul.bf16.gmra.mxu3 %v2066_v17  ;;  %v2549_v17 = vld [vmem:[%s3810_s0 + $0x20c] sm:$0xf0]  ;;  %v2106_v29 = vor.u32 %v2547_v18, %v2103_v19 }
  0xf5   :  { %2806 = vst [vmem:[%s3811_s2 + $0x20] sm:$0xff] %v2666_v20   ;;  %v2109_v20 = vld [vmem:[%s3810_s0 + $0x208] sm:$0xf]  ;;  %v2102_v28 = vor.u32 %v2549_v17, %v2101_v16 }
  0xf6   :  { %v1407_v21 = vpop.f32.mrf.mxu2  ;;  %v1071_v23 = vpop.f32.mrf.mxu0 }
  0xf7   :  { %v1576_v22 = vpop.f32.mrf.mxu3  ;;  %v1240_v24 = vpop.f32.mrf.mxu1  ;;  %v1408_v34 = vadd.f32 %v1407_v21, %v1239_v25  ;;  %v2550_v21 = vld [vmem:[%s3810_s0 + $0x214] sm:$0xf0] }
  0xf8   :  { %v1241_v35 = vadd.f32 %v1240_v24, %v1071_v23  ;;  %v2111_v23 = vld [vmem:[%s3810_s0 + $0x218] sm:$0xf0]  ;;  %v2110_v33 = vor.u32 %v2550_v21, %v2109_v20 }
  0xf9   :  { %v1577_v45 = vadd.f32 %v1576_v22, %v1408_v34  ;;  %v2548_v22 = vld [vmem:[%s3810_s0 + $0x20c] sm:$0xf] }
  0xfa   :  { %v2114_v34 = vor.u32 %v2548_v22, %v2111_v23 }
  0xfe   :  { %v1409_v36 = vpop.f32.mrf.mxu2  ;;  %v1074_v41 = vpop.f32.mrf.mxu0 }
  0xff   :  { %v1578_v37 = vpop.f32.mrf.mxu3  ;;  %v1410_v40 = vadd.f32 %v1409_v36, %v1241_v35  ;;  %v1243_v42 = vpop.f32.mrf.mxu1 }
 0x100   :  { %v1244_v52 = vadd.f32 %v1243_v42, %v1074_v41 }
 0x101   :  { %v1579_v46 = vadd.f32 %v1578_v37, %v1410_v40  ;;  %1113 = vmatmul.bf16.gmra.mxu0 %v2070_v38 }
 0x102   :  { %1282 = vmatmul.bf16.gmra.mxu1 %v2074_v39 }
 0x103   :  { %v2671_v47 = vpack.c.bf16 %v1579_v46, %v1577_v45  ;;  %1451 = vmatmul.bf16.gmra.mxu2 %v2078_v43  ;;  %v2117_v43 = vld [vmem:[%s3810_s0 + $0x220] sm:$0xf]  ;;  %v2551_v45 = vld [vmem:[%s3810_s0 + $0x224] sm:$0xf]  ;;  %v2119_v46 = vld [vmem:[%s3810_s0 + $0x230] sm:$0xf0] }
 0x104   :  { %1620 = vmatmul.bf16.gmra.mxu3 %v2082_v44  ;;  %v2553_v44 = vld [vmem:[%s3810_s0 + $0x22c] sm:$0xf0]  ;;  %v2122_v56 = vor.u32 %v2551_v45, %v2119_v46 }
 0x105   :  { %2807 = vst [vmem:[%s3811_s2 + $0x28] sm:$0xff] %v2671_v47   ;;  %v2125_v47 = vld [vmem:[%s3810_s0 + $0x228] sm:$0xf]  ;;  %v2118_v55 = vor.u32 %v2553_v44, %v2117_v43 }
 0x106   :  { %v1412_v48 = vpop.f32.mrf.mxu2  ;;  %v1076_v50 = vpop.f32.mrf.mxu0 }
 0x107   :  { %v1581_v49 = vpop.f32.mrf.mxu3  ;;  %v1245_v51 = vpop.f32.mrf.mxu1  ;;  %v1413_v61 = vadd.f32 %v1412_v48, %v1244_v52  ;;  %v2554_v48 = vld [vmem:[%s3810_s0 + $0x234] sm:$0xf0] }
 0x108   :  { %v1246_v62 = vadd.f32 %v1245_v51, %v1076_v50  ;;  %v2127_v50 = vld [vmem:[%s3810_s0 + $0x238] sm:$0xf0]  ;;  %v2126_v60 = vor.u32 %v2554_v48, %v2125_v47 }
 0x109   :  { %v1582_v8 = vadd.f32 %v1581_v49, %v1413_v61  ;;  %v2552_v49 = vld [vmem:[%s3810_s0 + $0x22c] sm:$0xf] }
 0x10a   :  { %v2130_v61 = vor.u32 %v2552_v49, %v2127_v50 }
 0x10e   :  { %v1414_v63 = vpop.f32.mrf.mxu2  ;;  %v1079_v4 = vpop.f32.mrf.mxu0 }
 0x10f   :  { %v1583_v0 = vpop.f32.mrf.mxu3  ;;  %v1415_v3 = vadd.f32 %v1414_v63, %v1246_v62  ;;  %v1248_v5 = vpop.f32.mrf.mxu1 }
 0x110   :  { %v1249_v15 = vadd.f32 %v1248_v5, %v1079_v4 }
 0x111   :  { %v1584_v9 = vadd.f32 %v1583_v0, %v1415_v3  ;;  %1118 = vmatmul.bf16.gmra.mxu0 %v2086_v1 }
 0x112   :  { %1287 = vmatmul.bf16.gmra.mxu1 %v2090_v2 }
 0x113   :  { %v2676_v10 = vpack.c.bf16 %v1584_v9, %v1582_v8  ;;  %1456 = vmatmul.bf16.gmra.mxu2 %v2094_v6  ;;  %v2133_v6 = vld [vmem:[%s3810_s0 + $0x240] sm:$0xf]  ;;  %v2555_v8 = vld [vmem:[%s3810_s0 + $0x244] sm:$0xf]  ;;  %v2135_v9 = vld [vmem:[%s3810_s0 + $0x250] sm:$0xf0] }
 0x114   :  { %1625 = vmatmul.bf16.gmra.mxu3 %v2098_v7  ;;  %v2557_v7 = vld [vmem:[%s3810_s0 + $0x24c] sm:$0xf0]  ;;  %v2138_v19 = vor.u32 %v2555_v8, %v2135_v9 }
 0x115   :  { %2808 = vst [vmem:[%s3811_s2 + $0x30] sm:$0xff] %v2676_v10   ;;  %v2141_v10 = vld [vmem:[%s3810_s0 + $0x248] sm:$0xf]  ;;  %v2134_v18 = vor.u32 %v2557_v7, %v2133_v6 }
 0x116   :  { %v1417_v11 = vpop.f32.mrf.mxu2  ;;  %v1081_v13 = vpop.f32.mrf.mxu0 }
 0x117   :  { %v1586_v12 = vpop.f32.mrf.mxu3  ;;  %v1250_v14 = vpop.f32.mrf.mxu1  ;;  %v1418_v24 = vadd.f32 %v1417_v11, %v1249_v15  ;;  %v2558_v11 = vld [vmem:[%s3810_s0 + $0x254] sm:$0xf0] }
 0x118   :  { %v1251_v25 = vadd.f32 %v1250_v14, %v1081_v13  ;;  %v2143_v13 = vld [vmem:[%s3810_s0 + $0x258] sm:$0xf0]  ;;  %v2142_v23 = vor.u32 %v2558_v11, %v2141_v10 }
 0x119   :  { %v1587_v35 = vadd.f32 %v1586_v12, %v1418_v24  ;;  %v2556_v12 = vld [vmem:[%s3810_s0 + $0x24c] sm:$0xf] }
 0x11a   :  { %v2146_v24 = vor.u32 %v2556_v12, %v2143_v13 }
 0x11e   :  { %v1419_v26 = vpop.f32.mrf.mxu2  ;;  %v1084_v31 = vpop.f32.mrf.mxu0 }
 0x11f   :  { %v1588_v27 = vpop.f32.mrf.mxu3  ;;  %v1420_v30 = vadd.f32 %v1419_v26, %v1251_v25  ;;  %v1253_v32 = vpop.f32.mrf.mxu1 }
 0x120   :  { %v1254_v42 = vadd.f32 %v1253_v32, %v1084_v31 }
 0x121   :  { %v1589_v36 = vadd.f32 %v1588_v27, %v1420_v30  ;;  %1123 = vmatmul.bf16.gmra.mxu0 %v2102_v28 }
 0x122   :  { %1292 = vmatmul.bf16.gmra.mxu1 %v2106_v29 }
 0x123   :  { %v2681_v37 = vpack.c.bf16 %v1589_v36, %v1587_v35  ;;  %1461 = vmatmul.bf16.gmra.mxu2 %v2110_v33  ;;  %v2149_v33 = vld [vmem:[%s3810_s0 + $0x260] sm:$0xf]  ;;  %v2559_v35 = vld [vmem:[%s3810_s0 + $0x264] sm:$0xf]  ;;  %v2151_v36 = vld [vmem:[%s3810_s0 + $0x270] sm:$0xf0] }
 0x124   :  { %1630 = vmatmul.bf16.gmra.mxu3 %v2114_v34  ;;  %v2561_v34 = vld [vmem:[%s3810_s0 + $0x26c] sm:$0xf0]  ;;  %v2154_v46 = vor.u32 %v2559_v35, %v2151_v36 }
 0x125   :  { %2809 = vst [vmem:[%s3811_s2 + $0x38] sm:$0xff] %v2681_v37   ;;  %v2157_v37 = vld [vmem:[%s3810_s0 + $0x268] sm:$0xf]  ;;  %v2150_v45 = vor.u32 %v2561_v34, %v2149_v33 }
 0x126   :  { %v1422_v38 = vpop.f32.mrf.mxu2  ;;  %v1086_v40 = vpop.f32.mrf.mxu0 }
 0x127   :  { %v1591_v39 = vpop.f32.mrf.mxu3  ;;  %v1255_v41 = vpop.f32.mrf.mxu1  ;;  %v1423_v51 = vadd.f32 %v1422_v38, %v1254_v42  ;;  %v2562_v38 = vld [vmem:[%s3810_s0 + $0x274] sm:$0xf0] }
 0x128   :  { %v1256_v52 = vadd.f32 %v1255_v41, %v1086_v40  ;;  %v2159_v40 = vld [vmem:[%s3810_s0 + $0x278] sm:$0xf0]  ;;  %v2158_v50 = vor.u32 %v2562_v38, %v2157_v37 }
 0x129   :  { %v1592_v62 = vadd.f32 %v1591_v39, %v1423_v51  ;;  %v2560_v39 = vld [vmem:[%s3810_s0 + $0x26c] sm:$0xf] }
 0x12a   :  { %v2162_v51 = vor.u32 %v2560_v39, %v2159_v40 }
 0x12e   :  { %v1424_v53 = vpop.f32.mrf.mxu2  ;;  %v1089_v58 = vpop.f32.mrf.mxu0 }
 0x12f   :  { %v1593_v54 = vpop.f32.mrf.mxu3  ;;  %v1425_v57 = vadd.f32 %v1424_v53, %v1256_v52  ;;  %v1258_v59 = vpop.f32.mrf.mxu1 }
 0x130   :  { %v1259_v5 = vadd.f32 %v1258_v59, %v1089_v58 }
 0x131   :  { %v1594_v63 = vadd.f32 %v1593_v54, %v1425_v57  ;;  %1128 = vmatmul.bf16.gmra.mxu0 %v2118_v55 }
 0x132   :  { %1297 = vmatmul.bf16.gmra.mxu1 %v2122_v56 }
 0x133   :  { %v2686_v0 = vpack.c.bf16 %v1594_v63, %v1592_v62  ;;  %1466 = vmatmul.bf16.gmra.mxu2 %v2126_v60  ;;  %v2165_v60 = vld [vmem:[%s3810_s0 + $0x280] sm:$0xf]  ;;  %v2563_v62 = vld [vmem:[%s3810_s0 + $0x284] sm:$0xf]  ;;  %v2167_v63 = vld [vmem:[%s3810_s0 + $0x290] sm:$0xf0] }
 0x134   :  { %1635 = vmatmul.bf16.gmra.mxu3 %v2130_v61  ;;  %v2565_v61 = vld [vmem:[%s3810_s0 + $0x28c] sm:$0xf0]  ;;  %v2170_v9 = vor.u32 %v2563_v62, %v2167_v63 }
 0x135   :  { %2810 = vst [vmem:[%s3811_s2 + $0x40] sm:$0xff] %v2686_v0   ;;  %v2173_v0 = vld [vmem:[%s3810_s0 + $0x288] sm:$0xf]  ;;  %v2166_v8 = vor.u32 %v2565_v61, %v2165_v60 }
 0x136   :  { %v1427_v1 = vpop.f32.mrf.mxu2  ;;  %v1091_v3 = vpop.f32.mrf.mxu0 }
 0x137   :  { %v1596_v2 = vpop.f32.mrf.mxu3  ;;  %v1260_v4 = vpop.f32.mrf.mxu1  ;;  %v1428_v14 = vadd.f32 %v1427_v1, %v1259_v5  ;;  %v2566_v1 = vld [vmem:[%s3810_s0 + $0x294] sm:$0xf0] }
 0x138   :  { %v1261_v15 = vadd.f32 %v1260_v4, %v1091_v3  ;;  %v2175_v3 = vld [vmem:[%s3810_s0 + $0x298] sm:$0xf0]  ;;  %v2174_v13 = vor.u32 %v2566_v1, %v2173_v0 }
 0x139   :  { %v1597_v25 = vadd.f32 %v1596_v2, %v1428_v14  ;;  %v2564_v2 = vld [vmem:[%s3810_s0 + $0x28c] sm:$0xf] }
 0x13a   :  { %v2178_v14 = vor.u32 %v2564_v2, %v2175_v3 }
 0x13e   :  { %v1429_v16 = vpop.f32.mrf.mxu2  ;;  %v1094_v21 = vpop.f32.mrf.mxu0 }
 0x13f   :  { %v1598_v17 = vpop.f32.mrf.mxu3  ;;  %v1430_v20 = vadd.f32 %v1429_v16, %v1261_v15  ;;  %v1263_v22 = vpop.f32.mrf.mxu1 }
 0x140   :  { %v1264_v32 = vadd.f32 %v1263_v22, %v1094_v21 }
 0x141   :  { %v1599_v26 = vadd.f32 %v1598_v17, %v1430_v20  ;;  %1133 = vmatmul.bf16.gmra.mxu0 %v2134_v18 }
 0x142   :  { %1302 = vmatmul.bf16.gmra.mxu1 %v2138_v19 }
 0x143   :  { %v2691_v27 = vpack.c.bf16 %v1599_v26, %v1597_v25  ;;  %1471 = vmatmul.bf16.gmra.mxu2 %v2142_v23  ;;  %v2181_v23 = vld [vmem:[%s3810_s0 + $0x2a0] sm:$0xf]  ;;  %v2567_v25 = vld [vmem:[%s3810_s0 + $0x2a4] sm:$0xf]  ;;  %v2183_v26 = vld [vmem:[%s3810_s0 + $0x2b0] sm:$0xf0] }
 0x144   :  { %1640 = vmatmul.bf16.gmra.mxu3 %v2146_v24  ;;  %v2569_v24 = vld [vmem:[%s3810_s0 + $0x2ac] sm:$0xf0]  ;;  %v2186_v36 = vor.u32 %v2567_v25, %v2183_v26 }
 0x145   :  { %2811 = vst [vmem:[%s3811_s2 + $0x48] sm:$0xff] %v2691_v27   ;;  %v2189_v27 = vld [vmem:[%s3810_s0 + $0x2a8] sm:$0xf]  ;;  %v2182_v35 = vor.u32 %v2569_v24, %v2181_v23 }
 0x146   :  { %v1432_v28 = vpop.f32.mrf.mxu2  ;;  %v1096_v30 = vpop.f32.mrf.mxu0 }
 0x147   :  { %v1601_v29 = vpop.f32.mrf.mxu3  ;;  %v1265_v31 = vpop.f32.mrf.mxu1  ;;  %v1433_v41 = vadd.f32 %v1432_v28, %v1264_v32  ;;  %v2570_v28 = vld [vmem:[%s3810_s0 + $0x2b4] sm:$0xf0] }
 0x148   :  { %v1266_v42 = vadd.f32 %v1265_v31, %v1096_v30  ;;  %v2191_v30 = vld [vmem:[%s3810_s0 + $0x2b8] sm:$0xf0]  ;;  %v2190_v40 = vor.u32 %v2570_v28, %v2189_v27 }
 0x149   :  { %v1602_v52 = vadd.f32 %v1601_v29, %v1433_v41  ;;  %v2568_v29 = vld [vmem:[%s3810_s0 + $0x2ac] sm:$0xf] }
 0x14a   :  { %v2194_v41 = vor.u32 %v2568_v29, %v2191_v30 }
 0x14e   :  { %v1434_v43 = vpop.f32.mrf.mxu2  ;;  %v1099_v48 = vpop.f32.mrf.mxu0 }
 0x14f   :  { %v1603_v44 = vpop.f32.mrf.mxu3  ;;  %v1435_v47 = vadd.f32 %v1434_v43, %v1266_v42  ;;  %v1268_v49 = vpop.f32.mrf.mxu1 }
 0x150   :  { %v1269_v59 = vadd.f32 %v1268_v49, %v1099_v48 }
 0x151   :  { %v1604_v53 = vadd.f32 %v1603_v44, %v1435_v47  ;;  %1138 = vmatmul.bf16.gmra.mxu0 %v2150_v45 }
 0x152   :  { %1307 = vmatmul.bf16.gmra.mxu1 %v2154_v46 }
 0x153   :  { %v2696_v54 = vpack.c.bf16 %v1604_v53, %v1602_v52  ;;  %1476 = vmatmul.bf16.gmra.mxu2 %v2158_v50  ;;  %v2197_v50 = vld [vmem:[%s3810_s0 + $0x2c0] sm:$0xf]  ;;  %v2571_v52 = vld [vmem:[%s3810_s0 + $0x2c4] sm:$0xf]  ;;  %v2199_v53 = vld [vmem:[%s3810_s0 + $0x2d0] sm:$0xf0] }
 0x154   :  { %1645 = vmatmul.bf16.gmra.mxu3 %v2162_v51  ;;  %v2573_v51 = vld [vmem:[%s3810_s0 + $0x2cc] sm:$0xf0]  ;;  %v2202_v63 = vor.u32 %v2571_v52, %v2199_v53 }
 0x155   :  { %2812 = vst [vmem:[%s3811_s2 + $0x50] sm:$0xff] %v2696_v54   ;;  %v2205_v54 = vld [vmem:[%s3810_s0 + $0x2c8] sm:$0xf]  ;;  %v2198_v62 = vor.u32 %v2573_v51, %v2197_v50 }
 0x156   :  { %v1437_v55 = vpop.f32.mrf.mxu2  ;;  %v1101_v57 = vpop.f32.mrf.mxu0 }
 0x157   :  { %v1606_v56 = vpop.f32.mrf.mxu3  ;;  %v1270_v58 = vpop.f32.mrf.mxu1  ;;  %v1438_v4 = vadd.f32 %v1437_v55, %v1269_v59  ;;  %v2574_v55 = vld [vmem:[%s3810_s0 + $0x2d4] sm:$0xf0] }
 0x158   :  { %v1271_v5 = vadd.f32 %v1270_v58, %v1101_v57  ;;  %v2207_v57 = vld [vmem:[%s3810_s0 + $0x2d8] sm:$0xf0]  ;;  %v2206_v3 = vor.u32 %v2574_v55, %v2205_v54 }
 0x159   :  { %v1607_v15 = vadd.f32 %v1606_v56, %v1438_v4  ;;  %v2572_v56 = vld [vmem:[%s3810_s0 + $0x2cc] sm:$0xf] }
 0x15a   :  { %v2210_v4 = vor.u32 %v2572_v56, %v2207_v57 }
 0x15e   :  { %v1439_v6 = vpop.f32.mrf.mxu2  ;;  %v1104_v11 = vpop.f32.mrf.mxu0 }
 0x15f   :  { %v1608_v7 = vpop.f32.mrf.mxu3  ;;  %v1440_v10 = vadd.f32 %v1439_v6, %v1271_v5  ;;  %v1273_v12 = vpop.f32.mrf.mxu1 }
 0x160   :  { %v1274_v22 = vadd.f32 %v1273_v12, %v1104_v11 }
 0x161   :  { %v1609_v16 = vadd.f32 %v1608_v7, %v1440_v10  ;;  %1143 = vmatmul.bf16.gmra.mxu0 %v2166_v8 }
 0x162   :  { %1312 = vmatmul.bf16.gmra.mxu1 %v2170_v9 }
 0x163   :  { %v2701_v17 = vpack.c.bf16 %v1609_v16, %v1607_v15  ;;  %1481 = vmatmul.bf16.gmra.mxu2 %v2174_v13  ;;  %v2213_v13 = vld [vmem:[%s3810_s0 + $0x2e0] sm:$0xf]  ;;  %v2575_v15 = vld [vmem:[%s3810_s0 + $0x2e4] sm:$0xf]  ;;  %v2215_v16 = vld [vmem:[%s3810_s0 + $0x2f0] sm:$0xf0] }
 0x164   :  { %1650 = vmatmul.bf16.gmra.mxu3 %v2178_v14  ;;  %v2577_v14 = vld [vmem:[%s3810_s0 + $0x2ec] sm:$0xf0]  ;;  %v2218_v26 = vor.u32 %v2575_v15, %v2215_v16 }
 0x165   :  { %2813 = vst [vmem:[%s3811_s2 + $0x58] sm:$0xff] %v2701_v17   ;;  %v2221_v17 = vld [vmem:[%s3810_s0 + $0x2e8] sm:$0xf]  ;;  %v2214_v25 = vor.u32 %v2577_v14, %v2213_v13 }
 0x166   :  { %v1442_v18 = vpop.f32.mrf.mxu2  ;;  %v1106_v20 = vpop.f32.mrf.mxu0 }
 0x167   :  { %v1611_v19 = vpop.f32.mrf.mxu3  ;;  %v1275_v21 = vpop.f32.mrf.mxu1  ;;  %v1443_v31 = vadd.f32 %v1442_v18, %v1274_v22  ;;  %v2578_v18 = vld [vmem:[%s3810_s0 + $0x2f4] sm:$0xf0] }
 0x168   :  { %v1276_v32 = vadd.f32 %v1275_v21, %v1106_v20  ;;  %v2223_v20 = vld [vmem:[%s3810_s0 + $0x2f8] sm:$0xf0]  ;;  %v2222_v30 = vor.u32 %v2578_v18, %v2221_v17 }
 0x169   :  { %v1612_v42 = vadd.f32 %v1611_v19, %v1443_v31  ;;  %v2576_v19 = vld [vmem:[%s3810_s0 + $0x2ec] sm:$0xf] }
 0x16a   :  { %v2226_v31 = vor.u32 %v2576_v19, %v2223_v20 }
 0x16e   :  { %v1444_v33 = vpop.f32.mrf.mxu2  ;;  %v1109_v38 = vpop.f32.mrf.mxu0 }
 0x16f   :  { %v1613_v34 = vpop.f32.mrf.mxu3  ;;  %v1445_v37 = vadd.f32 %v1444_v33, %v1276_v32  ;;  %v1278_v39 = vpop.f32.mrf.mxu1 }
 0x170   :  { %v1279_v49 = vadd.f32 %v1278_v39, %v1109_v38 }
 0x171   :  { %v1614_v43 = vadd.f32 %v1613_v34, %v1445_v37  ;;  %1148 = vmatmul.bf16.gmra.mxu0 %v2182_v35 }
 0x172   :  { %1317 = vmatmul.bf16.gmra.mxu1 %v2186_v36 }
 0x173   :  { %v2706_v44 = vpack.c.bf16 %v1614_v43, %v1612_v42  ;;  %1486 = vmatmul.bf16.gmra.mxu2 %v2190_v40  ;;  %v2229_v40 = vld [vmem:[%s3810_s0 + $0x300] sm:$0xf]  ;;  %v2579_v42 = vld [vmem:[%s3810_s0 + $0x304] sm:$0xf]  ;;  %v2231_v43 = vld [vmem:[%s3810_s0 + $0x310] sm:$0xf0] }
 0x174   :  { %1655 = vmatmul.bf16.gmra.mxu3 %v2194_v41  ;;  %v2581_v41 = vld [vmem:[%s3810_s0 + $0x30c] sm:$0xf0]  ;;  %v2234_v53 = vor.u32 %v2579_v42, %v2231_v43 }
 0x175   :  { %2814 = vst [vmem:[%s3811_s2 + $0x60] sm:$0xff] %v2706_v44   ;;  %v2237_v44 = vld [vmem:[%s3810_s0 + $0x308] sm:$0xf]  ;;  %v2230_v52 = vor.u32 %v2581_v41, %v2229_v40 }
 0x176   :  { %v1447_v45 = vpop.f32.mrf.mxu2  ;;  %v1111_v47 = vpop.f32.mrf.mxu0 }
 0x177   :  { %v1616_v46 = vpop.f32.mrf.mxu3  ;;  %v1280_v48 = vpop.f32.mrf.mxu1  ;;  %v1448_v58 = vadd.f32 %v1447_v45, %v1279_v49  ;;  %v2582_v45 = vld [vmem:[%s3810_s0 + $0x314] sm:$0xf0] }
 0x178   :  { %v1281_v59 = vadd.f32 %v1280_v48, %v1111_v47  ;;  %v2239_v47 = vld [vmem:[%s3810_s0 + $0x318] sm:$0xf0]  ;;  %v2238_v57 = vor.u32 %v2582_v45, %v2237_v44 }
 0x179   :  { %v1617_v5 = vadd.f32 %v1616_v46, %v1448_v58  ;;  %v2580_v46 = vld [vmem:[%s3810_s0 + $0x30c] sm:$0xf] }
 0x17a   :  { %v2242_v58 = vor.u32 %v2580_v46, %v2239_v47 }
 0x17e   :  { %v1449_v60 = vpop.f32.mrf.mxu2  ;;  %v1114_v1 = vpop.f32.mrf.mxu0 }
 0x17f   :  { %v1618_v61 = vpop.f32.mrf.mxu3  ;;  %v1450_v0 = vadd.f32 %v1449_v60, %v1281_v59  ;;  %v1283_v2 = vpop.f32.mrf.mxu1 }
 0x180   :  { %v1284_v12 = vadd.f32 %v1283_v2, %v1114_v1 }
 0x181   :  { %v1619_v6 = vadd.f32 %v1618_v61, %v1450_v0  ;;  %1153 = vmatmul.bf16.gmra.mxu0 %v2198_v62 }
 0x182   :  { %1322 = vmatmul.bf16.gmra.mxu1 %v2202_v63 }
 0x183   :  { %v2711_v7 = vpack.c.bf16 %v1619_v6, %v1617_v5  ;;  %1491 = vmatmul.bf16.gmra.mxu2 %v2206_v3  ;;  %v2245_v3 = vld [vmem:[%s3810_s0 + $0x320] sm:$0xf]  ;;  %v2583_v5 = vld [vmem:[%s3810_s0 + $0x324] sm:$0xf]  ;;  %v2247_v6 = vld [vmem:[%s3810_s0 + $0x330] sm:$0xf0] }
 0x184   :  { %1660 = vmatmul.bf16.gmra.mxu3 %v2210_v4  ;;  %v2585_v4 = vld [vmem:[%s3810_s0 + $0x32c] sm:$0xf0]  ;;  %v2250_v16 = vor.u32 %v2583_v5, %v2247_v6 }
 0x185   :  { %2815 = vst [vmem:[%s3811_s2 + $0x68] sm:$0xff] %v2711_v7   ;;  %v2253_v7 = vld [vmem:[%s3810_s0 + $0x328] sm:$0xf]  ;;  %v2246_v15 = vor.u32 %v2585_v4, %v2245_v3 }
 0x186   :  { %v1452_v8 = vpop.f32.mrf.mxu2  ;;  %v1116_v10 = vpop.f32.mrf.mxu0 }
 0x187   :  { %v1621_v9 = vpop.f32.mrf.mxu3  ;;  %v1285_v11 = vpop.f32.mrf.mxu1  ;;  %v1453_v21 = vadd.f32 %v1452_v8, %v1284_v12  ;;  %v2586_v8 = vld [vmem:[%s3810_s0 + $0x334] sm:$0xf0] }
 0x188   :  { %v1286_v22 = vadd.f32 %v1285_v11, %v1116_v10  ;;  %v2255_v10 = vld [vmem:[%s3810_s0 + $0x338] sm:$0xf0]  ;;  %v2254_v20 = vor.u32 %v2586_v8, %v2253_v7 }
 0x189   :  { %v1622_v32 = vadd.f32 %v1621_v9, %v1453_v21  ;;  %v2584_v9 = vld [vmem:[%s3810_s0 + $0x32c] sm:$0xf] }
 0x18a   :  { %v2258_v21 = vor.u32 %v2584_v9, %v2255_v10 }
 0x18e   :  { %v1454_v23 = vpop.f32.mrf.mxu2  ;;  %v1119_v28 = vpop.f32.mrf.mxu0 }
 0x18f   :  { %v1623_v24 = vpop.f32.mrf.mxu3  ;;  %v1455_v27 = vadd.f32 %v1454_v23, %v1286_v22  ;;  %v1288_v29 = vpop.f32.mrf.mxu1 }
 0x190   :  { %v1289_v39 = vadd.f32 %v1288_v29, %v1119_v28 }
 0x191   :  { %v1624_v33 = vadd.f32 %v1623_v24, %v1455_v27  ;;  %1158 = vmatmul.bf16.gmra.mxu0 %v2214_v25 }
 0x192   :  { %1327 = vmatmul.bf16.gmra.mxu1 %v2218_v26 }
 0x193   :  { %v2716_v34 = vpack.c.bf16 %v1624_v33, %v1622_v32  ;;  %1496 = vmatmul.bf16.gmra.mxu2 %v2222_v30  ;;  %v2261_v30 = vld [vmem:[%s3810_s0 + $0x340] sm:$0xf]  ;;  %v2587_v32 = vld [vmem:[%s3810_s0 + $0x344] sm:$0xf]  ;;  %v2263_v33 = vld [vmem:[%s3810_s0 + $0x350] sm:$0xf0] }
 0x194   :  { %1665 = vmatmul.bf16.gmra.mxu3 %v2226_v31  ;;  %v2589_v31 = vld [vmem:[%s3810_s0 + $0x34c] sm:$0xf0]  ;;  %v2266_v43 = vor.u32 %v2587_v32, %v2263_v33 }
 0x195   :  { %2816 = vst [vmem:[%s3811_s2 + $0x70] sm:$0xff] %v2716_v34   ;;  %v2269_v34 = vld [vmem:[%s3810_s0 + $0x348] sm:$0xf]  ;;  %v2262_v42 = vor.u32 %v2589_v31, %v2261_v30 }
 0x196   :  { %v1457_v35 = vpop.f32.mrf.mxu2  ;;  %v1121_v37 = vpop.f32.mrf.mxu0 }
 0x197   :  { %v1626_v36 = vpop.f32.mrf.mxu3  ;;  %v1290_v38 = vpop.f32.mrf.mxu1  ;;  %v1458_v48 = vadd.f32 %v1457_v35, %v1289_v39  ;;  %v2590_v35 = vld [vmem:[%s3810_s0 + $0x354] sm:$0xf0] }
 0x198   :  { %v1291_v49 = vadd.f32 %v1290_v38, %v1121_v37  ;;  %v2271_v37 = vld [vmem:[%s3810_s0 + $0x358] sm:$0xf0]  ;;  %v2270_v47 = vor.u32 %v2590_v35, %v2269_v34 }
 0x199   :  { %v1627_v59 = vadd.f32 %v1626_v36, %v1458_v48  ;;  %v2588_v36 = vld [vmem:[%s3810_s0 + $0x34c] sm:$0xf] }
 0x19a   :  { %v2274_v48 = vor.u32 %v2588_v36, %v2271_v37 }
 0x19e   :  { %v1459_v50 = vpop.f32.mrf.mxu2  ;;  %v1124_v55 = vpop.f32.mrf.mxu0 }
 0x19f   :  { %v1628_v51 = vpop.f32.mrf.mxu3  ;;  %v1460_v54 = vadd.f32 %v1459_v50, %v1291_v49  ;;  %v1293_v56 = vpop.f32.mrf.mxu1 }
 0x1a0   :  { %v1294_v2 = vadd.f32 %v1293_v56, %v1124_v55 }
 0x1a1   :  { %v1629_v60 = vadd.f32 %v1628_v51, %v1460_v54  ;;  %1163 = vmatmul.bf16.gmra.mxu0 %v2230_v52 }
 0x1a2   :  { %1332 = vmatmul.bf16.gmra.mxu1 %v2234_v53 }
 0x1a3   :  { %v2721_v61 = vpack.c.bf16 %v1629_v60, %v1627_v59  ;;  %1501 = vmatmul.bf16.gmra.mxu2 %v2238_v57  ;;  %v2277_v57 = vld [vmem:[%s3810_s0 + $0x360] sm:$0xf]  ;;  %v2591_v59 = vld [vmem:[%s3810_s0 + $0x364] sm:$0xf]  ;;  %v2279_v60 = vld [vmem:[%s3810_s0 + $0x370] sm:$0xf0] }
 0x1a4   :  { %1670 = vmatmul.bf16.gmra.mxu3 %v2242_v58  ;;  %v2593_v58 = vld [vmem:[%s3810_s0 + $0x36c] sm:$0xf0]  ;;  %v2282_v6 = vor.u32 %v2591_v59, %v2279_v60 }
 0x1a5   :  { %2817 = vst [vmem:[%s3811_s2 + $0x78] sm:$0xff] %v2721_v61   ;;  %v2285_v61 = vld [vmem:[%s3810_s0 + $0x368] sm:$0xf]  ;;  %v2278_v5 = vor.u32 %v2593_v58, %v2277_v57 }
 0x1a6   :  { %v1462_v62 = vpop.f32.mrf.mxu2  ;;  %v1126_v0 = vpop.f32.mrf.mxu0 }
 0x1a7   :  { %v1631_v63 = vpop.f32.mrf.mxu3  ;;  %v1295_v1 = vpop.f32.mrf.mxu1  ;;  %v1463_v11 = vadd.f32 %v1462_v62, %v1294_v2  ;;  %v2594_v62 = vld [vmem:[%s3810_s0 + $0x374] sm:$0xf0] }
 0x1a8   :  { %v1296_v12 = vadd.f32 %v1295_v1, %v1126_v0  ;;  %v2287_v0 = vld [vmem:[%s3810_s0 + $0x378] sm:$0xf0]  ;;  %v2286_v10 = vor.u32 %v2594_v62, %v2285_v61 }
 0x1a9   :  { %v1632_v22 = vadd.f32 %v1631_v63, %v1463_v11  ;;  %v2592_v63 = vld [vmem:[%s3810_s0 + $0x36c] sm:$0xf] }
 0x1aa   :  { %v2290_v11 = vor.u32 %v2592_v63, %v2287_v0 }
 0x1ae   :  { %v1464_v13 = vpop.f32.mrf.mxu2  ;;  %v1129_v18 = vpop.f32.mrf.mxu0 }
 0x1af   :  { %v1633_v14 = vpop.f32.mrf.mxu3  ;;  %v1465_v17 = vadd.f32 %v1464_v13, %v1296_v12  ;;  %v1298_v19 = vpop.f32.mrf.mxu1 }
 0x1b0   :  { %v1299_v29 = vadd.f32 %v1298_v19, %v1129_v18 }
 0x1b1   :  { %v1634_v23 = vadd.f32 %v1633_v14, %v1465_v17  ;;  %1168 = vmatmul.bf16.gmra.mxu0 %v2246_v15 }
 0x1b2   :  { %1337 = vmatmul.bf16.gmra.mxu1 %v2250_v16 }
 0x1b3   :  { %v2726_v24 = vpack.c.bf16 %v1634_v23, %v1632_v22  ;;  %1506 = vmatmul.bf16.gmra.mxu2 %v2254_v20  ;;  %v2293_v20 = vld [vmem:[%s3810_s0 + $0x380] sm:$0xf]  ;;  %v2595_v22 = vld [vmem:[%s3810_s0 + $0x384] sm:$0xf]  ;;  %v2295_v23 = vld [vmem:[%s3810_s0 + $0x390] sm:$0xf0] }
 0x1b4   :  { %1675 = vmatmul.bf16.gmra.mxu3 %v2258_v21  ;;  %v2597_v21 = vld [vmem:[%s3810_s0 + $0x38c] sm:$0xf0]  ;;  %v2298_v33 = vor.u32 %v2595_v22, %v2295_v23 }
 0x1b5   :  { %2818 = vst [vmem:[%s3811_s2 + $0x80] sm:$0xff] %v2726_v24   ;;  %v2301_v24 = vld [vmem:[%s3810_s0 + $0x388] sm:$0xf]  ;;  %v2294_v32 = vor.u32 %v2597_v21, %v2293_v20 }
 0x1b6   :  { %v1467_v25 = vpop.f32.mrf.mxu2  ;;  %v1131_v27 = vpop.f32.mrf.mxu0 }
 0x1b7   :  { %v1636_v26 = vpop.f32.mrf.mxu3  ;;  %v1300_v28 = vpop.f32.mrf.mxu1  ;;  %v1468_v38 = vadd.f32 %v1467_v25, %v1299_v29  ;;  %v2598_v25 = vld [vmem:[%s3810_s0 + $0x394] sm:$0xf0] }
 0x1b8   :  { %v1301_v39 = vadd.f32 %v1300_v28, %v1131_v27  ;;  %v2303_v27 = vld [vmem:[%s3810_s0 + $0x398] sm:$0xf0]  ;;  %v2302_v37 = vor.u32 %v2598_v25, %v2301_v24 }
 0x1b9   :  { %v1637_v49 = vadd.f32 %v1636_v26, %v1468_v38  ;;  %v2596_v26 = vld [vmem:[%s3810_s0 + $0x38c] sm:$0xf] }
 0x1ba   :  { %v2306_v38 = vor.u32 %v2596_v26, %v2303_v27 }
 0x1be   :  { %v1469_v40 = vpop.f32.mrf.mxu2  ;;  %v1134_v45 = vpop.f32.mrf.mxu0 }
 0x1bf   :  { %v1638_v41 = vpop.f32.mrf.mxu3  ;;  %v1470_v44 = vadd.f32 %v1469_v40, %v1301_v39  ;;  %v1303_v46 = vpop.f32.mrf.mxu1 }
 0x1c0   :  { %v1304_v56 = vadd.f32 %v1303_v46, %v1134_v45 }
 0x1c1   :  { %v1639_v50 = vadd.f32 %v1638_v41, %v1470_v44  ;;  %1173 = vmatmul.bf16.gmra.mxu0 %v2262_v42 }
 0x1c2   :  { %1342 = vmatmul.bf16.gmra.mxu1 %v2266_v43 }
 0x1c3   :  { %v2731_v51 = vpack.c.bf16 %v1639_v50, %v1637_v49  ;;  %1511 = vmatmul.bf16.gmra.mxu2 %v2270_v47  ;;  %v2309_v47 = vld [vmem:[%s3810_s0 + $0x3a0] sm:$0xf]  ;;  %v2599_v49 = vld [vmem:[%s3810_s0 + $0x3a4] sm:$0xf]  ;;  %v2311_v50 = vld [vmem:[%s3810_s0 + $0x3b0] sm:$0xf0] }
 0x1c4   :  { %1680 = vmatmul.bf16.gmra.mxu3 %v2274_v48  ;;  %v2601_v48 = vld [vmem:[%s3810_s0 + $0x3ac] sm:$0xf0]  ;;  %v2314_v60 = vor.u32 %v2599_v49, %v2311_v50 }
 0x1c5   :  { %2819 = vst [vmem:[%s3811_s2 + $0x88] sm:$0xff] %v2731_v51   ;;  %v2317_v51 = vld [vmem:[%s3810_s0 + $0x3a8] sm:$0xf]  ;;  %v2310_v59 = vor.u32 %v2601_v48, %v2309_v47 }
 0x1c6   :  { %v1472_v52 = vpop.f32.mrf.mxu2  ;;  %v1136_v54 = vpop.f32.mrf.mxu0 }
 0x1c7   :  { %v1641_v53 = vpop.f32.mrf.mxu3  ;;  %v1305_v55 = vpop.f32.mrf.mxu1  ;;  %v1473_v1 = vadd.f32 %v1472_v52, %v1304_v56  ;;  %v2602_v52 = vld [vmem:[%s3810_s0 + $0x3b4] sm:$0xf0] }
 0x1c8   :  { %v1306_v2 = vadd.f32 %v1305_v55, %v1136_v54  ;;  %v2319_v54 = vld [vmem:[%s3810_s0 + $0x3b8] sm:$0xf0]  ;;  %v2318_v0 = vor.u32 %v2602_v52, %v2317_v51 }
 0x1c9   :  { %v1642_v12 = vadd.f32 %v1641_v53, %v1473_v1  ;;  %v2600_v53 = vld [vmem:[%s3810_s0 + $0x3ac] sm:$0xf] }
 0x1ca   :  { %v2322_v1 = vor.u32 %v2600_v53, %v2319_v54 }
 0x1ce   :  { %v1474_v3 = vpop.f32.mrf.mxu2  ;;  %v1139_v8 = vpop.f32.mrf.mxu0 }
 0x1cf   :  { %v1643_v4 = vpop.f32.mrf.mxu3  ;;  %v1475_v7 = vadd.f32 %v1474_v3, %v1306_v2  ;;  %v1308_v9 = vpop.f32.mrf.mxu1 }
 0x1d0   :  { %v1309_v19 = vadd.f32 %v1308_v9, %v1139_v8 }
 0x1d1   :  { %v1644_v13 = vadd.f32 %v1643_v4, %v1475_v7  ;;  %1178 = vmatmul.bf16.gmra.mxu0 %v2278_v5 }
 0x1d2   :  { %1347 = vmatmul.bf16.gmra.mxu1 %v2282_v6 }
 0x1d3   :  { %v2736_v14 = vpack.c.bf16 %v1644_v13, %v1642_v12  ;;  %1516 = vmatmul.bf16.gmra.mxu2 %v2286_v10  ;;  %v2325_v10 = vld [vmem:[%s3810_s0 + $0x3c0] sm:$0xf]  ;;  %v2603_v12 = vld [vmem:[%s3810_s0 + $0x3c4] sm:$0xf]  ;;  %v2327_v13 = vld [vmem:[%s3810_s0 + $0x3d0] sm:$0xf0] }
 0x1d4   :  { %1685 = vmatmul.bf16.gmra.mxu3 %v2290_v11  ;;  %v2605_v11 = vld [vmem:[%s3810_s0 + $0x3cc] sm:$0xf0]  ;;  %v2330_v23 = vor.u32 %v2603_v12, %v2327_v13 }
 0x1d5   :  { %2820 = vst [vmem:[%s3811_s2 + $0x90] sm:$0xff] %v2736_v14   ;;  %v2333_v14 = vld [vmem:[%s3810_s0 + $0x3c8] sm:$0xf]  ;;  %v2326_v22 = vor.u32 %v2605_v11, %v2325_v10 }
 0x1d6   :  { %v1477_v15 = vpop.f32.mrf.mxu2  ;;  %v1141_v17 = vpop.f32.mrf.mxu0 }
 0x1d7   :  { %v1646_v16 = vpop.f32.mrf.mxu3  ;;  %v1310_v18 = vpop.f32.mrf.mxu1  ;;  %v1478_v28 = vadd.f32 %v1477_v15, %v1309_v19  ;;  %v2606_v15 = vld [vmem:[%s3810_s0 + $0x3d4] sm:$0xf0] }
 0x1d8   :  { %v1311_v29 = vadd.f32 %v1310_v18, %v1141_v17  ;;  %v2335_v17 = vld [vmem:[%s3810_s0 + $0x3d8] sm:$0xf0]  ;;  %v2334_v27 = vor.u32 %v2606_v15, %v2333_v14 }
 0x1d9   :  { %v1647_v39 = vadd.f32 %v1646_v16, %v1478_v28  ;;  %v2604_v16 = vld [vmem:[%s3810_s0 + $0x3cc] sm:$0xf] }
 0x1da   :  { %v2338_v28 = vor.u32 %v2604_v16, %v2335_v17 }
 0x1de   :  { %v1479_v30 = vpop.f32.mrf.mxu2  ;;  %v1144_v35 = vpop.f32.mrf.mxu0 }
 0x1df   :  { %v1648_v31 = vpop.f32.mrf.mxu3  ;;  %v1480_v34 = vadd.f32 %v1479_v30, %v1311_v29  ;;  %v1313_v36 = vpop.f32.mrf.mxu1 }
 0x1e0   :  { %v1314_v46 = vadd.f32 %v1313_v36, %v1144_v35 }
 0x1e1   :  { %v1649_v40 = vadd.f32 %v1648_v31, %v1480_v34  ;;  %1183 = vmatmul.bf16.gmra.mxu0 %v2294_v32 }
 0x1e2   :  { %1352 = vmatmul.bf16.gmra.mxu1 %v2298_v33 }
 0x1e3   :  { %v2741_v41 = vpack.c.bf16 %v1649_v40, %v1647_v39  ;;  %1521 = vmatmul.bf16.gmra.mxu2 %v2302_v37  ;;  %v2341_v37 = vld [vmem:[%s3810_s0 + $0x3e0] sm:$0xf]  ;;  %v2607_v39 = vld [vmem:[%s3810_s0 + $0x3e4] sm:$0xf]  ;;  %v2343_v40 = vld [vmem:[%s3810_s0 + $0x3f0] sm:$0xf0] }
 0x1e4   :  { %1690 = vmatmul.bf16.gmra.mxu3 %v2306_v38  ;;  %v2609_v38 = vld [vmem:[%s3810_s0 + $0x3ec] sm:$0xf0]  ;;  %v2346_v50 = vor.u32 %v2607_v39, %v2343_v40 }
 0x1e5   :  { %2821 = vst [vmem:[%s3811_s2 + $0x98] sm:$0xff] %v2741_v41   ;;  %v2349_v41 = vld [vmem:[%s3810_s0 + $0x3e8] sm:$0xf]  ;;  %v2342_v49 = vor.u32 %v2609_v38, %v2341_v37 }
 0x1e6   :  { %v1482_v42 = vpop.f32.mrf.mxu2  ;;  %v1146_v44 = vpop.f32.mrf.mxu0 }
 0x1e7   :  { %v1651_v43 = vpop.f32.mrf.mxu3  ;;  %v1315_v45 = vpop.f32.mrf.mxu1  ;;  %v1483_v55 = vadd.f32 %v1482_v42, %v1314_v46  ;;  %v2610_v42 = vld [vmem:[%s3810_s0 + $0x3f4] sm:$0xf0] }
 0x1e8   :  { %v1316_v56 = vadd.f32 %v1315_v45, %v1146_v44  ;;  %v2351_v44 = vld [vmem:[%s3810_s0 + $0x3f8] sm:$0xf0]  ;;  %v2350_v54 = vor.u32 %v2610_v42, %v2349_v41 }
 0x1e9   :  { %v1652_v2 = vadd.f32 %v1651_v43, %v1483_v55  ;;  %v2608_v43 = vld [vmem:[%s3810_s0 + $0x3ec] sm:$0xf] }
 0x1ea   :  { %v2354_v55 = vor.u32 %v2608_v43, %v2351_v44 }
 0x1ee   :  { %v1484_v57 = vpop.f32.mrf.mxu2  ;;  %v1149_v62 = vpop.f32.mrf.mxu0 }
 0x1ef   :  { %v1653_v58 = vpop.f32.mrf.mxu3  ;;  %v1485_v61 = vadd.f32 %v1484_v57, %v1316_v56  ;;  %v1318_v63 = vpop.f32.mrf.mxu1 }
 0x1f0   :  { %v1319_v9 = vadd.f32 %v1318_v63, %v1149_v62 }
 0x1f1   :  { %v1654_v3 = vadd.f32 %v1653_v58, %v1485_v61  ;;  %1188 = vmatmul.bf16.gmra.mxu0 %v2310_v59 }
 0x1f2   :  { %1357 = vmatmul.bf16.gmra.mxu1 %v2314_v60 }
 0x1f3   :  { %v2746_v4 = vpack.c.bf16 %v1654_v3, %v1652_v2  ;;  %1526 = vmatmul.bf16.gmra.mxu2 %v2318_v0 }
 0x1f4   :  { %1695 = vmatmul.bf16.gmra.mxu3 %v2322_v1 }
 0x1f5   :  { %2822 = vst [vmem:[%s3811_s2 + $0xa0] sm:$0xff] %v2746_v4  }
 0x1f6   :  { %v1487_v5 = vpop.f32.mrf.mxu2  ;;  %v1151_v7 = vpop.f32.mrf.mxu0 }
 0x1f7   :  { %v1656_v6 = vpop.f32.mrf.mxu3  ;;  %v1320_v8 = vpop.f32.mrf.mxu1  ;;  %v1488_v18 = vadd.f32 %v1487_v5, %v1319_v9 }
 0x1f8   :  { %v1321_v19 = vadd.f32 %v1320_v8, %v1151_v7 }
 0x1f9   :  { %v1657_v29 = vadd.f32 %v1656_v6, %v1488_v18 }
 0x1fe   :  { %v1489_v20 = vpop.f32.mrf.mxu2  ;;  %v1154_v25 = vpop.f32.mrf.mxu0 }
 0x1ff   :  { %v1658_v21 = vpop.f32.mrf.mxu3  ;;  %v1490_v24 = vadd.f32 %v1489_v20, %v1321_v19  ;;  %v1323_v26 = vpop.f32.mrf.mxu1 }
 0x200   :  { %v1324_v36 = vadd.f32 %v1323_v26, %v1154_v25 }
 0x201   :  { %v1659_v30 = vadd.f32 %v1658_v21, %v1490_v24  ;;  %1193 = vmatmul.bf16.gmra.mxu0 %v2326_v22 }
 0x202   :  { %1362 = vmatmul.bf16.gmra.mxu1 %v2330_v23 }
 0x203   :  { %v2751_v31 = vpack.c.bf16 %v1659_v30, %v1657_v29  ;;  %1531 = vmatmul.bf16.gmra.mxu2 %v2334_v27 }
 0x204   :  { %1700 = vmatmul.bf16.gmra.mxu3 %v2338_v28 }
 0x205   :  { %2823 = vst [vmem:[%s3811_s2 + $0xa8] sm:$0xff] %v2751_v31  }
 0x206   :  { %v1492_v32 = vpop.f32.mrf.mxu2  ;;  %v1156_v34 = vpop.f32.mrf.mxu0 }
 0x207   :  { %v1661_v33 = vpop.f32.mrf.mxu3  ;;  %v1325_v35 = vpop.f32.mrf.mxu1  ;;  %v1493_v45 = vadd.f32 %v1492_v32, %v1324_v36 }
 0x208   :  { %v1326_v46 = vadd.f32 %v1325_v35, %v1156_v34 }
 0x209   :  { %v1662_v56 = vadd.f32 %v1661_v33, %v1493_v45 }
 0x20e   :  { %v1494_v47 = vpop.f32.mrf.mxu2  ;;  %v1159_v52 = vpop.f32.mrf.mxu0 }
 0x20f   :  { %v1663_v48 = vpop.f32.mrf.mxu3  ;;  %v1495_v51 = vadd.f32 %v1494_v47, %v1326_v46  ;;  %v1328_v53 = vpop.f32.mrf.mxu1 }
 0x210   :  { %v1329_v63 = vadd.f32 %v1328_v53, %v1159_v52 }
 0x211   :  { %v1664_v57 = vadd.f32 %v1663_v48, %v1495_v51  ;;  %1198 = vmatmul.bf16.gmra.mxu0 %v2342_v49 }
 0x212   :  { %1367 = vmatmul.bf16.gmra.mxu1 %v2346_v50 }
 0x213   :  { %v2756_v58 = vpack.c.bf16 %v1664_v57, %v1662_v56  ;;  %1536 = vmatmul.bf16.gmra.mxu2 %v2350_v54 }
 0x214   :  { %1705 = vmatmul.bf16.gmra.mxu3 %v2354_v55 }
 0x215   :  { %2824 = vst [vmem:[%s3811_s2 + $0xb0] sm:$0xff] %v2756_v58  }
 0x216   :  { %v1497_v59 = vpop.f32.mrf.mxu2  ;;  %v1161_v61 = vpop.f32.mrf.mxu0 }
 0x217   :  { %v1666_v60 = vpop.f32.mrf.mxu3  ;;  %v1330_v62 = vpop.f32.mrf.mxu1  ;;  %v1498_v0 = vadd.f32 %v1497_v59, %v1329_v63 }
 0x218   :  { %v1331_v1 = vadd.f32 %v1330_v62, %v1161_v61 }
 0x219   :  { %v1667_v7 = vadd.f32 %v1666_v60, %v1498_v0 }
 0x21e   :  { %v1499_v2 = vpop.f32.mrf.mxu2  ;;  %v1164_v5 = vpop.f32.mrf.mxu0 }
 0x21f   :  { %v1668_v3 = vpop.f32.mrf.mxu3  ;;  %v1500_v4 = vadd.f32 %v1499_v2, %v1331_v1  ;;  %v1333_v6 = vpop.f32.mrf.mxu1 }
 0x220   :  { %v1334_v14 = vadd.f32 %v1333_v6, %v1164_v5 }
 0x221   :  { %v1669_v8 = vadd.f32 %v1668_v3, %v1500_v4 }
 0x223   :  { %v2761_v9 = vpack.c.bf16 %v1669_v8, %v1667_v7 }
 0x225   :  { %2825 = vst [vmem:[%s3811_s2 + $0xb8] sm:$0xff] %v2761_v9  }
 0x226   :  { %v1502_v10 = vpop.f32.mrf.mxu2  ;;  %v1166_v12 = vpop.f32.mrf.mxu0 }
 0x227   :  { %v1671_v11 = vpop.f32.mrf.mxu3  ;;  %v1335_v13 = vpop.f32.mrf.mxu1  ;;  %v1503_v15 = vadd.f32 %v1502_v10, %v1334_v14 }
 0x228   :  { %v1336_v16 = vadd.f32 %v1335_v13, %v1166_v12 }
 0x229   :  { %v1672_v22 = vadd.f32 %v1671_v11, %v1503_v15 }
 0x22e   :  { %v1504_v17 = vpop.f32.mrf.mxu2  ;;  %v1169_v20 = vpop.f32.mrf.mxu0 }
 0x22f   :  { %v1673_v18 = vpop.f32.mrf.mxu3  ;;  %v1505_v19 = vadd.f32 %v1504_v17, %v1336_v16  ;;  %v1338_v21 = vpop.f32.mrf.mxu1 }
 0x230   :  { %v1339_v29 = vadd.f32 %v1338_v21, %v1169_v20 }
 0x231   :  { %v1674_v23 = vadd.f32 %v1673_v18, %v1505_v19 }
 0x233   :  { %v2766_v24 = vpack.c.bf16 %v1674_v23, %v1672_v22 }
 0x235   :  { %2826 = vst [vmem:[%s3811_s2 + $0xc0] sm:$0xff] %v2766_v24  }
 0x236   :  { %v1507_v25 = vpop.f32.mrf.mxu2  ;;  %v1171_v27 = vpop.f32.mrf.mxu0 }
 0x237   :  { %v1676_v26 = vpop.f32.mrf.mxu3  ;;  %v1340_v28 = vpop.f32.mrf.mxu1  ;;  %v1508_v30 = vadd.f32 %v1507_v25, %v1339_v29 }
 0x238   :  { %v1341_v31 = vadd.f32 %v1340_v28, %v1171_v27 }
 0x239   :  { %v1677_v37 = vadd.f32 %v1676_v26, %v1508_v30 }
 0x23e   :  { %v1509_v32 = vpop.f32.mrf.mxu2  ;;  %v1174_v35 = vpop.f32.mrf.mxu0 }
 0x23f   :  { %v1678_v33 = vpop.f32.mrf.mxu3  ;;  %v1510_v34 = vadd.f32 %v1509_v32, %v1341_v31  ;;  %v1343_v36 = vpop.f32.mrf.mxu1 }
 0x240   :  { %v1344_v44 = vadd.f32 %v1343_v36, %v1174_v35 }
 0x241   :  { %v1679_v38 = vadd.f32 %v1678_v33, %v1510_v34 }
 0x243   :  { %v2771_v39 = vpack.c.bf16 %v1679_v38, %v1677_v37 }
 0x245   :  { %2827 = vst [vmem:[%s3811_s2 + $0xc8] sm:$0xff] %v2771_v39  }
 0x246   :  { %v1512_v40 = vpop.f32.mrf.mxu2  ;;  %v1176_v42 = vpop.f32.mrf.mxu0 }
 0x247   :  { %v1681_v41 = vpop.f32.mrf.mxu3  ;;  %v1345_v43 = vpop.f32.mrf.mxu1  ;;  %v1513_v45 = vadd.f32 %v1512_v40, %v1344_v44 }
 0x248   :  { %v1346_v46 = vadd.f32 %v1345_v43, %v1176_v42 }
 0x249   :  { %v1682_v52 = vadd.f32 %v1681_v41, %v1513_v45 }
 0x24e   :  { %v1514_v47 = vpop.f32.mrf.mxu2  ;;  %v1179_v50 = vpop.f32.mrf.mxu0 }
 0x24f   :  { %v1683_v48 = vpop.f32.mrf.mxu3  ;;  %v1515_v49 = vadd.f32 %v1514_v47, %v1346_v46  ;;  %v1348_v51 = vpop.f32.mrf.mxu1 }
 0x250   :  { %v1349_v59 = vadd.f32 %v1348_v51, %v1179_v50 }
 0x251   :  { %v1684_v53 = vadd.f32 %v1683_v48, %v1515_v49 }
 0x253   :  { %v2776_v54 = vpack.c.bf16 %v1684_v53, %v1682_v52 }
 0x255   :  { %2828 = vst [vmem:[%s3811_s2 + $0xd0] sm:$0xff] %v2776_v54  }
 0x256   :  { %v1517_v55 = vpop.f32.mrf.mxu2  ;;  %v1181_v57 = vpop.f32.mrf.mxu0 }
 0x257   :  { %v1686_v56 = vpop.f32.mrf.mxu3  ;;  %v1350_v58 = vpop.f32.mrf.mxu1  ;;  %v1518_v60 = vadd.f32 %v1517_v55, %v1349_v59 }
 0x258   :  { %v1351_v61 = vadd.f32 %v1350_v58, %v1181_v57 }
 0x259   :  { %v1687_v3 = vadd.f32 %v1686_v56, %v1518_v60 }
 0x25e   :  { %v1519_v62 = vpop.f32.mrf.mxu2  ;;  %v1184_v1 = vpop.f32.mrf.mxu0 }
 0x25f   :  { %v1688_v63 = vpop.f32.mrf.mxu3  ;;  %v1520_v0 = vadd.f32 %v1519_v62, %v1351_v61  ;;  %v1353_v2 = vpop.f32.mrf.mxu1 }
 0x260   :  { %v1354_v10 = vadd.f32 %v1353_v2, %v1184_v1 }
 0x261   :  { %v1689_v4 = vadd.f32 %v1688_v63, %v1520_v0 }
 0x263   :  { %v2781_v5 = vpack.c.bf16 %v1689_v4, %v1687_v3 }
 0x265   :  { %2829 = vst [vmem:[%s3811_s2 + $0xd8] sm:$0xff] %v2781_v5  }
 0x266   :  { %v1522_v6 = vpop.f32.mrf.mxu2  ;;  %v1186_v8 = vpop.f32.mrf.mxu0 }
 0x267   :  { %v1691_v7 = vpop.f32.mrf.mxu3  ;;  %v1355_v9 = vpop.f32.mrf.mxu1  ;;  %v1523_v11 = vadd.f32 %v1522_v6, %v1354_v10 }
 0x268   :  { %v1356_v12 = vadd.f32 %v1355_v9, %v1186_v8 }
 0x269   :  { %v1692_v18 = vadd.f32 %v1691_v7, %v1523_v11 }
 0x26e   :  { %v1524_v13 = vpop.f32.mrf.mxu2  ;;  %v1189_v16 = vpop.f32.mrf.mxu0 }
 0x26f   :  { %v1693_v14 = vpop.f32.mrf.mxu3  ;;  %v1525_v15 = vadd.f32 %v1524_v13, %v1356_v12  ;;  %v1358_v17 = vpop.f32.mrf.mxu1 }
 0x270   :  { %v1359_v25 = vadd.f32 %v1358_v17, %v1189_v16 }
 0x271   :  { %v1694_v19 = vadd.f32 %v1693_v14, %v1525_v15 }
 0x273   :  { %v2786_v20 = vpack.c.bf16 %v1694_v19, %v1692_v18 }
 0x275   :  { %2830 = vst [vmem:[%s3811_s2 + $0xe0] sm:$0xff] %v2786_v20  }
 0x276   :  { %v1527_v21 = vpop.f32.mrf.mxu2  ;;  %v1191_v23 = vpop.f32.mrf.mxu0 }
 0x277   :  { %v1696_v22 = vpop.f32.mrf.mxu3  ;;  %v1360_v24 = vpop.f32.mrf.mxu1  ;;  %v1528_v26 = vadd.f32 %v1527_v21, %v1359_v25 }
 0x278   :  { %v1361_v27 = vadd.f32 %v1360_v24, %v1191_v23 }
 0x279   :  { %v1697_v33 = vadd.f32 %v1696_v22, %v1528_v26 }
 0x27e   :  { %v1529_v28 = vpop.f32.mrf.mxu2  ;;  %v1194_v31 = vpop.f32.mrf.mxu0 }
 0x27f   :  { %v1698_v29 = vpop.f32.mrf.mxu3  ;;  %v1530_v30 = vadd.f32 %v1529_v28, %v1361_v27  ;;  %v1363_v32 = vpop.f32.mrf.mxu1 }
 0x280   :  { %v1364_v40 = vadd.f32 %v1363_v32, %v1194_v31 }
 0x281   :  { %v1699_v34 = vadd.f32 %v1698_v29, %v1530_v30 }
 0x283   :  { %v2791_v35 = vpack.c.bf16 %v1699_v34, %v1697_v33 }
 0x285   :  { %2831 = vst [vmem:[%s3811_s2 + $0xe8] sm:$0xff] %v2791_v35  }
 0x286   :  { %v1532_v36 = vpop.f32.mrf.mxu2  ;;  %v1196_v38 = vpop.f32.mrf.mxu0 }
 0x287   :  { %v1701_v37 = vpop.f32.mrf.mxu3  ;;  %v1365_v39 = vpop.f32.mrf.mxu1  ;;  %v1533_v41 = vadd.f32 %v1532_v36, %v1364_v40 }
 0x288   :  { %v1366_v42 = vadd.f32 %v1365_v39, %v1196_v38 }
 0x289   :  { %v1702_v48 = vadd.f32 %v1701_v37, %v1533_v41 }
 0x28e   :  { %v1534_v43 = vpop.f32.mrf.mxu2  ;;  %v1199_v46 = vpop.f32.mrf.mxu0 }
 0x28f   :  { %v1703_v44 = vpop.f32.mrf.mxu3  ;;  %v1535_v45 = vadd.f32 %v1534_v43, %v1366_v42  ;;  %v1368_v47 = vpop.f32.mrf.mxu1 }
 0x290   :  { %v1369_v53 = vadd.f32 %v1368_v47, %v1199_v46 }
 0x291   :  { %v1704_v49 = vadd.f32 %v1703_v44, %v1535_v45 }
 0x293   :  { %v2796_v50 = vpack.c.bf16 %v1704_v49, %v1702_v48 }
 0x295   :  { %2832 = vst [vmem:[%s3811_s2 + $0xf0] sm:$0xff] %v2796_v50  }
 0x296   :  { %v1537_v51 = vpop.f32.mrf.mxu2  ;;  %v1201_v54 = vpop.f32.mrf.mxu0 }
 0x297   :  { %v1706_v52 = vpop.f32.mrf.mxu3  ;;  %v1370_v55 = vpop.f32.mrf.mxu1  ;;  %v1538_v56 = vadd.f32 %v1537_v51, %v1369_v53 }
 0x298   :  { %v1371_v57 = vadd.f32 %v1370_v55, %v1201_v54 }
 0x299   :  { %v1707_v61 = vadd.f32 %v1706_v52, %v1538_v56 }
 0x29e   :  { %v1539_v58 = vpop.f32.mrf.mxu2 }
 0x29f   :  { %v1540_v59 = vadd.f32 %v1539_v58, %v1371_v57  ;;  %v1708_v60 = vpop.f32.mrf.mxu3 }
 0x2a1   :  { %v1709_v62 = vadd.f32 %v1708_v60, %v1540_v59 }
 0x2a3   :  { %v2801_v63 = vpack.c.bf16 %v1709_v62, %v1707_v61 }
 0x2a5   :  { %2833 = vst [vmem:[%s3811_s2 + $0xf8] sm:$0xff] %v2801_v63  }

</bundles_post_ra>
